<compile_context>
chip_gen: v7x
topology: tpu7x:2x2x1
jax: 0.10.0
libtpu: 0.0.40
codegen_flags: <defaults>
</compile_context>

<pallas_src>
import functools

import jax
import jax.numpy as jnp
from jax.experimental import pallas as pl
from jax.experimental.pallas import tpu as pltpu

_LANES = 128
_SUBLANES = 8


def _round_up(x, m):
    return (x + m - 1) // m * m


def _vmem_limit_bytes():
    """Generation-aware VMEM cap: ~96 MiB on 128-MiB chips, ~48 MiB on v7x."""
    cap = 64 * 1024 * 1024
    try:
        info = pltpu.get_tpu_info()
        cap = int(getattr(info, "vmem_capacity_bytes", cap))
    except Exception:
        pass
    return max(32 * 1024 * 1024, min(cap * 3 // 4, 96 * 1024 * 1024))


def _pick_h_tile(H, W, cin_p, cp, budget_bytes):
    """Largest H-tile whose estimated per-step f32 working set fits the budget.

    No divisor-of-H requirement: the grid uses ceil(H/HT) tiles; the partial
    last tile is masked in the stats pass and cropped in the wrapper, so an
    awkward H no longer degenerates to per-row (HT=1) grid steps.
    """
    Wp = W + 2

    def step_bytes(ht):
        slab = (ht + 2) * Wp
        words = (
            2 * slab * cin_p              # double-buffered x tile + halo rows
            + 2 * (cin_p + 9 + 2) * cp    # resident weights + scale/shift
            + 2 * ht * W * cp             # double-buffered output blocks
            + slab * cp                   # y1 VMEM scratch
            + 4 * ht * W * cp             # acc + live temporaries
        )
        return words * 4

    ht = H
    while ht > 1 and step_bytes(ht) > budget_bytes:
        ht -= 1
    return ht


@functools.partial(jax.jit, static_argnames=("h_tile", "mxu_dtype"))
def dwunit_forward(x_nchw, w1_oihw, w3_dwhw, gamma, beta, *, h_tile=None,
                   mxu_dtype=jnp.float32):
    """PyTorch-layout wrapper: NCHW in, NCHW out."""
    N, Cin, H, W = x_nchw.shape
    Cout = w1_oihw.shape[0]
    Cp = _round_up(Cout, _LANES)            # lane-dense output channel axis
    # Lane-dense input channels only when Cin is non-trivial; padding a tiny
    # Cin to 128 would inflate x HBM bytes for no MXU benefit.
    Cin_p = _round_up(Cin, _LANES) if Cin >= 32 else _round_up(Cin, _SUBLANES)
    Wp = W + 2

    vmem_limit = _vmem_limit_bytes()
    if h_tile is None:
        HT = _pick_h_tile(H, W, Cin_p, Cp, budget_bytes=vmem_limit // 2)
    else:
        HT = max(1, min(int(h_tile), H))
    Hb = -(-H // HT)
    Hp = Hb * HT
    partial_last = (Hp != H)

    # ---- layout glue (one fused XLA producer): NCHW->NHWC, pad H/W/C --------
    # TODO(synk): accept/return NHWC end-to-end to drop the two activation
    # transposes entirely (each is an extra HBM read+write of the activations).
    x = jnp.transpose(x_nchw, (0, 2, 3, 1)).astype(jnp.float32)
    x = jnp.pad(x, ((0, 0), (0, Hp - H), (1, 1), (0, Cin_p - Cin)))

    w1 = jnp.transpose(w1_oihw[:, :, 0, 0], (1, 0)).astype(jnp.float32)   # (Cin, Cout)
    w1 = jnp.pad(w1, ((0, Cin_p - Cin), (0, Cp - Cout)))
    w3 = jnp.transpose(w3_dwhw[:, 0, :, :].reshape(Cout, 9), (1, 0))      # (9, Cout)
    w3 = jnp.pad(w3.astype(jnp.float32), ((0, 0), (0, Cp - Cout)))

    params = pltpu.CompilerParams(
        dimension_semantics=("parallel", "parallel"),
        vmem_limit_bytes=vmem_limit,
    )

    def conv_dw(xt_ref, xm_ref, xb_ref, w1_ref, w3_ref, y1_ref):
        """1x1 conv (MXU) + depthwise 3x3 for one (HT, W, Cp) tile."""
        h = pl.program_id(1)
        nh = pl.num_programs(1)
        # Halo rows come from clamped fetches; zero them at the image top /
        # bottom so they act as the 3x3 conv's zero padding (conv1x1 is
        # bias-free, so padding x is equivalent to padding its output).
        # W is pre-padded with zero columns in HBM -> no in-kernel W concat.
        xt = jnp.where(h == 0, 0.0, xt_ref[0])                 # (1, Wp, Cin_p)
        xb = jnp.where(h == nh - 1, 0.0, xb_ref[0])            # (1, Wp, Cin_p)
        xe = jnp.concatenate([xt, xm_ref[0], xb], axis=0)      # (HT+2, Wp, Cin_p)

        # 1x1 conv == channel matmul on the MXU over all (HT+2)*Wp pixels.
        # mxu_dtype=jnp.bfloat16 halves MXU time / slab vld traffic when the
        # model tolerates it (default f32 keeps exact parity with the module).
        y1 = jnp.dot(
            xe.reshape((HT + 2) * Wp, Cin_p).astype(mxu_dtype),
            w1_ref[...].astype(mxu_dtype),
            preferred_element_type=jnp.float32,
        )
        # Park y1 in VMEM scratch and read the 9 tap windows as static ref
        # slices -- no materialized W-shifted copies of the Cp-wide slab.
        y1_ref[...] = y1.reshape(HT + 2, Wp, Cp)

        # TODO(synk): on v6e/v7x the tap multiplies could run in bf16 (f32
        # accumulate) to halve VPU pressure; kept f32 so v5e (no bf16 VALU)
        # and exact-parity checks stay correct.
        w3v = w3_ref[...]                                      # (9, Cp)
        acc = None
        for kh in range(3):
            for kw in range(3):
                tap = w3v[kh * 3 + kw].reshape(1, 1, Cp)
                contrib = y1_ref[kh:kh + HT, kw:kw + W, :] * tap
                acc = contrib if acc is None else acc + contrib
        return acc                                             # (HT, W, Cp) f32

    def stats_kernel(xt_ref, xm_ref, xb_ref, w1_ref, w3_ref, st_ref, y1_ref):
        """Pass 1: per-tile BN partials only (sum + centered sum-of-squares)."""
        acc = conv_dw(xt_ref, xm_ref, xb_ref, w1_ref, w3_ref, y1_ref)
        if partial_last:
            rows_left = H - pl.program_id(1) * HT
            row_ids = jax.lax.broadcasted_iota(jnp.int32, (HT, 1, 1), 0)
            valid = row_ids < rows_left
            cnt = (jnp.minimum(rows_left, HT) * W).astype(jnp.float32)
            s = jnp.sum(jnp.where(valid, acc, 0.0), axis=(0, 1))
            d = jnp.where(valid, acc - (s / cnt).reshape(1, 1, Cp), 0.0)
        else:
            cnt = jnp.float32(HT * W)
            s = jnp.sum(acc, axis=(0, 1))
            d = acc - (s / cnt).reshape(1, 1, Cp)
        m2 = jnp.sum(d * d, axis=(0, 1))   # centered -> no E[x^2]-E[x]^2 cancellation
        st_ref[...] = jnp.stack([s, m2])[None, None]           # (1, 1, 2, Cp)

    def apply_kernel(xt_ref, xm_ref, xb_ref, w1_ref, w3_ref, sc_ref, sh_ref,
                     o_ref, y1_ref):
        """Pass 2: recompute conv (cheap) and fuse folded BN + ReLU into the
        single lane-dense output write."""
        acc = conv_dw(xt_ref, xm_ref, xb_ref, w1_ref, w3_ref, y1_ref)
        s = sc_ref[...].reshape(1, 1, Cp)
        t = sh_ref[...].reshape(1, 1, Cp)
        o_ref[...] = jnp.maximum(acc * s + t, 0.0)[None].astype(o_ref.dtype)

    x_specs = [
        # halo row above (block size 1 along H => block index == row index)
        pl.BlockSpec((1, 1, Wp, Cin_p),
                     lambda n, h: (n, jnp.maximum(h * HT - 1, 0), 0, 0)),
        # the H-tile itself
        pl.BlockSpec((1, HT, Wp, Cin_p), lambda n, h: (n, h, 0, 0)),
        # halo row below (clamped at the bottom)
        pl.BlockSpec((1, 1, Wp, Cin_p),
                     lambda n, h: (n, jnp.minimum(h * HT + HT, Hp - 1), 0, 0)),
    ]
    w_specs = [
        # weights: constant block index -> resident across the grid
        pl.BlockSpec((Cin_p, Cp), lambda n, h: (0, 0)),
        pl.BlockSpec((9, Cp), lambda n, h: (0, 0)),
    ]

    # ---- pass 1: stats only (no Cp-wide activation round-trip through HBM) --
    st = pl.pallas_call(
        stats_kernel,
        out_shape=jax.ShapeDtypeStruct((N, Hb, 2, Cp), jnp.float32),
        grid=(N, Hb),
        in_specs=x_specs + w_specs,
        out_specs=pl.BlockSpec((1, 1, 2, Cp), lambda n, h: (n, h, 0, 0)),
        scratch_shapes=[pltpu.VMEM((HT + 2, Wp, Cp), jnp.float32)],
        compiler_params=params,
    )(x, x, x, w1, w3)

    # ---- fold BN (train-mode batch stats, biased var) via Chan's merge ------
    sums = st[:, :, 0, :]                                      # (N, Hb, Cp)
    m2s = st[:, :, 1, :]
    counts = (jnp.minimum(HT, H - jnp.arange(Hb) * HT) * W).astype(jnp.float32)
    total = jnp.float32(N * H * W)
    mean = jnp.sum(sums, axis=(0, 1)) / total
    tmean = sums / counts[None, :, None]
    m2 = (jnp.sum(m2s, axis=(0, 1))
          + jnp.sum(counts[None, :, None] * jnp.square(tmean - mean), axis=(0, 1)))
    var = jnp.maximum(m2 / total, 0.0)
    gamma_p = jnp.pad(gamma.astype(jnp.float32), (0, Cp - Cout))
    beta_p = jnp.pad(beta.astype(jnp.float32), (0, Cp - Cout))
    scale = gamma_p * jax.lax.rsqrt(var + 1e-5)
    shift = beta_p - mean * scale
    # TODO(synk): BatchNorm running_mean/running_var updates (module side
    # effect) are not produced; only the forward output is computed.

    # ---- pass 2: recompute conv, y*scale + shift, ReLU -----------------------
    out_p = pl.pallas_call(
        apply_kernel,
        out_shape=jax.ShapeDtypeStruct((N, Hp, W, Cp), jnp.float32),
        grid=(N, Hb),
        in_specs=x_specs + w_specs + [
            pl.BlockSpec((1, Cp), lambda n, h: (0, 0)),
            pl.BlockSpec((1, Cp), lambda n, h: (0, 0)),
        ],
        out_specs=pl.BlockSpec((1, HT, W, Cp), lambda n, h: (n, h, 0, 0)),
        scratch_shapes=[pltpu.VMEM((HT + 2, Wp, Cp), jnp.float32)],
        compiler_params=params,
    )(x, x, x, w1, w3, scale.reshape(1, Cp), shift.reshape(1, Cp))

    # TODO(synk): writing NCHW blocks directly from pass 2 would drop this
    # transpose, but costs an in-kernel lane->major relayout and lane-sparse
    # stores when W < 128; kept as a fused XLA crop+transpose instead.
    return jnp.transpose(out_p[:, :H, :, :Cout], (0, 3, 1, 2))   # back to NCHW


def dwunit_reference(x_nchw, w1_oihw, w3_dwhw, gamma, beta):
    """Pure-JAX reference (mirrors the PyTorch forward) for correctness check."""
    N, Cin, H, W = x_nchw.shape
    Cout = w1_oihw.shape[0]
    x = jnp.transpose(x_nchw, (0, 2, 3, 1)).astype(jnp.float32)  # NHWC
    # 1x1 conv
    y1 = jnp.einsum("nhwc,oc->nhwo", x, w1_oihw[:, :, 0, 0].astype(jnp.float32))
    # depthwise 3x3, pad 1
    yp = jnp.pad(y1, ((0, 0), (1, 1), (1, 1), (0, 0)))
    acc = jnp.zeros((N, H, W, Cout), jnp.float32)
    for kh in range(3):
        for kw in range(3):
            tap = w3_dwhw[:, 0, kh, kw].astype(jnp.float32).reshape(1, 1, 1, Cout)
            acc = acc + yp[:, kh:kh + H, kw:kw + W, :] * tap
    # BN (batch stats, biased variance) + ReLU
    mean = jnp.mean(acc, axis=(0, 1, 2), keepdims=True)
    var = jnp.mean((acc - mean) ** 2, axis=(0, 1, 2), keepdims=True)
    y = (acc - mean) * jax.lax.rsqrt(var + 1e-5)
    y = y * gamma.reshape(1, 1, 1, Cout) + beta.reshape(1, 1, 1, Cout)
    y = jnp.maximum(y, 0.0)
    return jnp.transpose(y, (0, 3, 1, 2))


if __name__ == "__main__":
    # Small, deterministic synthetic setup.
    N, Cin, Cout, H, W = 2, 4, 8, 16, 16
    key = jax.random.PRNGKey(0)
    kx, k1, k3, kg, kb = jax.random.split(key, 5)

    x = jax.random.normal(kx, (N, Cin, H, W), jnp.float32)
    # conv1x1 weight: (Cout, Cin, 1, 1), no bias
    w1 = jax.random.normal(k1, (Cout, Cin, 1, 1), jnp.float32) * 0.1
    # depthwise conv3x3 weight: (Cout, 1, 3, 3), groups=Cout, no bias
    w3 = jax.random.normal(k3, (Cout, 1, 3, 3), jnp.float32) * 0.1
    # BatchNorm affine params
    gamma = 1.0 + 0.1 * jax.random.normal(kg, (Cout,), jnp.float32)
    beta = 0.1 * jax.random.normal(kb, (Cout,), jnp.float32)

    ref = jax.block_until_ready(dwunit_reference(x, w1, w3, gamma, beta))

    # h_tile=8 -> grid=(2, 2): exercises top/bottom halos and the interior seam.
    out = jax.block_until_ready(dwunit_forward(x, w1, w3, gamma, beta, h_tile=8))
    assert out.shape == (N, Cout, H, W), out.shape
    assert jnp.allclose(out, ref, rtol=1e-4, atol=1e-4), float(
        jnp.max(jnp.abs(out - ref)))

    # h_tile=6 -> Hp=18 > H: exercises the masked partial last tile.
    out2 = jax.block_until_ready(dwunit_forward(x, w1, w3, gamma, beta, h_tile=6))
    assert jnp.allclose(out2, ref, rtol=1e-4, atol=1e-4), float(
        jnp.max(jnp.abs(out2 - ref)))

    # Auto tiling (whole image here) as the default production path.
    out3 = jax.block_until_ready(dwunit_forward(x, w1, w3, gamma, beta))
    assert jnp.allclose(out3, ref, rtol=1e-4, atol=1e-4), float(
        jnp.max(jnp.abs(out3 - ref)))

    print("KERNEL_OK")
</pallas_src>

<mosaic_0001>
module attributes {stable_mosaic.version = 11 : i64} {
  func.func @stats_kernel(%arg0: i32, %arg1: i32, %arg2: memref<1x1x18x8xf32, #tpu.memory_space<vmem>>, %arg3: memref<1x8x18x8xf32, #tpu.memory_space<vmem>>, %arg4: memref<1x1x18x8xf32, #tpu.memory_space<vmem>>, %arg5: memref<8x128xf32, #tpu.memory_space<vmem>>, %arg6: memref<9x128xf32, #tpu.memory_space<vmem>>, %arg7: memref<1x1x2x128xf32, #tpu.memory_space<vmem>>, %arg8: memref<10x18x128xf32, #tpu.memory_space<vmem>>) attributes {dimension_semantics = [#tpu.dimension_semantics<parallel>, #tpu.dimension_semantics<parallel>], iteration_bounds = array<i64: 2, 2>, scalar_prefetch = 0 : i64, scratch_operands = 1 : i64, tpu.core_type = #tpu.core_type<tc>, window_params = [{transform_indices = @transform_0, window_bounds = array<i64: 1, 1, 18, 8>}, {transform_indices = @transform_1, window_bounds = array<i64: 1, 8, 18, 8>}, {transform_indices = @transform_2, window_bounds = array<i64: 1, 1, 18, 8>}, {pipeline_mode = #tpu.pipeline_mode<synchronous>, transform_indices = @transform_3, window_bounds = array<i64: 8, 128>}, {pipeline_mode = #tpu.pipeline_mode<synchronous>, transform_indices = @transform_4, window_bounds = array<i64: 9, 128>}, {transform_indices = @transform_5, window_bounds = array<i64: 1, 1, 2, 128>}]} {
    %c0_i32 = arith.constant 0 : i32
    %0 = arith.cmpi eq, %arg1, %c0_i32 : i32
    %c0 = arith.constant 0 : index
    %c0_0 = arith.constant 0 : index
    %c0_1 = arith.constant 0 : index
    %c0_2 = arith.constant 0 : index
    %1 = vector.load %arg2[%c0, %c0_0, %c0_1, %c0_2] : memref<1x1x18x8xf32, #tpu.memory_space<vmem>>, vector<1x1x18x8xf32>
    %2 = vector.shape_cast %1 : vector<1x1x18x8xf32> to vector<1x18x8xf32>
    %cst = arith.constant 0.000000e+00 : f32
    %3 = vector.broadcast %cst : f32 to vector<1x18x8xf32>
    %4 = arith.select %0, %3, %2 : vector<1x18x8xf32>
    %c1_i32 = arith.constant 1 : i32
    %5 = arith.cmpi eq, %arg1, %c1_i32 : i32
    %c0_3 = arith.constant 0 : index
    %c0_4 = arith.constant 0 : index
    %c0_5 = arith.constant 0 : index
    %c0_6 = arith.constant 0 : index
    %6 = vector.load %arg4[%c0_3, %c0_4, %c0_5, %c0_6] : memref<1x1x18x8xf32, #tpu.memory_space<vmem>>, vector<1x1x18x8xf32>
    %7 = vector.shape_cast %6 : vector<1x1x18x8xf32> to vector<1x18x8xf32>
    %cst_7 = arith.constant 0.000000e+00 : f32
    %8 = vector.broadcast %cst_7 : f32 to vector<1x18x8xf32>
    %9 = arith.select %5, %8, %7 : vector<1x18x8xf32>
    %c0_8 = arith.constant 0 : index
    %c0_9 = arith.constant 0 : index
    %c0_10 = arith.constant 0 : index
    %c0_11 = arith.constant 0 : index
    %10 = vector.load %arg3[%c0_8, %c0_9, %c0_10, %c0_11] : memref<1x8x18x8xf32, #tpu.memory_space<vmem>>, vector<1x8x18x8xf32>
    %11 = vector.shape_cast %10 : vector<1x8x18x8xf32> to vector<8x18x8xf32>
    %12 = tpu.concatenate %4, %11, %9 in 0 : vector<1x18x8xf32>, vector<8x18x8xf32>, vector<1x18x8xf32> -> vector<10x18x8xf32>
    %13 = vector.shape_cast %12 : vector<10x18x8xf32> to vector<180x8xf32>
    %c0_12 = arith.constant 0 : index
    %c0_13 = arith.constant 0 : index
    %14 = vector.load %arg5[%c0_12, %c0_13] : memref<8x128xf32, #tpu.memory_space<vmem>>, vector<8x128xf32>
    %cst_14 = arith.constant dense<0.000000e+00> : vector<180x128xf32>
    %15 = tpu.matmul %13, %14, %cst_14 {dimension_numbers = #tpu.dot_dimension_numbers<[1], [0], [0], [1], [0, 0, 1, 1], [], []>} : vector<180x8xf32>, vector<8x128xf32>, vector<180x128xf32> -> vector<180x128xf32>
    %16 = vector.shape_cast %15 : vector<180x128xf32> to vector<10x18x128xf32>
    %c0_15 = arith.constant 0 : index
    %c0_16 = arith.constant 0 : index
    %c0_17 = arith.constant 0 : index
    %17 = vector.load %arg8[%c0_15, %c0_16, %c0_17] : memref<10x18x128xf32, #tpu.memory_space<vmem>>, vector<10x18x128xf32>
    tpu.vector_store %arg8[%c0_15, %c0_16, %c0_17], %16 {strides = array<i32>} : memref<10x18x128xf32, #tpu.memory_space<vmem>>, vector<10x18x128xf32>,
    %c0_18 = arith.constant 0 : index
    %c0_19 = arith.constant 0 : index
    %18 = vector.load %arg6[%c0_18, %c0_19] : memref<9x128xf32, #tpu.memory_space<vmem>>, vector<9x128xf32>
    %19 = vector.extract_strided_slice %18 {offsets = [0, 0], sizes = [1, 128], strides = [1, 1]} : vector<9x128xf32> to vector<1x128xf32>
    %20 = vector.shape_cast %19 : vector<1x128xf32> to vector<128xf32>
    %21 = vector.shape_cast %20 : vector<128xf32> to vector<1x1x128xf32>
    %c0_20 = arith.constant 0 : index
    %c0_21 = arith.constant 0 : index
    %c0_22 = arith.constant 0 : index
    %22 = vector.load %arg8[%c0_20, %c0_21, %c0_22] : memref<10x18x128xf32, #tpu.memory_space<vmem>>, vector<8x16x128xf32>
    %23 = vector.broadcast %21 : vector<1x1x128xf32> to vector<8x16x128xf32>
    %24 = arith.mulf %22, %23 : vector<8x16x128xf32>
    %25 = vector.extract_strided_slice %18 {offsets = [1, 0], sizes = [1, 128], strides = [1, 1]} : vector<9x128xf32> to vector<1x128xf32>
    %26 = vector.shape_cast %25 : vector<1x128xf32> to vector<128xf32>
    %27 = vector.shape_cast %26 : vector<128xf32> to vector<1x1x128xf32>
    %c0_23 = arith.constant 0 : index
    %c1 = arith.constant 1 : index
    %c0_24 = arith.constant 0 : index
    %28 = vector.load %arg8[%c0_23, %c1, %c0_24] : memref<10x18x128xf32, #tpu.memory_space<vmem>>, vector<8x16x128xf32>
    %29 = vector.broadcast %27 : vector<1x1x128xf32> to vector<8x16x128xf32>
    %30 = arith.mulf %28, %29 : vector<8x16x128xf32>
    %31 = arith.addf %24, %30 : vector<8x16x128xf32>
    %32 = vector.extract_strided_slice %18 {offsets = [2, 0], sizes = [1, 128], strides = [1, 1]} : vector<9x128xf32> to vector<1x128xf32>
    %33 = vector.shape_cast %32 : vector<1x128xf32> to vector<128xf32>
    %34 = vector.shape_cast %33 : vector<128xf32> to vector<1x1x128xf32>
    %c0_25 = arith.constant 0 : index
    %c2 = arith.constant 2 : index
    %c0_26 = arith.constant 0 : index
    %35 = vector.load %arg8[%c0_25, %c2, %c0_26] : memref<10x18x128xf32, #tpu.memory_space<vmem>>, vector<8x16x128xf32>
    %36 = vector.broadcast %34 : vector<1x1x128xf32> to vector<8x16x128xf32>
    %37 = arith.mulf %35, %36 : vector<8x16x128xf32>
    %38 = arith.addf %31, %37 : vector<8x16x128xf32>
    %39 = vector.extract_strided_slice %18 {offsets = [3, 0], sizes = [1, 128], strides = [1, 1]} : vector<9x128xf32> to vector<1x128xf32>
    %40 = vector.shape_cast %39 : vector<1x128xf32> to vector<128xf32>
    %41 = vector.shape_cast %40 : vector<128xf32> to vector<1x1x128xf32>
    %c1_27 = arith.constant 1 : index
    %c0_28 = arith.constant 0 : index
    %c0_29 = arith.constant 0 : index
    %42 = vector.load %arg8[%c1_27, %c0_28, %c0_29] : memref<10x18x128xf32, #tpu.memory_space<vmem>>, vector<8x16x128xf32>
    %43 = vector.broadcast %41 : vector<1x1x128xf32> to vector<8x16x128xf32>
    %44 = arith.mulf %42, %43 : vector<8x16x128xf32>
    %45 = arith.addf %38, %44 : vector<8x16x128xf32>
    %46 = vector.extract_strided_slice %18 {offsets = [4, 0], sizes = [1, 128], strides = [1, 1]} : vector<9x128xf32> to vector<1x128xf32>
    %47 = vector.shape_cast %46 : vector<1x128xf32> to vector<128xf32>
    %48 = vector.shape_cast %47 : vector<128xf32> to vector<1x1x128xf32>
    %c1_30 = arith.constant 1 : index
    %c1_31 = arith.constant 1 : index
    %c0_32 = arith.constant 0 : index
    %49 = vector.load %arg8[%c1_30, %c1_31, %c0_32] : memref<10x18x128xf32, #tpu.memory_space<vmem>>, vector<8x16x128xf32>
    %50 = vector.broadcast %48 : vector<1x1x128xf32> to vector<8x16x128xf32>
    %51 = arith.mulf %49, %50 : vector<8x16x128xf32>
    %52 = arith.addf %45, %51 : vector<8x16x128xf32>
    %53 = vector.extract_strided_slice %18 {offsets = [5, 0], sizes = [1, 128], strides = [1, 1]} : vector<9x128xf32> to vector<1x128xf32>
    %54 = vector.shape_cast %53 : vector<1x128xf32> to vector<128xf32>
    %55 = vector.shape_cast %54 : vector<128xf32> to vector<1x1x128xf32>
    %c1_33 = arith.constant 1 : index
    %c2_34 = arith.constant 2 : index
    %c0_35 = arith.constant 0 : index
    %56 = vector.load %arg8[%c1_33, %c2_34, %c0_35] : memref<10x18x128xf32, #tpu.memory_space<vmem>>, vector<8x16x128xf32>
    %57 = vector.broadcast %55 : vector<1x1x128xf32> to vector<8x16x128xf32>
    %58 = arith.mulf %56, %57 : vector<8x16x128xf32>
    %59 = arith.addf %52, %58 : vector<8x16x128xf32>
    %60 = vector.extract_strided_slice %18 {offsets = [6, 0], sizes = [1, 128], strides = [1, 1]} : vector<9x128xf32> to vector<1x128xf32>
    %61 = vector.shape_cast %60 : vector<1x128xf32> to vector<128xf32>
    %62 = vector.shape_cast %61 : vector<128xf32> to vector<1x1x128xf32>
    %c2_36 = arith.constant 2 : index
    %c0_37 = arith.constant 0 : index
    %c0_38 = arith.constant 0 : index
    %63 = vector.load %arg8[%c2_36, %c0_37, %c0_38] : memref<10x18x128xf32, #tpu.memory_space<vmem>>, vector<8x16x128xf32>
    %64 = vector.broadcast %62 : vector<1x1x128xf32> to vector<8x16x128xf32>
    %65 = arith.mulf %63, %64 : vector<8x16x128xf32>
    %66 = arith.addf %59, %65 : vector<8x16x128xf32>
    %67 = vector.extract_strided_slice %18 {offsets = [7, 0], sizes = [1, 128], strides = [1, 1]} : vector<9x128xf32> to vector<1x128xf32>
    %68 = vector.shape_cast %67 : vector<1x128xf32> to vector<128xf32>
    %69 = vector.shape_cast %68 : vector<128xf32> to vector<1x1x128xf32>
    %c2_39 = arith.constant 2 : index
    %c1_40 = arith.constant 1 : index
    %c0_41 = arith.constant 0 : index
    %70 = vector.load %arg8[%c2_39, %c1_40, %c0_41] : memref<10x18x128xf32, #tpu.memory_space<vmem>>, vector<8x16x128xf32>
    %71 = vector.broadcast %69 : vector<1x1x128xf32> to vector<8x16x128xf32>
    %72 = arith.mulf %70, %71 : vector<8x16x128xf32>
    %73 = arith.addf %66, %72 : vector<8x16x128xf32>
    %74 = vector.extract_strided_slice %18 {offsets = [8, 0], sizes = [1, 128], strides = [1, 1]} : vector<9x128xf32> to vector<1x128xf32>
    %75 = vector.shape_cast %74 : vector<1x128xf32> to vector<128xf32>
    %76 = vector.shape_cast %75 : vector<128xf32> to vector<1x1x128xf32>
    %c2_42 = arith.constant 2 : index
    %c2_43 = arith.constant 2 : index
    %c0_44 = arith.constant 0 : index
    %77 = vector.load %arg8[%c2_42, %c2_43, %c0_44] : memref<10x18x128xf32, #tpu.memory_space<vmem>>, vector<8x16x128xf32>
    %78 = vector.broadcast %76 : vector<1x1x128xf32> to vector<8x16x128xf32>
    %79 = arith.mulf %77, %78 : vector<8x16x128xf32>
    %80 = arith.addf %73, %79 : vector<8x16x128xf32>
    %cst_45 = arith.constant dense<0.000000e+00> : vector<128xf32>
    %81 = vector.multi_reduction <add>, %80, %cst_45 [0, 1] : vector<8x16x128xf32> to vector<128xf32>
    %cst_46 = arith.constant 1.280000e+02 : f32
    %82 = vector.broadcast %cst_46 : f32 to vector<128xf32>
    %83 = arith.divf %81, %82 : vector<128xf32>
    %84 = vector.shape_cast %83 : vector<128xf32> to vector<1x1x128xf32>
    %85 = vector.broadcast %84 : vector<1x1x128xf32> to vector<8x16x128xf32>
    %86 = arith.subf %80, %85 : vector<8x16x128xf32>
    %87 = arith.mulf %86, %86 : vector<8x16x128xf32>
    %cst_47 = arith.constant dense<0.000000e+00> : vector<128xf32>
    %88 = vector.multi_reduction <add>, %87, %cst_47 [0, 1] : vector<8x16x128xf32> to vector<128xf32>
    %89 = vector.shape_cast %81 : vector<128xf32> to vector<1x128xf32>
    %90 = vector.shape_cast %88 : vector<128xf32> to vector<1x128xf32>
    %91 = tpu.concatenate %89, %90 in 0 : vector<1x128xf32>, vector<1x128xf32> -> vector<2x128xf32>
    %92 = vector.shape_cast %91 : vector<2x128xf32> to vector<1x1x2x128xf32>
    %c0_48 = arith.constant 0 : index
    %c0_49 = arith.constant 0 : index
    %c0_50 = arith.constant 0 : index
    %c0_51 = arith.constant 0 : index
    %93 = vector.load %arg7[%c0_48, %c0_49, %c0_50, %c0_51] : memref<1x1x2x128xf32, #tpu.memory_space<vmem>>, vector<1x1x2x128xf32>
    tpu.vector_store %arg7[%c0_48, %c0_49, %c0_50, %c0_51], %92 {strides = array<i32>} : memref<1x1x2x128xf32, #tpu.memory_space<vmem>>, vector<1x1x2x128xf32>,
    return
  }
  func.func @transform_0(%arg0: i32, %arg1: i32) -> (i32, i32, i32, i32) {
    %c8_i32 = arith.constant 8 : i32
    %0 = arith.muli %arg1, %c8_i32 : i32
    %c1_i32 = arith.constant 1 : i32
    %1 = arith.subi %0, %c1_i32 : i32
    %c0_i32 = arith.constant 0 : i32
    %2 = arith.maxsi %1, %c0_i32 : i32
    %c0_i32_0 = arith.constant 0 : i32
    %c0_i32_1 = arith.constant 0 : i32
    %c0_i32_2 = arith.constant 0 : i32
    return %arg0, %2, %c0_i32_0, %c0_i32_1 : i32, i32, i32, i32
  }
  func.func @transform_1(%arg0: i32, %arg1: i32) -> (i32, i32, i32, i32) {
    %c0_i32 = arith.constant 0 : i32
    %c0_i32_0 = arith.constant 0 : i32
    %c0_i32_1 = arith.constant 0 : i32
    return %arg0, %arg1, %c0_i32, %c0_i32_0 : i32, i32, i32, i32
  }
  func.func @transform_2(%arg0: i32, %arg1: i32) -> (i32, i32, i32, i32) {
    %c8_i32 = arith.constant 8 : i32
    %0 = arith.muli %arg1, %c8_i32 : i32
    %c8_i32_0 = arith.constant 8 : i32
    %1 = arith.addi %0, %c8_i32_0 : i32
    %c15_i32 = arith.constant 15 : i32
    %2 = arith.minsi %1, %c15_i32 : i32
    %c0_i32 = arith.constant 0 : i32
    %c0_i32_1 = arith.constant 0 : i32
    %c0_i32_2 = arith.constant 0 : i32
    return %arg0, %2, %c0_i32, %c0_i32_1 : i32, i32, i32, i32
  }
  func.func @transform_3(%arg0: i32, %arg1: i32) -> (i32, i32) {
    %c0_i32 = arith.constant 0 : i32
    %c0_i32_0 = arith.constant 0 : i32
    %c0_i32_1 = arith.constant 0 : i32
    return %c0_i32, %c0_i32_0 : i32, i32
  }
  func.func @transform_4(%arg0: i32, %arg1: i32) -> (i32, i32) {
    %c0_i32 = arith.constant 0 : i32
    %c0_i32_0 = arith.constant 0 : i32
    %c0_i32_1 = arith.constant 0 : i32
    return %c0_i32, %c0_i32_0 : i32, i32
  }
  func.func @transform_5(%arg0: i32, %arg1: i32) -> (i32, i32, i32, i32) {
    %c0_i32 = arith.constant 0 : i32
    %c0_i32_0 = arith.constant 0 : i32
    %c0_i32_1 = arith.constant 0 : i32
    return %arg0, %arg1, %c0_i32, %c0_i32_0 : i32, i32, i32, i32
  }
}

module attributes {stable_mosaic.version = 11 : i64} {
  func.func @apply_kernel(%arg0: i32, %arg1: i32, %arg2: memref<1x1x18x8xf32, #tpu.memory_space<vmem>>, %arg3: memref<1x8x18x8xf32, #tpu.memory_space<vmem>>, %arg4: memref<1x1x18x8xf32, #tpu.memory_space<vmem>>, %arg5: memref<8x128xf32, #tpu.memory_space<vmem>>, %arg6: memref<9x128xf32, #tpu.memory_space<vmem>>, %arg7: memref<1x128xf32, #tpu.memory_space<vmem>>, %arg8: memref<1x128xf32, #tpu.memory_space<vmem>>, %arg9: memref<1x8x16x128xf32, #tpu.memory_space<vmem>>, %arg10: memref<10x18x128xf32, #tpu.memory_space<vmem>>) attributes {dimension_semantics = [#tpu.dimension_semantics<parallel>, #tpu.dimension_semantics<parallel>], iteration_bounds = array<i64: 2, 2>, scalar_prefetch = 0 : i64, scratch_operands = 1 : i64, tpu.core_type = #tpu.core_type<tc>, window_params = [{transform_indices = @transform_0, window_bounds = array<i64: 1, 1, 18, 8>}, {transform_indices = @transform_1, window_bounds = array<i64: 1, 8, 18, 8>}, {transform_indices = @transform_2, window_bounds = array<i64: 1, 1, 18, 8>}, {pipeline_mode = #tpu.pipeline_mode<synchronous>, transform_indices = @transform_3, window_bounds = array<i64: 8, 128>}, {pipeline_mode = #tpu.pipeline_mode<synchronous>, transform_indices = @transform_4, window_bounds = array<i64: 9, 128>}, {pipeline_mode = #tpu.pipeline_mode<synchronous>, transform_indices = @transform_5, window_bounds = array<i64: 1, 128>}, {pipeline_mode = #tpu.pipeline_mode<synchronous>, transform_indices = @transform_6, window_bounds = array<i64: 1, 128>}, {transform_indices = @transform_7, window_bounds = array<i64: 1, 8, 16, 128>}]} {
    %c0_i32 = arith.constant 0 : i32
    %0 = arith.cmpi eq, %arg1, %c0_i32 : i32
    %c0 = arith.constant 0 : index
    %c0_0 = arith.constant 0 : index
    %c0_1 = arith.constant 0 : index
    %c0_2 = arith.constant 0 : index
    %1 = vector.load %arg2[%c0, %c0_0, %c0_1, %c0_2] : memref<1x1x18x8xf32, #tpu.memory_space<vmem>>, vector<1x1x18x8xf32>
    %2 = vector.shape_cast %1 : vector<1x1x18x8xf32> to vector<1x18x8xf32>
    %cst = arith.constant 0.000000e+00 : f32
    %3 = vector.broadcast %cst : f32 to vector<1x18x8xf32>
    %4 = arith.select %0, %3, %2 : vector<1x18x8xf32>
    %c1_i32 = arith.constant 1 : i32
    %5 = arith.cmpi eq, %arg1, %c1_i32 : i32
    %c0_3 = arith.constant 0 : index
    %c0_4 = arith.constant 0 : index
    %c0_5 = arith.constant 0 : index
    %c0_6 = arith.constant 0 : index
    %6 = vector.load %arg4[%c0_3, %c0_4, %c0_5, %c0_6] : memref<1x1x18x8xf32, #tpu.memory_space<vmem>>, vector<1x1x18x8xf32>
    %7 = vector.shape_cast %6 : vector<1x1x18x8xf32> to vector<1x18x8xf32>
    %cst_7 = arith.constant 0.000000e+00 : f32
    %8 = vector.broadcast %cst_7 : f32 to vector<1x18x8xf32>
    %9 = arith.select %5, %8, %7 : vector<1x18x8xf32>
    %c0_8 = arith.constant 0 : index
    %c0_9 = arith.constant 0 : index
    %c0_10 = arith.constant 0 : index
    %c0_11 = arith.constant 0 : index
    %10 = vector.load %arg3[%c0_8, %c0_9, %c0_10, %c0_11] : memref<1x8x18x8xf32, #tpu.memory_space<vmem>>, vector<1x8x18x8xf32>
    %11 = vector.shape_cast %10 : vector<1x8x18x8xf32> to vector<8x18x8xf32>
    %12 = tpu.concatenate %4, %11, %9 in 0 : vector<1x18x8xf32>, vector<8x18x8xf32>, vector<1x18x8xf32> -> vector<10x18x8xf32>
    %13 = vector.shape_cast %12 : vector<10x18x8xf32> to vector<180x8xf32>
    %c0_12 = arith.constant 0 : index
    %c0_13 = arith.constant 0 : index
    %14 = vector.load %arg5[%c0_12, %c0_13] : memref<8x128xf32, #tpu.memory_space<vmem>>, vector<8x128xf32>
    %cst_14 = arith.constant dense<0.000000e+00> : vector<180x128xf32>
    %15 = tpu.matmul %13, %14, %cst_14 {dimension_numbers = #tpu.dot_dimension_numbers<[1], [0], [0], [1], [0, 0, 1, 1], [], []>} : vector<180x8xf32>, vector<8x128xf32>, vector<180x128xf32> -> vector<180x128xf32>
    %16 = vector.shape_cast %15 : vector<180x128xf32> to vector<10x18x128xf32>
    %c0_15 = arith.constant 0 : index
    %c0_16 = arith.constant 0 : index
    %c0_17 = arith.constant 0 : index
    %17 = vector.load %arg10[%c0_15, %c0_16, %c0_17] : memref<10x18x128xf32, #tpu.memory_space<vmem>>, vector<10x18x128xf32>
    tpu.vector_store %arg10[%c0_15, %c0_16, %c0_17], %16 {strides = array<i32>} : memref<10x18x128xf32, #tpu.memory_space<vmem>>, vector<10x18x128xf32>,
    %c0_18 = arith.constant 0 : index
    %c0_19 = arith.constant 0 : index
    %18 = vector.load %arg6[%c0_18, %c0_19] : memref<9x128xf32, #tpu.memory_space<vmem>>, vector<9x128xf32>
    %19 = vector.extract_strided_slice %18 {offsets = [0, 0], sizes = [1, 128], strides = [1, 1]} : vector<9x128xf32> to vector<1x128xf32>
    %20 = vector.shape_cast %19 : vector<1x128xf32> to vector<128xf32>
    %21 = vector.shape_cast %20 : vector<128xf32> to vector<1x1x128xf32>
    %c0_20 = arith.constant 0 : index
    %c0_21 = arith.constant 0 : index
    %c0_22 = arith.constant 0 : index
    %22 = vector.load %arg10[%c0_20, %c0_21, %c0_22] : memref<10x18x128xf32, #tpu.memory_space<vmem>>, vector<8x16x128xf32>
    %23 = vector.broadcast %21 : vector<1x1x128xf32> to vector<8x16x128xf32>
    %24 = arith.mulf %22, %23 : vector<8x16x128xf32>
    %25 = vector.extract_strided_slice %18 {offsets = [1, 0], sizes = [1, 128], strides = [1, 1]} : vector<9x128xf32> to vector<1x128xf32>
    %26 = vector.shape_cast %25 : vector<1x128xf32> to vector<128xf32>
    %27 = vector.shape_cast %26 : vector<128xf32> to vector<1x1x128xf32>
    %c0_23 = arith.constant 0 : index
    %c1 = arith.constant 1 : index
    %c0_24 = arith.constant 0 : index
    %28 = vector.load %arg10[%c0_23, %c1, %c0_24] : memref<10x18x128xf32, #tpu.memory_space<vmem>>, vector<8x16x128xf32>
    %29 = vector.broadcast %27 : vector<1x1x128xf32> to vector<8x16x128xf32>
    %30 = arith.mulf %28, %29 : vector<8x16x128xf32>
    %31 = arith.addf %24, %30 : vector<8x16x128xf32>
    %32 = vector.extract_strided_slice %18 {offsets = [2, 0], sizes = [1, 128], strides = [1, 1]} : vector<9x128xf32> to vector<1x128xf32>
    %33 = vector.shape_cast %32 : vector<1x128xf32> to vector<128xf32>
    %34 = vector.shape_cast %33 : vector<128xf32> to vector<1x1x128xf32>
    %c0_25 = arith.constant 0 : index
    %c2 = arith.constant 2 : index
    %c0_26 = arith.constant 0 : index
    %35 = vector.load %arg10[%c0_25, %c2, %c0_26] : memref<10x18x128xf32, #tpu.memory_space<vmem>>, vector<8x16x128xf32>
    %36 = vector.broadcast %34 : vector<1x1x128xf32> to vector<8x16x128xf32>
    %37 = arith.mulf %35, %36 : vector<8x16x128xf32>
    %38 = arith.addf %31, %37 : vector<8x16x128xf32>
    %39 = vector.extract_strided_slice %18 {offsets = [3, 0], sizes = [1, 128], strides = [1, 1]} : vector<9x128xf32> to vector<1x128xf32>
    %40 = vector.shape_cast %39 : vector<1x128xf32> to vector<128xf32>
    %41 = vector.shape_cast %40 : vector<128xf32> to vector<1x1x128xf32>
    %c1_27 = arith.constant 1 : index
    %c0_28 = arith.constant 0 : index
    %c0_29 = arith.constant 0 : index
    %42 = vector.load %arg10[%c1_27, %c0_28, %c0_29] : memref<10x18x128xf32, #tpu.memory_space<vmem>>, vector<8x16x128xf32>
    %43 = vector.broadcast %41 : vector<1x1x128xf32> to vector<8x16x128xf32>
    %44 = arith.mulf %42, %43 : vector<8x16x128xf32>
    %45 = arith.addf %38, %44 : vector<8x16x128xf32>
    %46 = vector.extract_strided_slice %18 {offsets = [4, 0], sizes = [1, 128], strides = [1, 1]} : vector<9x128xf32> to vector<1x128xf32>
    %47 = vector.shape_cast %46 : vector<1x128xf32> to vector<128xf32>
    %48 = vector.shape_cast %47 : vector<128xf32> to vector<1x1x128xf32>
    %c1_30 = arith.constant 1 : index
    %c1_31 = arith.constant 1 : index
    %c0_32 = arith.constant 0 : index
    %49 = vector.load %arg10[%c1_30, %c1_31, %c0_32] : memref<10x18x128xf32, #tpu.memory_space<vmem>>, vector<8x16x128xf32>
    %50 = vector.broadcast %48 : vector<1x1x128xf32> to vector<8x16x128xf32>
    %51 = arith.mulf %49, %50 : vector<8x16x128xf32>
    %52 = arith.addf %45, %51 : vector<8x16x128xf32>
    %53 = vector.extract_strided_slice %18 {offsets = [5, 0], sizes = [1, 128], strides = [1, 1]} : vector<9x128xf32> to vector<1x128xf32>
    %54 = vector.shape_cast %53 : vector<1x128xf32> to vector<128xf32>
    %55 = vector.shape_cast %54 : vector<128xf32> to vector<1x1x128xf32>
    %c1_33 = arith.constant 1 : index
    %c2_34 = arith.constant 2 : index
    %c0_35 = arith.constant 0 : index
    %56 = vector.load %arg10[%c1_33, %c2_34, %c0_35] : memref<10x18x128xf32, #tpu.memory_space<vmem>>, vector<8x16x128xf32>
    %57 = vector.broadcast %55 : vector<1x1x128xf32> to vector<8x16x128xf32>
    %58 = arith.mulf %56, %57 : vector<8x16x128xf32>
    %59 = arith.addf %52, %58 : vector<8x16x128xf32>
    %60 = vector.extract_strided_slice %18 {offsets = [6, 0], sizes = [1, 128], strides = [1, 1]} : vector<9x128xf32> to vector<1x128xf32>
    %61 = vector.shape_cast %60 : vector<1x128xf32> to vector<128xf32>
    %62 = vector.shape_cast %61 : vector<128xf32> to vector<1x1x128xf32>
    %c2_36 = arith.constant 2 : index
    %c0_37 = arith.constant 0 : index
    %c0_38 = arith.constant 0 : index
    %63 = vector.load %arg10[%c2_36, %c0_37, %c0_38] : memref<10x18x128xf32, #tpu.memory_space<vmem>>, vector<8x16x128xf32>
    %64 = vector.broadcast %62 : vector<1x1x128xf32> to vector<8x16x128xf32>
    %65 = arith.mulf %63, %64 : vector<8x16x128xf32>
    %66 = arith.addf %59, %65 : vector<8x16x128xf32>
    %67 = vector.extract_strided_slice %18 {offsets = [7, 0], sizes = [1, 128], strides = [1, 1]} : vector<9x128xf32> to vector<1x128xf32>
    %68 = vector.shape_cast %67 : vector<1x128xf32> to vector<128xf32>
    %69 = vector.shape_cast %68 : vector<128xf32> to vector<1x1x128xf32>
    %c2_39 = arith.constant 2 : index
    %c1_40 = arith.constant 1 : index
    %c0_41 = arith.constant 0 : index
    %70 = vector.load %arg10[%c2_39, %c1_40, %c0_41] : memref<10x18x128xf32, #tpu.memory_space<vmem>>, vector<8x16x128xf32>
    %71 = vector.broadcast %69 : vector<1x1x128xf32> to vector<8x16x128xf32>
    %72 = arith.mulf %70, %71 : vector<8x16x128xf32>
    %73 = arith.addf %66, %72 : vector<8x16x128xf32>
    %74 = vector.extract_strided_slice %18 {offsets = [8, 0], sizes = [1, 128], strides = [1, 1]} : vector<9x128xf32> to vector<1x128xf32>
    %75 = vector.shape_cast %74 : vector<1x128xf32> to vector<128xf32>
    %76 = vector.shape_cast %75 : vector<128xf32> to vector<1x1x128xf32>
    %c2_42 = arith.constant 2 : index
    %c2_43 = arith.constant 2 : index
    %c0_44 = arith.constant 0 : index
    %77 = vector.load %arg10[%c2_42, %c2_43, %c0_44] : memref<10x18x128xf32, #tpu.memory_space<vmem>>, vector<8x16x128xf32>
    %78 = vector.broadcast %76 : vector<1x1x128xf32> to vector<8x16x128xf32>
    %79 = arith.mulf %77, %78 : vector<8x16x128xf32>
    %80 = arith.addf %73, %79 : vector<8x16x128xf32>
    %c0_45 = arith.constant 0 : index
    %c0_46 = arith.constant 0 : index
    %81 = vector.load %arg7[%c0_45, %c0_46] : memref<1x128xf32, #tpu.memory_space<vmem>>, vector<1x128xf32>
    %82 = vector.shape_cast %81 : vector<1x128xf32> to vector<1x1x128xf32>
    %c0_47 = arith.constant 0 : index
    %c0_48 = arith.constant 0 : index
    %83 = vector.load %arg8[%c0_47, %c0_48] : memref<1x128xf32, #tpu.memory_space<vmem>>, vector<1x128xf32>
    %84 = vector.shape_cast %83 : vector<1x128xf32> to vector<1x1x128xf32>
    %85 = vector.broadcast %82 : vector<1x1x128xf32> to vector<8x16x128xf32>
    %86 = arith.mulf %80, %85 : vector<8x16x128xf32>
    %87 = vector.broadcast %84 : vector<1x1x128xf32> to vector<8x16x128xf32>
    %88 = arith.addf %86, %87 : vector<8x16x128xf32>
    %cst_49 = arith.constant 0.000000e+00 : f32
    %89 = vector.broadcast %cst_49 : f32 to vector<8x16x128xf32>
    %90 = arith.maximumf %88, %89 : vector<8x16x128xf32>
    %91 = vector.shape_cast %90 : vector<8x16x128xf32> to vector<1x8x16x128xf32>
    %c0_50 = arith.constant 0 : index
    %c0_51 = arith.constant 0 : index
    %c0_52 = arith.constant 0 : index
    %c0_53 = arith.constant 0 : index
    %92 = vector.load %arg9[%c0_50, %c0_51, %c0_52, %c0_53] : memref<1x8x16x128xf32, #tpu.memory_space<vmem>>, vector<1x8x16x128xf32>
    tpu.vector_store %arg9[%c0_50, %c0_51, %c0_52, %c0_53], %91 {strides = array<i32>} : memref<1x8x16x128xf32, #tpu.memory_space<vmem>>, vector<1x8x16x128xf32>,
    return
  }
  func.func @transform_0(%arg0: i32, %arg1: i32) -> (i32, i32, i32, i32) {
    %c8_i32 = arith.constant 8 : i32
    %0 = arith.muli %arg1, %c8_i32 : i32
    %c1_i32 = arith.constant 1 : i32
    %1 = arith.subi %0, %c1_i32 : i32
    %c0_i32 = arith.constant 0 : i32
    %2 = arith.maxsi %1, %c0_i32 : i32
    %c0_i32_0 = arith.constant 0 : i32
    %c0_i32_1 = arith.constant 0 : i32
    %c0_i32_2 = arith.constant 0 : i32
    return %arg0, %2, %c0_i32_0, %c0_i32_1 : i32, i32, i32, i32
  }
  func.func @transform_1(%arg0: i32, %arg1: i32) -> (i32, i32, i32, i32) {
    %c0_i32 = arith.constant 0 : i32
    %c0_i32_0 = arith.constant 0 : i32
    %c0_i32_1 = arith.constant 0 : i32
    return %arg0, %arg1, %c0_i32, %c0_i32_0 : i32, i32, i32, i32
  }
  func.func @transform_2(%arg0: i32, %arg1: i32) -> (i32, i32, i32, i32) {
    %c8_i32 = arith.constant 8 : i32
    %0 = arith.muli %arg1, %c8_i32 : i32
    %c8_i32_0 = arith.constant 8 : i32
    %1 = arith.addi %0, %c8_i32_0 : i32
    %c15_i32 = arith.constant 15 : i32
    %2 = arith.minsi %1, %c15_i32 : i32
    %c0_i32 = arith.constant 0 : i32
    %c0_i32_1 = arith.constant 0 : i32
    %c0_i32_2 = arith.constant 0 : i32
    return %arg0, %2, %c0_i32, %c0_i32_1 : i32, i32, i32, i32
  }
  func.func @transform_3(%arg0: i32, %arg1: i32) -> (i32, i32) {
    %c0_i32 = arith.constant 0 : i32
    %c0_i32_0 = arith.constant 0 : i32
    %c0_i32_1 = arith.constant 0 : i32
    return %c0_i32, %c0_i32_0 : i32, i32
  }
  func.func @transform_4(%arg0: i32, %arg1: i32) -> (i32, i32) {
    %c0_i32 = arith.constant 0 : i32
    %c0_i32_0 = arith.constant 0 : i32
    %c0_i32_1 = arith.constant 0 : i32
    return %c0_i32, %c0_i32_0 : i32, i32
  }
  func.func @transform_5(%arg0: i32, %arg1: i32) -> (i32, i32) {
    %c0_i32 = arith.constant 0 : i32
    %c0_i32_0 = arith.constant 0 : i32
    %c0_i32_1 = arith.constant 0 : i32
    return %c0_i32, %c0_i32_0 : i32, i32
  }
  func.func @transform_6(%arg0: i32, %arg1: i32) -> (i32, i32) {
    %c0_i32 = arith.constant 0 : i32
    %c0_i32_0 = arith.constant 0 : i32
    %c0_i32_1 = arith.constant 0 : i32
    return %c0_i32, %c0_i32_0 : i32, i32
  }
  func.func @transform_7(%arg0: i32, %arg1: i32) -> (i32, i32, i32, i32) {
    %c0_i32 = arith.constant 0 : i32
    %c0_i32_0 = arith.constant 0 : i32
    %c0_i32_1 = arith.constant 0 : i32
    return %arg0, %arg1, %c0_i32, %c0_i32_0 : i32, i32, i32, i32
  }
}

</mosaic_0001>

<bundles_post_ra>
// kernel: squeeze.5
= control target key start
LH: loop header
LB: loop body
LE: loop exit
PB: predicated region body
PF: predicated region fallthrough
CT: control target
= control target key end

     0   :  { %vm16_vm0 = vcmask 64512   ;;  %s61_s0 = inlined_call_operand.vmem [shape: f32[8,3,3], index: 0, kind: input, shape index: {}]   ;;  %s62_s1 = inlined_call_operand.vmem [shape: f32[8,9], index: 1, kind: output, shape index: {}]  }
   0x1   :  { %v29_v0 = vld [vmem:[%s61_s0 + $0x8] sm:$0xf]  ;;  %v30_v1 = vld [vmem:[%s61_s0 + $0x4] sm:$0xf]  ;;  %v13_v2 = vld [vmem:[%s61_s0] sm:$0xf] }
   0x2   :  { %8 = vst [vmem:[#allocation0 + $0x10] sm:$0xf] %v29_v0  ;;  %12 = vst [vmem:[#allocation0 + $0x8] sm:$0xf] %v30_v1 }
   0x3   :  { %14 = vst [vmem:[#allocation0] sm:$0xf] %v13_v2 }
   0x9   :  { %v19_v4 = vld [vmem:[#allocation0 + $0x8] sm:$0x7]   ;;  %v24_v5 = vld [vmem:[#allocation0 + $0x10] sm:$0x7]  }
   0xa   :  { %v15_v3 = vld [vmem:[#allocation0] sm:$0x7]   ;;  %31 = vst.msk [vmem:[%s62_s1 + $0x3] sm:$0x7] %vm16_vm0, %v19_v4   ;;  %32 = vst.msk [vmem:[%s62_s1 + $0x6] sm:$0x7] %vm16_vm0, %v24_v5  }
   0xb   :  { %17 = vst.msk [vmem:[%s62_s1] sm:$0x7] %vm16_vm0, %v15_v3  }

// kernel: dwunit_forward.3
= control target key start
LH: loop header
LB: loop body
LE: loop exit
PB: predicated region body
PF: predicated region fallthrough
CT: control target
= control target key end

     0   :  { %s3444_s24 = smov 0   ;;  %s3446_s25 = smov 0   ;;  %s4434_s0 = inlined_call_operand.vmem [shape: f32[2,16,18,8], index: 0, kind: input, shape index: {}, may-alias: {0,1,2}]   ;;  %s4435_s1 = inlined_call_operand.vmem [shape: f32[2,16,18,8], index: 1, kind: input, shape index: {}, may-alias: {0,1,2}]   ;;  %s4436_s2 = inlined_call_operand.vmem [shape: f32[2,16,18,8], index: 2, kind: input, shape index: {}, may-alias: {0,1,2}]   ;;  %s4437_s3 = inlined_call_operand.vmem [shape: f32[8,128], index: 3, kind: input, shape index: {}]   ;;  %s4438_s4 = inlined_call_operand.vmem [shape: f32[9,128], index: 4, kind: input, shape index: {}]   ;;  %s4439_s5 = inlined_call_operand.vmem [shape: f32[1,128], index: 5, kind: input, shape index: {}]   ;;  %s4440_s6 = inlined_call_operand.vmem [shape: f32[1,128], index: 6, kind: input, shape index: {}]   ;;  %s4441_s7 = inlined_call_operand.vmem [shape: f32[2,16,16,128], index: 7, kind: output, shape index: {}]  }
   0x1   :  { %4450 = sst [smem:[#allocation14_spill]] %s4437_s3  ;;  %s3448_s26 = smov 0  }
   0x2   :  { %s3450_s27 = smov 0   ;;  %s3452_s28 = smov 0  }
   0x3 LB: > { %s26_s29 = sadd.s32 1, %s3391_s26  ;;  %s29_s30 = sadd.s32 1, %s3395_s27  ;;  %s3399_s28 = sphi %s3452_s28, %s17_s28   ;;  %s3395_s27 = sphi %s3450_s27, %s4484_s27   ;;  %s3391_s26 = sphi %s3448_s26, %s4483_s26   ;;  %s3387_s25 = sphi %s3446_s25, %s4482_s25   ;;  %s3383_s24 = sphi %s3444_s24, %s4481_s24  }
   0x4   : > { %p27_p0 = scmp.ge.s32.totalorder %s26_s29, 2  ;;  %p3101_p1 = scmp.ge.s32.totalorder %s3399_s28, 1 }
   0x5   : > { %p323_p2 = scmp.lt.s32.totalorder %s3399_s28, 5 }
   0x6   : > { %s4486_s29 = smov (%p27_p0, %s26_s29), 0  ;;  %s4488_s30 = smov (!%p27_p0, %s29_s30), %s3395_s27 }
   0x7   : > { %p324_p3 = pnand %p3101_p1, %p323_p2  ;;  %p31_p4 = scmp.ge.s32.totalorder %s4488_s30, 2 }
   0x9   : > { %s4490_s30 = smov (%p31_p4, %s4488_s30), 0  ;;  %327 = sbr.rel (%p324_p3) target bundleno = 405 (0x195), region = 48 }
  0x10   : > { %s4451_s3 = sld [smem:[#allocation14_spill]]  ;;  %s3480_s10 = sshll.u32 %s3383_s24, 3  ;;  %v3401_v1 = vmov 0.0   ;;  %vm3402_vm0 = vmmov 0   ;;  %v3403_v2 = vmov 1983009808   ;;  %v525_v4 = vlaneseq }
  0x11   : > { %p395_p5 = scmp.lt.s32.totalorder %s3387_s25, 1  ;;  %3193 = vmatprep.subr.mxu0 %v3401_v1  ;;  %3195 = vmatprep.mubr.msk.f32.mxu0 %vm3402_vm0, %v3401_v1  ;;  %s3103_s11 = sadd.s32 4294967295, %s3480_s10  ;;  %v523_v3 = vunpack.c.l.s4 %v3403_v2  ;;  %vm1314_vm1 = vcmask 64512  }
  0x12   : > { %p411_p6 = scmp.lt.s32.totalorder %s3480_s10, 15  ;;  %3264 = vmatprep.subr.mxu1 %v3401_v1  ;;  %p393_p7 = scmp.gt.s32.totalorder %s3103_s11, 0  ;;  %3231 = vmatprep.mubr.msk.f32.mxu1 %vm3402_vm0, %v3401_v1  ;;  %v3495_v6 = vshrl.u32 %v525_v4, 7 }
  0x13   : > { %p3104_p8 = scmp.lt.s32.totalorder %s3103_s11, 15  ;;  %s4492_s25 = smov (!%p395_p5, %s3387_s25), 1  ;;  %v524_v5 = vunpack.c.0.s8 %v523_v3 }
  0x14   : > { %s4494_s11 = smov (!%p393_p7, %s3103_s11), 0  ;;  %s3490_s12 = smul.u32 48, %s4492_s25 }
  0x15   : > { %s3119_s13 = sshll.u32 %s4492_s25, 5  ;;  %s4496_s11 = smov (!%p3104_p8, %s4494_s11), 15  ;;  %v3503_v7 = vsub.s32 %v524_v5, %v3495_v6 }
  0x16   : > { %v931_v0 = vld [vmem:[%s4451_s3] sm:$0xff]  ;;  %s412_s14 = scalar_select %p411_p6, %s3480_s10, 15 }
  0x17   : > { %3194 = vmatpush3.msra.mxu0 %v931_v0  ;;  %3265 = vmatpush3.msra.mxu1 %v931_v0  ;;  %s3266_s15 = smul.u32 3, %s4496_s11  ;;  %p447_p9 = scmp.eq.s32.totalorder %s3383_s24, 0 }
  0x18   : > { %s3268_s16 = smul.u32 3, %s412_s14  ;;  %s3118_s17 = sshll.u32 %s412_s14, 1 }
  0x19   : > { %s401_s18 = sadd.s32 %s3490_s12, %s3266_s15  ;;  %s3499_s19 = sadd.s32 %s3119_s13, %s3118_s17 }
  0x1a   : > { %s3109_s20 = sshll.u32 %s401_s18, 3  ;;  %s415_s21 = sadd.s32 %s3268_s16, %s3490_s12 }
  0x1b   : > { %s3111_s22 = sshll.u32 %s415_s21, 3  ;;  %s3513_s11 = scalar_lea.vmem %s4434_s0, %s3109_s20 }
  0x1c   : > { %s3508_s8 = scalar_lea.vmem %s4435_s1, %s3111_s22  ;;  %v450_v17 = vld [vmem:[%s3513_s11 + $0x10] sm:$0x3]  ;;  %s420_s14 = sadd.s32 8, %s3480_s10 }
  0x1d   : > { %v479_v8 = vld [vmem:[%s3508_s8 + $0x60] sm:$0xff]  ;;  %v480_v9 = vld [vmem:[%s3508_s8 + $0x68] sm:$0xff]  ;;  %s451_s13 = scalar_select %p447_p9, 1, 0  ;;  %v482_v13 = vld [vmem:[%s3508_s8 + $0x78] sm:$0xff] }
  0x1e   : > { %v726_v10 = vcombine.high %v479_v8, %v479_v8  ;;  %v743_v11 = vcombine.high %v480_v9, %v480_v9  ;;  %v750_v12 = vrot.slane %v480_v9, %v3503_v7  ;;  %v467_v14 = vld [vmem:[%s3508_s8] sm:$0xff]  ;;  %v3523_v15 = vrot.slane %v479_v8, %v3503_v7  ;;  %v3125_v25 = vld.sshfl [vmem:[%s3508_s8 + $0x70] sm:$0x3 pattern:$0x76325410]  ;;  %v468_v60 = vld [vmem:[%s3508_s8 + $0x8] sm:$0xff] }
  0x1f   : > { %v774_v16 = vrot.slane %v482_v13, %v3503_v7  ;;  %v562_v18 = vcombine.high %v467_v14, %v467_v14  ;;  %v569_v19 = vrot.slane %v467_v14, %v3503_v7  ;;  %v767_v20 = vcombine.high %v482_v13, %v482_v13  ;;  %v3537_v29 = vld [vmem:[%s3508_s8 + $0x80] sm:$0xff]  ;;  %s3314_s3 = scalar_select %p447_p9, 0, 255 }
  0x20   : > { %v452_v21 = vstv %s451_s13  ;;  %v3529_v22 = vrot.slane %v726_v10, %v3503_v7  ;;  %v757_v23 = vrot.slane %v743_v11, %v3503_v7  ;;  %v758_v24 = vcombine.high %v750_v12, %v750_v12  ;;  %p3572_p10 = scmp.lt.s32.totalorder %s420_s14, 15  ;;  %p457_p11 = scmp.eq.s32.totalorder %s3383_s24, 1 }
  0x21   : > { %vm453_vm2 = vcmp.eq.s32.totalorder %v452_v21, 1  ;;  %v782_v26 = vcombine.high %v774_v16, %v774_v16  ;;  %v3534_v27 = vrot.slane %v562_v18, %v3503_v7  ;;  %v577_v28 = vcombine.high %v569_v19, %v569_v19  ;;  %v3315_v38 = vld [vmem:[%s3513_s11] sm:%s3314_s3]  ;;  %v3325_v45 = vld [vmem:[%s3513_s11 + $0x8] sm:%s3314_s3] }
  0x22   : > { %v742_v30 = vcombine.high %v3529_v22, %v3529_v22  ;;  %v1137_v31 = vcombine.low %v758_v24, %v757_v23  ;;  %v759_v32 = vcombine.high %v757_v23, %v757_v23  ;;  %v456_v33 = vsel %vm453_vm2, 0.0, %v450_v17  ;;  %v485_v17 = vld [vmem:[%s3508_s8 + $0x90] sm:$0xff]  ;;  %v3126_v21 = vld.sshfl [vmem:[%s3508_s8 + $0x88] sm:$0x3 pattern:$0x76325410] }
  0x23   : > { %v1154_v34 = vcombine.low %v774_v16, %v782_v26  ;;  %v561_v35 = vrot.slane %v456_v33, %v3503_v7  ;;  %v967_v36 = vcombine.low %v577_v28, %v3534_v27  ;;  %v781_v37 = vrot.slane %v767_v20, %v3503_v7  ;;  %v3121_v28 = vld.sshfl [vmem:[%s3508_s8 + $0x10] sm:$0x3 pattern:$0x76325410]  ;;  %s4498_s14 = smov (!%p3572_p10, %s420_s14), 15 }
  0x24   : > { %v1136_v39 = vcombine.low %v742_v30, %v750_v12  ;;  %v1151_v40 = vrot.slane %v1137_v31, %v3503_v7  ;;  %v1153_v41 = vcombine.low %v759_v32, %v3125_v25  ;;  %v791_v42 = vrot.slane %v3537_v29, %v3503_v7  ;;  %v470_v30 = vld [vmem:[%s3508_s8 + $0x18] sm:$0xff]  ;;  %s4500_s14 = smov (!%p3572_p10, %s4498_s14), 15 }
  0x25   : > { %v521_v43 = vcombine.high %v3315_v38, %v3315_v38  ;;  %v528_v44 = vrot.slane %v3315_v38, %v3503_v7  ;;  %v1168_v46 = vrot.slane %v1154_v34, %v3503_v7  ;;  %v966_v47 = vcombine.low %v561_v35, %v569_v19  ;;  %s3628_s10 = smul.u32 3, %s4500_s14  ;;  %s3120_s14 = sshll.u32 %s3499_s19, 3 }
  0x26   : > { %v1144_v48 = vrot.slane %v1136_v39, %v3503_v7  ;;  %v538_v49 = vcombine.high %v3325_v45, %v3325_v45  ;;  %v545_v50 = vrot.slane %v3325_v45, %v3503_v7  ;;  %v1161_v51 = vrot.slane %v1153_v41, %v3503_v7  ;;  %s3634_s16 = scalar_select %p457_p11, 1, 0 }
  0x27   : > { %v535_v52 = vrot.slane %v521_v43, %v3503_v7  ;;  %v536_v53 = vcombine.high %v528_v44, %v528_v44  ;;  %v974_v54 = vrot.slane %v966_v47, %v3503_v7  ;;  %v981_v55 = vrot.slane %v967_v36, %v3503_v7  ;;  %s429_s17 = sadd.s32 %s3628_s10, %s3490_s12  ;;  %s4150_s10 = scalar_lea.vmem %s4441_s7, %s3120_s14 }
  0x28   : > { %v1152_v56 = vcombine.low %v1144_v48, %v1151_v40  ;;  %v552_v57 = vrot.slane %v538_v49, %v3503_v7  ;;  %v553_v58 = vcombine.high %v545_v50, %v545_v50  ;;  %v1169_v59 = vcombine.low %v1161_v51, %v1168_v46  ;;  %v471_v46 = vld [vmem:[%s3508_s8 + $0x20] sm:$0xff]  ;;  %s3116_s12 = sshll.u32 %s429_s17, 3 }
  0x29   : > { %v537_v61 = vcombine.high %v535_v52, %v535_v52  ;;  %v932_v62 = vcombine.low %v528_v44, %v536_v53  ;;  %v3562_v63 = vcombine.low %v974_v54, %v981_v55  ;;  %v783_v0 = vcombine.high %v781_v37, %v781_v37  ;;  %s3669_s18 = scalar_select %p457_p11, 0, 255 }
  0x2a   : > { %3232 = vmatmul.mubr.msk.f32.vlgmr.msra.gmra.mrb[0].mxu1 %vm1314_vm1, %v1152_v56  ;;  %v554_v2 = vcombine.high %v552_v57, %v552_v57  ;;  %v949_v3 = vcombine.low %v545_v50, %v553_v58  ;;  %v799_v4 = vcombine.high %v791_v42, %v791_v42  ;;  %v578_v5 = vcombine.high %v3534_v27, %v3534_v27  ;;  %s3677_s22 = scalar_lea.vmem %s4436_s2, %s3116_s12 }
  0x2b   : > { %v933_v8 = vcombine.low %v535_v52, %v537_v61  ;;  %v940_v9 = vrot.slane %v932_v62, %v3503_v7  ;;  %3234 = vmatprep.mubr.msk.f32.mxu1 %vm3402_vm0, %v3401_v1  ;;  %v1170_v10 = vcombine.low %v781_v37, %v783_v0  ;;  %v579_v11 = vcombine.high %v468_v60, %v468_v60 }
  0x2c   : > { %v950_v12 = vcombine.low %v552_v57, %v554_v2  ;;  %v957_v13 = vrot.slane %v949_v3, %v3503_v7  ;;  %v1171_v14 = vcombine.low %v791_v42, %v799_v4  ;;  %v586_v16 = vrot.slane %v468_v60, %v3503_v7  ;;  %v486_v42 = vld [vmem:[%s3508_s8 + $0x98] sm:$0xff] }
  0x2d   : > { %v947_v18 = vrot.slane %v933_v8, %v3503_v7  ;;  %v1178_v19 = vrot.slane %v1170_v10, %v3503_v7  ;;  %v593_v20 = vrot.slane %v579_v11, %v3503_v7  ;;  %v784_v23 = vcombine.high %v3537_v29, %v3537_v29  ;;  %v3127_v11 = vld.sshfl [vmem:[%s3508_s8 + $0xa0] sm:$0x3 pattern:$0x76325410] }
  0x2e   : > { %v964_v24 = vrot.slane %v950_v12, %v3503_v7  ;;  %3235 = vmatmul.mubr.msk.f32.gmra.mrb[2].mxu1 %vm1314_vm1, %v1169_v59  ;;  %v1185_v25 = vrot.slane %v1171_v14, %v3503_v7  ;;  %v594_v26 = vcombine.high %v586_v16, %v586_v16  ;;  %v983_v27 = vcombine.low %v578_v5, %v586_v16  ;;  %v473_v5 = vld [vmem:[%s3508_s8 + $0x30] sm:$0xff] }
  0x2f   : > { %v948_v31 = vcombine.low %v940_v9, %v947_v18  ;;  %3237 = vmatprep.mubr.msk.f32.mxu1 %vm3402_vm0, %v3401_v1  ;;  %v798_v32 = vrot.slane %v784_v23, %v3503_v7  ;;  %v815_v33 = vrot.slane %v485_v17, %v3503_v7  ;;  %v595_v29 = vcombine.high %v593_v20, %v593_v20 }
  0x30   : > { %v965_v34 = vcombine.low %v957_v13, %v964_v24  ;;  %v1186_v35 = vcombine.low %v1178_v19, %v1185_v25  ;;  %v984_v36 = vcombine.low %v594_v26, %v593_v20  ;;  %v991_v37 = vrot.slane %v983_v27, %v3503_v7 }
  0x31   : > { %3196 = vmatmul.mubr.msk.f32.vlgmr.msra.gmra.mrb[0].mxu0 %vm1314_vm1, %v948_v31  ;;  %v800_v38 = vcombine.high %v798_v32, %v798_v32  ;;  %v1188_v39 = vcombine.low %v3126_v21, %v815_v33  ;;  %v610_v40 = vrot.slane %v470_v30, %v3503_v7  ;;  %v1000_v41 = vcombine.low %v595_v29, %v3121_v28 }
  0x32   : > { %3198 = vmatprep.mubr.msk.f32.mxu0 %vm3402_vm0, %v3401_v1  ;;  %3238 = vmatmul.mubr.msk.f32.gmra.mrb[4].mxu1 %vm1314_vm1, %v1186_v35  ;;  %v998_v43 = vrot.slane %v984_v36, %v3503_v7  ;;  %v808_v44 = vcombine.high %v485_v17, %v485_v17  ;;  %v823_v45 = vcombine.high %v815_v33, %v815_v33  ;;  %v488_v17 = vld [vmem:[%s3508_s8 + $0xa8] sm:$0xff] }
  0x33   : > { %3240 = vmatprep.mubr.msk.f32.mxu1 %vm3402_vm0, %v3401_v1  ;;  %v1187_v47 = vcombine.low %v798_v32, %v800_v38  ;;  %v1202_v48 = vrot.slane %v1188_v39, %v3503_v7  ;;  %v618_v49 = vcombine.high %v610_v40, %v610_v40  ;;  %v1008_v50 = vrot.slane %v1000_v41, %v3503_v7  ;;  %v489_v38 = vld [vmem:[%s3508_s8 + $0xb0] sm:$0xff] }
  0x34   : > { %v999_v51 = vcombine.low %v991_v37, %v998_v43  ;;  %v822_v52 = vrot.slane %v808_v44, %v3503_v7  ;;  %v832_v53 = vrot.slane %v486_v42, %v3503_v7  ;;  %v603_v54 = vcombine.high %v470_v30, %v470_v30 }
  0x35   : > { %3199 = vmatmul.mubr.msk.f32.gmra.mrb[2].mxu0 %vm1314_vm1, %v965_v34  ;;  %v1195_v55 = vrot.slane %v1187_v47, %v3503_v7  ;;  %v1001_v56 = vcombine.low %v610_v40, %v618_v49  ;;  %v627_v57 = vrot.slane %v471_v46, %v3503_v7  ;;  %v825_v58 = vcombine.high %v486_v42, %v486_v42  ;;  %v474_v34 = vld [vmem:[%s3508_s8 + $0x38] sm:$0xff] }
  0x36   : > { %3201 = vmatprep.mubr.msk.f32.mxu0 %vm3402_vm0, %v3401_v1  ;;  %v824_v59 = vcombine.high %v822_v52, %v822_v52  ;;  %v1204_v60 = vcombine.low %v823_v45, %v822_v52  ;;  %v617_v61 = vrot.slane %v603_v54, %v3503_v7  ;;  %v840_v62 = vcombine.high %v832_v53, %v832_v53  ;;  %v476_v54 = vld [vmem:[%s3508_s8 + $0x48] sm:$0xff] }
  0x37   : > { %v1203_v0 = vcombine.low %v1195_v55, %v1202_v48  ;;  %v1015_v2 = vrot.slane %v1001_v56, %v3503_v7  ;;  %v635_v3 = vcombine.high %v627_v57, %v627_v57  ;;  %v839_v4 = vrot.slane %v825_v58, %v3503_v7 }
  0x38   : > { %v1205_v8 = vcombine.low %v824_v59, %v832_v53  ;;  %v1212_v9 = vrot.slane %v1204_v60, %v3503_v7  ;;  %v619_v10 = vcombine.high %v617_v61, %v617_v61  ;;  %v620_v12 = vcombine.high %v471_v46, %v471_v46 }
  0x39   : > { %3202 = vmatmul.mubr.msk.f32.gmra.mrb[4].mxu0 %vm1314_vm1, %v3562_v63  ;;  %3241 = vmatmul.mubr.msk.f32.gmra.mrb[6].mxu1 %vm1314_vm1, %v1203_v0  ;;  %v1016_v13 = vcombine.low %v1008_v50, %v1015_v2  ;;  %v1018_v14 = vcombine.low %v627_v57, %v635_v3  ;;  %v841_v16 = vcombine.high %v839_v4, %v839_v4  ;;  %v3122_v63 = vld.sshfl [vmem:[%s3508_s8 + $0x28] sm:$0x3 pattern:$0x76325410]  ;;  %v462_v55 = vstv %s3634_s16  ;;  %v3346_v2 = vld [vmem:[%s3677_s22] sm:%s3669_s18] }
  0x3a   : > { %3204 = vmatprep.mubr.msk.f32.mxu0 %vm3402_vm0, %v3401_v1  ;;  %3243 = vmatprep.mubr.msk.f32.mxu1 %vm3402_vm0, %v3401_v1  ;;  %v1219_v18 = vrot.slane %v1205_v8, %v3503_v7  ;;  %v1017_v19 = vcombine.low %v617_v61, %v619_v10  ;;  %v1221_v20 = vcombine.low %v840_v62, %v839_v4  ;;  %vm3707_vm3 = vcmp.eq.s32.totalorder %v462_v55, 1 }
  0x3b   : > { %v1032_v21 = vrot.slane %v1018_v14, %v3503_v7  ;;  %v1222_v23 = vcombine.low %v841_v16, %v3127_v11  ;;  %v634_v24 = vrot.slane %v620_v12, %v3503_v7  ;;  %v651_v25 = vrot.slane %v473_v5, %v3503_v7  ;;  %v3123_v16 = vld.sshfl [vmem:[%s3508_s8 + $0x40] sm:$0x3 pattern:$0x76325410] }
  0x3c   : > { %v1220_v26 = vcombine.low %v1212_v9, %v1219_v18  ;;  %v1025_v27 = vrot.slane %v1017_v19, %v3503_v7  ;;  %v1229_v28 = vrot.slane %v1221_v20, %v3503_v7  ;;  %v849_v30 = vcombine.high %v488_v17, %v488_v17 }
  0x3d   : > { %3205 = vmatmul.mubr.msk.f32.gmra.mrb[6].mxu0 %vm1314_vm1, %v999_v51  ;;  %v1236_v31 = vrot.slane %v1222_v23, %v3503_v7  ;;  %v636_v32 = vcombine.high %v634_v24, %v634_v24  ;;  %v1035_v33 = vcombine.low %v3122_v63, %v651_v25  ;;  %v856_v29 = vrot.slane %v488_v17, %v3503_v7  ;;  %v3128_v23 = vld.sshfl [vmem:[%s3508_s8 + $0xb8] sm:$0x3 pattern:$0x76325410] }
  0x3e   : > { %3207 = vmatprep.mubr.msk.f32.mxu0 %vm3402_vm0, %v3401_v1  ;;  %3244 = vmatmul.mubr.msk.f32.gmra.mrb[8].mxu1 %vm1314_vm1, %v1220_v26  ;;  %v1033_v35 = vcombine.low %v1025_v27, %v1032_v21  ;;  %v863_v36 = vrot.slane %v849_v30, %v3503_v7  ;;  %v644_v37 = vcombine.high %v473_v5, %v473_v5 }
  0x3f   : > { %3246 = vmatprep.mubr.msk.f32.mxu1 %vm3402_vm0, %v3401_v1  ;;  %v1237_v39 = vcombine.low %v1229_v28, %v1236_v31  ;;  %v1034_v40 = vcombine.low %v634_v24, %v636_v32  ;;  %v1049_v41 = vrot.slane %v1035_v33, %v3503_v7  ;;  %v864_v42 = vcombine.high %v856_v29, %v856_v29  ;;  %v477_v28 = vld [vmem:[%s3508_s8 + $0x50] sm:$0xff] }
  0x40   : > { %v865_v43 = vcombine.high %v863_v36, %v863_v36  ;;  %v658_v44 = vrot.slane %v644_v37, %v3503_v7  ;;  %v659_v45 = vcombine.high %v651_v25, %v651_v25  ;;  %v668_v46 = vrot.slane %v474_v34, %v3503_v7  ;;  %v460_v37 = vld [vmem:[%s3677_s22 + $0x10] sm:$0x3] }
  0x41   : > { %3208 = vmatmul.mubr.msk.f32.gmra.mrb[8].mxu0 %vm1314_vm1, %v1016_v13  ;;  %v1042_v47 = vrot.slane %v1034_v40, %v3503_v7  ;;  %v1238_v48 = vcombine.low %v856_v29, %v864_v42  ;;  %v866_v49 = vcombine.high %v489_v38, %v489_v38  ;;  %v873_v50 = vrot.slane %v489_v38, %v3503_v7  ;;  %v3355_v42 = vld [vmem:[%s3677_s22 + $0x8] sm:%s3669_s18] }
  0x42   : > { %3210 = vmatprep.mubr.msk.f32.mxu0 %vm3402_vm0, %v3401_v1  ;;  %3247 = vmatmul.mubr.msk.f32.gmra.mrb[10].mxu1 %vm1314_vm1, %v1237_v39  ;;  %v1239_v51 = vcombine.low %v863_v36, %v865_v43  ;;  %v660_v52 = vcombine.high %v658_v44, %v658_v44  ;;  %v1051_v53 = vcombine.low %v659_v45, %v658_v44 }
  0x43   : > { %v1050_v56 = vcombine.low %v1042_v47, %v1049_v41  ;;  %3249 = vmatprep.mubr.msk.f32.mxu1 %vm3402_vm0, %v3401_v1  ;;  %v1246_v57 = vrot.slane %v1238_v48, %v3503_v7  ;;  %v880_v58 = vrot.slane %v866_v49, %v3503_v7  ;;  %v881_v59 = vcombine.high %v873_v50, %v873_v50  ;;  %v3124_v49 = vld.sshfl [vmem:[%s3508_s8 + $0x58] sm:$0x3 pattern:$0x76325410] }
  0x44   : > { %v1253_v60 = vrot.slane %v1239_v51, %v3503_v7  ;;  %v1052_v61 = vcombine.low %v660_v52, %v668_v46  ;;  %v1059_v62 = vrot.slane %v1051_v53, %v3503_v7  ;;  %v661_v0 = vcombine.high %v474_v34, %v474_v34 }
  0x45   : > { %3211 = vmatmul.mubr.msk.f32.gmra.mrb[10].mxu0 %vm1314_vm1, %v1033_v35  ;;  %v882_v3 = vcombine.high %v880_v58, %v880_v58  ;;  %v1255_v4 = vcombine.low %v873_v50, %v881_v59  ;;  %v676_v5 = vcombine.high %v668_v46, %v668_v46  ;;  %v685_v8 = vcombine.high %v476_v54, %v476_v54 }
  0x46   : > { %3213 = vmatprep.mubr.msk.f32.mxu0 %vm3402_vm0, %v3401_v1  ;;  %v1254_v9 = vcombine.low %v1246_v57, %v1253_v60  ;;  %v1066_v10 = vrot.slane %v1052_v61, %v3503_v7  ;;  %v675_v11 = vrot.slane %v661_v0, %v3503_v7  ;;  %v692_v12 = vrot.slane %v476_v54, %v3503_v7 }
  0x47   : > { %v1256_v13 = vcombine.low %v880_v58, %v882_v3  ;;  %v1263_v14 = vrot.slane %v1255_v4, %v3503_v7  ;;  %v699_v17 = vrot.slane %v685_v8, %v3503_v7  ;;  %v890_v18 = vcombine.high %v3346_v2, %v3346_v2 }
  0x48   : > { %3250 = vmatmul.mubr.msk.f32.gmra.mrb[12].mxu1 %vm1314_vm1, %v1254_v9  ;;  %v1067_v19 = vcombine.low %v1059_v62, %v1066_v10  ;;  %v677_v20 = vcombine.high %v675_v11, %v675_v11  ;;  %v1068_v63 = vcombine.low %v676_v5, %v675_v11  ;;  %v700_v21 = vcombine.high %v692_v12, %v692_v12 }
  0x49   : > { %3214 = vmatmul.mubr.msk.f32.gmra.mrb[12].mxu0 %vm1314_vm1, %v1050_v56  ;;  %3252 = vmatprep.mubr.msk.f32.mxu1 %vm3402_vm0, %v3401_v1  ;;  %v1270_v24 = vrot.slane %v1256_v13, %v3503_v7  ;;  %v701_v25 = vcombine.high %v699_v17, %v699_v17  ;;  %v897_v27 = vrot.slane %v3346_v2, %v3503_v7  ;;  %v466_v50 = vsel %vm3707_vm3, 0.0, %v460_v37 }
  0x4a   : > { %3216 = vmatprep.mubr.msk.f32.mxu0 %vm3402_vm0, %v3401_v1  ;;  %v1069_v30 = vcombine.low %v677_v20, %v3123_v16  ;;  %v1076_v31 = vrot.slane %v1068_v63, %v3503_v7  ;;  %v1085_v32 = vcombine.low %v692_v12, %v700_v21  ;;  %v904_v33 = vrot.slane %v890_v18, %v3503_v7 }
  0x4b   : > { %v1271_v29 = vcombine.low %v1263_v14, %v1270_v24  ;;  %v1086_v34 = vcombine.low %v699_v17, %v701_v25  ;;  %v905_v35 = vcombine.high %v897_v27, %v897_v27  ;;  %v1272_v36 = vcombine.low %v3128_v23, %v897_v27 }
  0x4c   : > { %v1083_v38 = vrot.slane %v1069_v30, %v3503_v7  ;;  %v1093_v39 = vrot.slane %v1085_v32, %v3503_v7  ;;  %v702_v40 = vcombine.high %v477_v28, %v477_v28  ;;  %v709_v41 = vrot.slane %v477_v28, %v3503_v7 }
  0x4d   : > { %3217 = vmatmul.mubr.msk.f32.gmra.mrb[14].mxu0 %vm1314_vm1, %v1067_v19  ;;  %3253 = vmatmul.mubr.msk.f32.gmra.mrb[14].mxu1 %vm1314_vm1, %v1271_v29  ;;  %v1100_v43 = vrot.slane %v1086_v34, %v3503_v7  ;;  %v1273_v44 = vcombine.low %v905_v35, %v904_v33  ;;  %v1280_v45 = vrot.slane %v1272_v36, %v3503_v7 }
  0x4e   : > { %3219 = vmatprep.mubr.msk.f32.mxu0 %vm3402_vm0, %v3401_v1  ;;  %v1084_v46 = vcombine.low %v1076_v31, %v1083_v38  ;;  %3255 = vmatprep.mubr.msk.f32.mxu1 %vm3402_vm0, %v3401_v1  ;;  %v716_v47 = vrot.slane %v702_v40, %v3503_v7  ;;  %v717_v48 = vcombine.high %v709_v41, %v709_v41 }
  0x4f   : > { %v1101_v51 = vcombine.low %v1093_v39, %v1100_v43  ;;  %v1287_v52 = vrot.slane %v1273_v44, %v3503_v7  ;;  %v906_v53 = vcombine.high %v904_v33, %v904_v33  ;;  %v907_v54 = vcombine.high %v3355_v42, %v3355_v42 }
  0x50   : > { %v718_v55 = vcombine.high %v716_v47, %v716_v47  ;;  %v1102_v56 = vcombine.low %v709_v41, %v717_v48  ;;  %v914_v57 = vrot.slane %v3355_v42, %v3503_v7  ;;  %v741_v58 = vcombine.high %v3523_v15, %v3523_v15 }
  0x51   : > { %3220 = vmatmul.mubr.msk.f32.gmra.mrb[16].mxu0 %vm1314_vm1, %v1084_v46  ;;  %v1288_v59 = vcombine.low %v1280_v45, %v1287_v52  ;;  %v921_v60 = vrot.slane %v907_v54, %v3503_v7  ;;  %v1119_v61 = vcombine.low %v3124_v49, %v3523_v15  ;;  %v930_v62 = vrot.slane %v466_v50, %v3503_v7 }
  0x52   : > { %3222 = vmatprep.mubr.msk.f32.mxu0 %vm3402_vm0, %v3401_v1  ;;  %v1103_v0 = vcombine.low %v716_v47, %v718_v55  ;;  %v1110_v2 = vrot.slane %v1102_v56, %v3503_v7  ;;  %v922_v3 = vcombine.high %v914_v57, %v914_v57  ;;  %v1289_v4 = vcombine.low %v906_v53, %v914_v57 }
  0x53   : > { %3256 = vmatmul.mubr.msk.f32.gmra.mrb[16].mxu1 %vm1314_vm1, %v1288_v59  ;;  %v1120_v5 = vcombine.low %v741_v58, %v3529_v22  ;;  %v923_v8 = vcombine.high %v921_v60, %v921_v60  ;;  %v1127_v11 = vrot.slane %v1119_v61, %v3503_v7  ;;  %v2436_v55 = vsub.s32 0, %v3495_v6  ;;  %v3790_v59 = vld [vmem:[%s4438_s4] sm:$0xff] }
  0x54   : > { %3258 = vmatprep.mubr.msk.f32.mxu1 %vm3402_vm0, %v3401_v1  ;;  %v1117_v15 = vrot.slane %v1103_v0, %v3503_v7  ;;  %v1290_v9 = vcombine.low %v922_v3, %v921_v60  ;;  %v1297_v10 = vrot.slane %v1289_v4, %v3503_v7  ;;  %v2472_v56 = vsub.s32 1, %v3495_v6 }
  0x55   : > { %3223 = vmatmul.mubr.msk.f32.gmra.mrb[18].mxu0 %vm1314_vm1, %v1101_v51  ;;  %v1134_v12 = vrot.slane %v1120_v5, %v3503_v7  ;;  %v1306_v14 = vcombine.low %v923_v8, %v930_v62  ;;  %v2577_v57 = vsub.s32 3, %v3495_v6  ;;  %v2524_v62 = vsub.s32 2, %v3495_v6 }
  0x56   : > { %3225 = vmatprep.mubr.msk.f32.mxu0 %vm3402_vm0, %v3401_v1  ;;  %v1118_v13 = vcombine.low %v1110_v2, %v1117_v15  ;;  %v1304_v22 = vrot.slane %v1290_v9, %v3503_v7 }
  0x57   : > { %v1135_v17 = vcombine.low %v1127_v11, %v1134_v12  ;;  %v1313_v18 = vrot.slane %v1306_v14, %v3503_v7 }
  0x58   : > { %v1305_v16 = vcombine.low %v1297_v10, %v1304_v22  ;;  %v3801_v22 = vrot.slane %v3790_v59, %v2436_v55 }
  0x59   : > { %3226 = vmatmul.mubr.msk.f32.gmra.mrb[20].mxu0 %vm1314_vm1, %v1118_v13 }
  0x5a   : > { %3259 = vmatmul.mubr.msk.f32.gmra.mrb[18].mxu1 %vm1314_vm1, %v1305_v16  ;;  %3228 = vmatprep.mubr.msk.f32.mxu0 %vm3402_vm0, %v3401_v1  ;;  %v3805_v16 = vrot.slane %v3790_v59, %v2577_v57 }
  0x5b   : > { %3261 = vmatprep.mubr.msk.f32.mxu1 %vm3402_vm0, %v3401_v1 }
  0x5d   : > { %3229 = vmatmul.mubr.msk.f32.gmra.mrb[22].mxu0 %vm1314_vm1, %v1135_v17 }
  0x5e   : > { %3262 = vmatmul.mubr.msk.f32.gmra.mrb[20].mxu1 %vm1314_vm1, %v1313_v18 }
  0xfd   : > { %v1487_v19 = vpop.f32.mrb[0].mxu1 }
  0xfe   : > { %v1768_v20 = vcombine.high %v1487_v19, %v1487_v19  ;;  %v3768_v63 = vrot.slane %v1487_v19, %v3503_v7  ;;  %v3233_v21 = vpop.f32.mrb[1].mxu1 }
 0x100   : > { %v1782_v23 = vrot.slane %v1768_v20, %v3503_v7  ;;  %v1783_v24 = vcombine.high %v3768_v63, %v3768_v63  ;;  %v3809_v20 = vrot.slane %v3790_v59, %v2472_v56 }
 0x101   : > { %v1492_v25 = vpop.f32.mrb[2].mxu1 }
 0x102   : > { %v2168_v26 = vcombine.low %v1783_v24, %v1782_v23  ;;  %v1784_v27 = vcombine.high %v1782_v23, %v1782_v23  ;;  %v1785_v28 = vcombine.high %v1492_v25, %v1492_v25  ;;  %v1792_v1 = vrot.slane %v1492_v25, %v3503_v7  ;;  %v3236_v30 = vpop.f32.mrb[3].mxu1 }
 0x103   : > { %v3813_v23 = vrot.slane %v3790_v59, %v2524_v62 }
 0x104   : > { %v1427_v31 = vpop.f32.mrb[0].mxu0  ;;  %v2176_v32 = vrot.slane %v2168_v26, %v3503_v7  ;;  %v1799_v33 = vrot.slane %v1785_v28, %v3503_v7  ;;  %v1800_v29 = vcombine.high %v1792_v1, %v1792_v1  ;;  %v2169_v34 = vcombine.low %v1784_v27, %v1792_v1 }
 0x105   : > { %v1564_v35 = vcombine.high %v1427_v31, %v1427_v31  ;;  %v1571_v36 = vrot.slane %v1427_v31, %v3503_v7  ;;  %v3197_v37 = vpop.f32.mrb[1].mxu0  ;;  %v1497_v38 = vpop.f32.mrb[4].mxu1 }
 0x106   : > { %v1801_v39 = vcombine.high %v1799_v33, %v1799_v33  ;;  %v2183_v40 = vrot.slane %v2169_v34, %v3503_v7  ;;  %3157 = vst.sshfl [vmem:[#allocation2 + $0x88] sm:$0x3 pattern:$0x76325410] %v1800_v29  ;;  %v1809_v41 = vrot.slane %v1497_v38, %v3503_v7  ;;  %v3239_v42 = vpop.f32.mrb[5].mxu1  ;;  %v1802_v48 = vcombine.high %v1497_v38, %v1497_v38 }
 0x107   : > { %v1578_v43 = vrot.slane %v1564_v35, %v3503_v7  ;;  %v1579_v44 = vcombine.high %v1571_v36, %v1571_v36  ;;  %v2681_v37 = vsub.s32 5, %v3495_v6  ;;  %v2734_v42 = vsub.s32 6, %v3495_v6 }
 0x108   : > { %v1432_v45 = vpop.f32.mrb[2].mxu0  ;;  %v3780_v46 = vcombine.low %v2176_v32, %v2183_v40  ;;  %v2192_v47 = vcombine.low %v1799_v33, %v1801_v39  ;;  %v1817_v49 = vcombine.high %v1809_v41, %v1809_v41  ;;  %v1816_v4 = vrot.slane %v1802_v48, %v3503_v7 }
 0x109   : > { %v1580_v50 = vcombine.high %v1578_v43, %v1578_v43  ;;  %v1946_v51 = vcombine.low %v1571_v36, %v1579_v44  ;;  %v1581_v52 = vcombine.high %v1432_v45, %v1432_v45  ;;  %v1588_v53 = vrot.slane %v1432_v45, %v3503_v7  ;;  %v3200_v54 = vpop.f32.mrb[3].mxu0 }
 0x10a   : > { %2402 = vst [vmem:[#allocation2 + $0x80] sm:$0xff] %v3780_v46  ;;  %v2200_v3 = vrot.slane %v2192_v47, %v3503_v7  ;;  %v2193_v5 = vcombine.low %v1809_v41, %v1817_v49  ;;  %v1818_v26 = vcombine.high %v1816_v4, %v1816_v4  ;;  %v2629_v36 = vsub.s32 4, %v3495_v6 }
 0x10b   : > { %v1947_v58 = vcombine.low %v1578_v43, %v1580_v50  ;;  %v1595_v60 = vrot.slane %v1581_v52, %v3503_v7  ;;  %v1596_v61 = vcombine.high %v1588_v53, %v1588_v53  ;;  %v1954_v0 = vrot.slane %v1946_v51, %v3503_v7 }
 0x10c   : > { %v1437_v2 = vpop.f32.mrb[4].mxu0  ;;  %v3797_v8 = vpop.f32.mrb[6].mxu1  ;;  %v2207_v17 = vrot.slane %v2193_v5, %v3503_v7  ;;  %v2449_v41 = vmul.f32 %v3801_v22, %v3780_v46  ;;  %v2786_v50 = vsub.s32 7, %v3495_v6  ;;  %v2209_v52 = vcombine.low %v1816_v4, %v1818_v26 }
 0x10d   : > { %v1961_v15 = vrot.slane %v1947_v58, %v3503_v7  ;;  %v1597_v9 = vcombine.high %v1595_v60, %v1595_v60  ;;  %v1963_v10 = vcombine.low %v1588_v53, %v1596_v61  ;;  %v1598_v11 = vcombine.high %v1437_v2, %v1437_v2  ;;  %v3203_v12 = vpop.f32.mrb[5].mxu0  ;;  %v3242_v13 = vpop.f32.mrb[7].mxu1 }
 0x10e   : > { %v1605_v14 = vrot.slane %v1437_v2, %v3503_v7  ;;  %v3815_v27 = vcombine.low %v2200_v3, %v2207_v17  ;;  %v1819_v49 = vcombine.high %v3797_v8, %v3797_v8  ;;  %v1826_v54 = vrot.slane %v3797_v8, %v3503_v7 }
 0x10f   : > { %v1962_v18 = vcombine.low %v1954_v0, %v1961_v15  ;;  %v1964_v19 = vcombine.low %v1595_v60, %v1597_v9  ;;  %v1612_v21 = vrot.slane %v1598_v11, %v3503_v7  ;;  %v1971_v28 = vrot.slane %v1963_v10, %v3503_v7 }
 0x110   : > { %v1613_v24 = vcombine.high %v1605_v14, %v1605_v14  ;;  %3152 = vst.sshfl [vmem:[#allocation2 + $0x10] sm:$0x3 pattern:$0x76325410] %v1605_v14  ;;  %v1442_v25 = vpop.f32.mrb[6].mxu0  ;;  %2404 = vst [vmem:[#allocation2 + $0x90] sm:$0xff] %v3815_v27  ;;  %v3845_v58 = vrot.slane %v3790_v59, %v2629_v36  ;;  %v3850_v2 = vrot.slane %v3790_v59, %v2734_v42 }
 0x111   : > { %2386 = vst [vmem:[#allocation2] sm:$0xff] %v1962_v18  ;;  %v1978_v1 = vrot.slane %v1964_v19, %v3503_v7  ;;  %v1614_v30 = vcombine.high %v1612_v21, %v1612_v21  ;;  %v1615_v31 = vcombine.high %v1442_v25, %v1442_v25  ;;  %v3206_v32 = vpop.f32.mrb[7].mxu0  ;;  %v3819_v33 = vld [vmem:[#allocation2 + $0x81] sm:$0xff]  ;;  %v3821_v29 = vpop.f32.mrb[8].mxu1  ;;  %v1622_v35 = vrot.slane %v1442_v25, %v3503_v7 }
 0x112   : > { %v1987_v34 = vcombine.low %v1613_v24, %v1612_v21  ;;  %v3245_v38 = vpop.f32.mrb[9].mxu1  ;;  %v2485_v45 = vmul.f32 %v3809_v20, %v3819_v33  ;;  %v3833_v47 = vld [vmem:[#allocation2 + $0x82] sm:$0xff]  ;;  %v1833_v15 = vrot.slane %v1819_v49, %v3503_v7  ;;  %v2217_v12 = vrot.slane %v2209_v52, %v3503_v7 }
 0x113   : > { %v1979_v39 = vcombine.low %v1971_v28, %v1978_v1  ;;  %v1629_v40 = vrot.slane %v1615_v31, %v3503_v7  ;;  %v1630_v43 = vcombine.high %v1622_v35, %v1622_v35  ;;  %v1988_v44 = vcombine.low %v1614_v30, %v1622_v35 }
 0x114   : > { %v1447_v48 = vpop.f32.mrb[8].mxu0  ;;  %v1995_v56 = vrot.slane %v1987_v34, %v3503_v7  ;;  %v2537_v0 = vmul.f32 %v3813_v23, %v3833_v47  ;;  %v2501_v5 = vadd.f32 %v2485_v45, %v2449_v41  ;;  %v1834_v13 = vcombine.high %v1826_v54, %v1826_v54  ;;  %3158 = vst.sshfl [vmem:[#allocation2 + $0xa0] sm:$0x3 pattern:$0x76325410] %v1833_v15 }
 0x115   : > { %2387 = vst [vmem:[#allocation2 + $0x8] sm:$0xff] %v1979_v39  ;;  %v1631_v51 = vcombine.high %v1629_v40, %v1629_v40  ;;  %v3209_v53 = vpop.f32.mrb[9].mxu0  ;;  %v3840_v55 = vpop.f32.mrb[10].mxu1  ;;  %v2002_v57 = vrot.slane %v1988_v44, %v3503_v7  ;;  %v1632_v60 = vcombine.high %v1447_v48, %v1447_v48  ;;  %v2004_v62 = vcombine.low %v1630_v43, %v1629_v40 }
 0x116   : > { %v3248_v61 = vpop.f32.mrb[11].mxu1  ;;  %v1639_v3 = vrot.slane %v1447_v48, %v3503_v7  ;;  %v2438_v17 = vmul.f32 %v3801_v22, %v1962_v18  ;;  %v2439_v25 = vmul.f32 %v3801_v22, %v1979_v39  ;;  %v2210_v1 = vcombine.low %v1826_v54, %v1834_v13 }
 0x117   : > { %v3853_v4 = vcombine.low %v1995_v56, %v2002_v57  ;;  %v1646_v8 = vrot.slane %v1632_v60, %v3503_v7  ;;  %v2012_v26 = vrot.slane %v2004_v62, %v3503_v7  ;;  %v2553_v34 = vadd.f32 %v2537_v0, %v2501_v5 }
 0x118   : > { %v1452_v9 = vpop.f32.mrb[10].mxu0  ;;  %v1647_v10 = vcombine.high %v1639_v3, %v1639_v3  ;;  %v2005_v11 = vcombine.low %v1631_v51, %v1639_v3  ;;  %v1835_v36 = vcombine.high %v1833_v15, %v1833_v15  ;;  %v1836_v38 = vcombine.high %v3821_v29, %v3821_v29 }
 0x119   : > { %v3212_v14 = vpop.f32.mrb[11].mxu0  ;;  %2389 = vst [vmem:[#allocation2 + $0x18] sm:$0xff] %v3853_v4  ;;  %v1648_v19 = vcombine.high %v1646_v8, %v1646_v8  ;;  %v1649_v21 = vcombine.high %v1452_v9, %v1452_v9  ;;  %v1656_v24 = vrot.slane %v1452_v9, %v3503_v7  ;;  %v1843_v45 = vrot.slane %v3821_v29, %v3503_v7 }
 0x11a   : > { %v2019_v28 = vrot.slane %v2005_v11, %v3503_v7  ;;  %3153 = vst.sshfl [vmem:[#allocation2 + $0x28] sm:$0x3 pattern:$0x76325410] %v1647_v10  ;;  %v2579_v49 = vmul.f32 %v3805_v16, %v3853_v4  ;;  %v2224_v52 = vrot.slane %v2210_v1, %v3503_v7  ;;  %v3884_v0 = vrot.slane %v1836_v38, %v3503_v7 }
 0x11b   : > { %v3864_v30 = vpop.f32.mrb[12].mxu1  ;;  %v1664_v35 = vcombine.high %v1656_v24, %v1656_v24  ;;  %v2028_v51 = vcombine.low %v1646_v8, %v1648_v19  ;;  %v1663_v53 = vrot.slane %v1649_v21, %v3503_v7  ;;  %v1851_v9 = vcombine.high %v1843_v45, %v1843_v45 }
 0x11c   : > { %v2454_v31 = vld [vmem:[#allocation2 + $0x1] sm:$0xff]  ;;  %v2455_v18 = vld [vmem:[#allocation2 + $0x9] sm:$0xff]  ;;  %v3868_v40 = vpop.f32.mrb[12].mxu0  ;;  %v3251_v39 = vpop.f32.mrb[13].mxu1  ;;  %v2020_v44 = vcombine.low %v2012_v26, %v2019_v28  ;;  %v3881_v62 = vcombine.low %v2217_v12, %v2224_v52  ;;  %v2233_v10 = vcombine.low %v1835_v36, %v1843_v45  ;;  %v3893_v14 = vrot.slane %v3790_v59, %v2681_v37 }
 0x11d   : > { %v2506_v32 = vld [vmem:[#allocation2 + $0x2] sm:$0xff]  ;;  %v2474_v41 = vmul.f32 %v3809_v20, %v2454_v31  ;;  %v2475_v42 = vmul.f32 %v3809_v20, %v2455_v18  ;;  %v2507_v43 = vld [vmem:[#allocation2 + $0xa] sm:$0xff]  ;;  %v3215_v48 = vpop.f32.mrb[13].mxu0  ;;  %v2029_v29 = vcombine.low %v1656_v24, %v1664_v35  ;;  %v2036_v12 = vrot.slane %v2028_v51, %v3503_v7 }
 0x11e   : > { %v2526_v56 = vmul.f32 %v3813_v23, %v2506_v32  ;;  %v2527_v60 = vmul.f32 %v3813_v23, %v2507_v43  ;;  %2390 = vst [vmem:[#allocation2 + $0x20] sm:$0xff] %v2020_v44  ;;  %v2580_v61 = vmul.f32 %v3805_v16, %v2020_v44  ;;  %2405 = vst [vmem:[#allocation2 + $0x98] sm:$0xff] %v3881_v62 }
 0x11f   : > { %v2490_v54 = vadd.f32 %v2474_v41, %v2438_v17  ;;  %v2491_v57 = vadd.f32 %v2475_v42, %v2439_v25  ;;  %v2590_v17 = vmul.f32 %v3805_v16, %v3881_v62  ;;  %v2043_v19 = vrot.slane %v2029_v29, %v3503_v7 }
 0x120   : > { %v3886_v3 = vpop.f32.mrb[14].mxu0  ;;  %v3888_v5 = vpop.f32.mrb[14].mxu1  ;;  %v1665_v25 = vcombine.high %v1663_v53, %v1663_v53  ;;  %v2234_v26 = vcombine.low %v1851_v9, %v3884_v0  ;;  %v3904_v28 = vrot.slane %v3790_v59, %v2786_v50  ;;  %v1666_v31 = vcombine.high %v3868_v40, %v3868_v40 }
 0x121   : > { %v2542_v8 = vadd.f32 %v2526_v56, %v2490_v54  ;;  %v2543_v15 = vadd.f32 %v2527_v60, %v2491_v57  ;;  %v3218_v11 = vpop.f32.mrb[15].mxu0  ;;  %v3254_v13 = vpop.f32.mrb[15].mxu1  ;;  %v3906_v37 = vadd.f32 %v2590_v17, %v2553_v34  ;;  %v3908_v1 = vcombine.low %v2036_v12, %v2043_v19 }
 0x122   : > { %v3916_v18 = vmul.f32 %v3805_v16, %v3780_v46  ;;  %v3920_v35 = vmul.f32 %v3850_v2, %v3780_v46  ;;  %v2241_v6 = vrot.slane %v2233_v10, %v3503_v7  ;;  %v2248_v59 = vrot.slane %v2234_v26, %v3503_v7 }
 0x123   : > { %v2595_v21 = vadd.f32 %v2579_v49, %v2542_v8  ;;  %v2596_v24 = vadd.f32 %v2580_v61, %v2543_v15  ;;  %v2440_v34 = vmul.f32 %v3801_v22, %v3853_v4  ;;  %v2441_v36 = vmul.f32 %v3801_v22, %v2020_v44  ;;  %2392 = vst [vmem:[#allocation2 + $0x30] sm:$0xff] %v3908_v1 }
 0x124   : > { %v3912_v32 = vpop.f32.mrb[16].mxu0  ;;  %4455 = vst [vmem:[#allocation3_spill] sm:$0xff] %v3916_v18  ;;  %4456 = vst [vmem:[#allocation4_spill] sm:$0xff] %v3920_v35  ;;  %v2450_v42 = vmul.f32 %v3801_v22, %v3815_v27  ;;  %v3931_v46 = vrot.slane %v1666_v31, %v3503_v7  ;;  %v3938_v44 = vcombine.low %v1663_v53, %v1665_v25 }
 0x125   : > { %v3221_v50 = vpop.f32.mrb[17].mxu0  ;;  %v2456_v38 = vld [vmem:[#allocation2 + $0x19] sm:$0xff]  ;;  %v2457_v39 = vld [vmem:[#allocation2 + $0x21] sm:$0xff]  ;;  %v2451_v54 = vmul.f32 %v3801_v22, %v3881_v62  ;;  %v1673_v56 = vrot.slane %v3868_v40, %v3503_v7  ;;  %v3950_v29 = vld [vmem:[#allocation2 + $0x91] sm:$0xff]  ;;  %v3956_v9 = vcombine.low %v2241_v6, %v2248_v59  ;;  %v1853_v17 = vcombine.high %v3840_v55, %v3840_v55 }
 0x126   : > { %v2508_v41 = vld [vmem:[#allocation2 + $0x1a] sm:$0xff]  ;;  %v3933_v43 = vpop.f32.mrb[16].mxu1  ;;  %v2476_v45 = vmul.f32 %v3809_v20, %v2456_v38  ;;  %v2477_v48 = vmul.f32 %v3809_v20, %v2457_v39  ;;  %v2631_v4 = vmul.f32 %v3845_v58, %v2456_v38  ;;  %v2632_v52 = vmul.f32 %v3845_v58, %v2457_v39  ;;  %3154 = vst.sshfl [vmem:[#allocation2 + $0x40] sm:$0x3 pattern:$0x76325410] %v3931_v46 }
 0x127   : > { %v3257_v49 = vpop.f32.mrb[17].mxu1  ;;  %v2528_v51 = vmul.f32 %v3813_v23, %v2508_v41  ;;  %v2683_v53 = vmul.f32 %v3893_v14, %v2508_v41  ;;  %4457 = vst [vmem:[#allocation5_spill] sm:$0xff] %v3950_v29  ;;  %v3952_v8 = vld [vmem:[#allocation2 + $0x99] sm:$0xff]  ;;  %4460 = vst [vmem:[#allocation8_spill] sm:$0xff] %v3956_v9  ;;  %v2509_v11 = vld [vmem:[#allocation2 + $0x22] sm:$0xff]  ;;  %v2486_v40 = vmul.f32 %v3809_v20, %v3950_v29 }
 0x128   : > { %v3947_v57 = vpop.f32.mrb[18].mxu0  ;;  %v2492_v60 = vadd.f32 %v2476_v45, %v2440_v34  ;;  %v2647_v61 = vadd.f32 %v2631_v4, %v2595_v21  ;;  %4458 = vst [vmem:[#allocation6_spill] sm:$0xff] %v3952_v8  ;;  %v3954_v15 = vld [vmem:[#allocation2 + $0x92] sm:$0xff]  ;;  %v2487_v13 = vmul.f32 %v3809_v20, %v3952_v8  ;;  %v2493_v19 = vadd.f32 %v2477_v48, %v2441_v36  ;;  %v3966_v31 = vld [vmem:[#allocation2 + $0x9a] sm:$0xff] }
 0x129   : > { %4459 = vst [vmem:[#allocation7_spill] sm:$0xff] %v3954_v15  ;;  %v3224_v10 = vpop.f32.mrb[19].mxu0  ;;  %v2538_v12 = vmul.f32 %v3813_v23, %v3954_v15  ;;  %v2648_v25 = vadd.f32 %v2632_v52, %v2596_v24  ;;  %4461 = vst [vmem:[#allocation9_spill] sm:$0xff] %v3966_v31  ;;  %v2502_v6 = vadd.f32 %v2486_v40, %v2450_v42 }
 0x12a   : > { %v2544_v21 = vadd.f32 %v2528_v51, %v2492_v60  ;;  %v2699_v26 = vadd.f32 %v2683_v53, %v2647_v61  ;;  %2407 = vst [vmem:[#allocation2 + $0xa8] sm:$0xff] %v3956_v9  ;;  %v2503_v59 = vadd.f32 %v2487_v13, %v2451_v54  ;;  %v2539_v50 = vmul.f32 %v3813_v23, %v3966_v31 }
 0x12b   : > { %v2581_v34 = vmul.f32 %v3805_v16, %v3908_v1  ;;  %v2529_v39 = vmul.f32 %v3813_v23, %v2509_v11  ;;  %v2684_v36 = vmul.f32 %v3893_v14, %v2509_v11  ;;  %v2642_v24 = vmul.f32 %v3845_v58, %v3952_v8 }
 0x12c   : > { %v3973_v38 = vpop.f32.mrb[20].mxu0  ;;  %v2736_v41 = vmul.f32 %v3850_v2, %v3908_v1  ;;  %v3985_v48 = vmul.f32 %v3845_v58, %v3819_v33  ;;  %v2554_v4 = vadd.f32 %v2538_v12, %v2502_v6  ;;  %v2053_v49 = vrot.slane %v3938_v44, %v3503_v7 }
 0x12d   : > { %v3981_v42 = vpop.f32.mrb[18].mxu1  ;;  %v3227_v45 = vpop.f32.mrb[21].mxu0  ;;  %v1852_v51 = vcombine.high %v3884_v0, %v3884_v0  ;;  %v2545_v54 = vadd.f32 %v2529_v39, %v2493_v19  ;;  %v2700_v60 = vadd.f32 %v2684_v36, %v2648_v25  ;;  %v3991_v61 = vadd.f32 %v2581_v34, %v2544_v21 }
 0x12e   : > { %4462 = vst [vmem:[#allocation10_spill] sm:$0xff] %v3985_v48  ;;  %v3260_v52 = vpop.f32.mrb[19].mxu1  ;;  %v3993_v53 = vadd.f32 %v2736_v41, %v2699_v26  ;;  %v2555_v10 = vadd.f32 %v2539_v50, %v2503_v59  ;;  %v2694_v11 = vmul.f32 %v3893_v14, %v3966_v31  ;;  %v2591_v40 = vmul.f32 %v3805_v16, %v3956_v9 }
 0x12f   : > { %v1681_v13 = vcombine.high %v1673_v56, %v1673_v56  ;;  %v2658_v44 = vadd.f32 %v2642_v24, %v3906_v37  ;;  %v1860_v0 = vrot.slane %v3840_v55, %v3503_v7  ;;  %v1867_v19 = vrot.slane %v1853_v17, %v3503_v7 }
 0x130   : > { %v3999_v12 = vpop.f32.mrb[22].mxu0  ;;  %v1682_v21 = vcombine.high %v3931_v46, %v3931_v46  ;;  %v4009_v6 = vadd.f32 %v2591_v40, %v2554_v4  ;;  %v1683_v50 = vcombine.high %v3886_v3, %v3886_v3  ;;  %v1690_v37 = vrot.slane %v3886_v3, %v3503_v7 }
 0x131   : > { %v4007_v25 = vpop.f32.mrb[20].mxu1  ;;  %v3230_v26 = vpop.f32.mrb[23].mxu0  ;;  %v2046_v59 = vcombine.low %v1673_v56, %v1681_v13  ;;  %v1868_v39 = vcombine.high %v1860_v0, %v1860_v0  ;;  %v1869_v55 = vcombine.high %v1867_v19, %v1867_v19  ;;  %v2250_v36 = vcombine.low %v1852_v51, %v1860_v0 }
 0x132   : > { %4463 = vst [vmem:[#allocation11_spill] sm:$0xff] %v4007_v25  ;;  %v3263_v34 = vpop.f32.mrb[21].mxu1  ;;  %v1870_v17 = vcombine.high %v3864_v30, %v3864_v30  ;;  %v4019_v24 = vrot.slane %v1683_v50, %v3503_v7  ;;  %v1698_v41 = vcombine.high %v1690_v37, %v1690_v37  ;;  %v2069_v56 = vcombine.low %v1682_v21, %v1690_v37 }
 0x133   : > { %v2060_v46 = vrot.slane %v2046_v59, %v3503_v7  ;;  %v2251_v45 = vcombine.low %v1868_v39, %v1867_v19  ;;  %v2258_v4 = vrot.slane %v2250_v36, %v3503_v7  ;;  %3159 = vst.sshfl [vmem:[#allocation2 + $0xb8] sm:$0x3 pattern:$0x76325410] %v1869_v55  ;;  %v1877_v3 = vrot.slane %v3864_v30, %v3503_v7 }
 0x134   : > { %v1884_v52 = vrot.slane %v1870_v17, %v3503_v7  ;;  %v2710_v51 = vadd.f32 %v2694_v11, %v2658_v44  ;;  %v2070_v13 = vcombine.low %v1698_v41, %v4019_v24  ;;  %v1887_v0 = vcombine.high %v3888_v5, %v3888_v5 }
 0x135   : > { %v2061_v40 = vcombine.low %v2053_v49, %v2060_v46  ;;  %v2265_v26 = vrot.slane %v2251_v45, %v3503_v7  ;;  %v1885_v59 = vcombine.high %v1877_v3, %v1877_v3  ;;  %v1894_v19 = vrot.slane %v3888_v5, %v3503_v7 }
 0x136   : > { %v1886_v21 = vcombine.high %v1884_v52, %v1884_v52  ;;  %v2077_v11 = vrot.slane %v2069_v56, %v3503_v7  ;;  %v2084_v49 = vrot.slane %v2070_v13, %v3503_v7  ;;  %v1901_v39 = vrot.slane %v1887_v0, %v3503_v7 }
 0x137   : > { %2393 = vst [vmem:[#allocation2 + $0x38] sm:$0xff] %v2061_v40  ;;  %v2582_v50 = vmul.f32 %v3805_v16, %v2061_v40  ;;  %v2737_v30 = vmul.f32 %v3850_v2, %v2061_v40  ;;  %v2266_v44 = vcombine.low %v2258_v4, %v2265_v26  ;;  %v2274_v37 = vcombine.low %v1877_v3, %v1885_v59 }
 0x138   : > { %v2275_v34 = vcombine.low %v1884_v52, %v1886_v21  ;;  %v4038_v17 = vcombine.low %v2077_v11, %v2084_v49  ;;  %v1902_v5 = vcombine.high %v1894_v19, %v1894_v19  ;;  %v4042_v46 = vmul.f32 %v3893_v14, %v3833_v47 }
 0x139   : > { %v4036_v55 = vadd.f32 %v2582_v50, %v2545_v54  ;;  %v2753_v36 = vadd.f32 %v2737_v30, %v2700_v60  ;;  %2408 = vst [vmem:[#allocation2 + $0xb0] sm:$0xff] %v2266_v44  ;;  %v2592_v41 = vmul.f32 %v3805_v16, %v2266_v44  ;;  %v2747_v56 = vmul.f32 %v3850_v2, %v2266_v44 }
 0x13a   : > { %4464 = vst [vmem:[#allocation12_spill] sm:$0xff] %v4042_v46  ;;  %v2282_v45 = vrot.slane %v2274_v37, %v3503_v7  ;;  %v2442_v4 = vmul.f32 %v3801_v22, %v3908_v1  ;;  %v2452_v54 = vmul.f32 %v3801_v22, %v3956_v9  ;;  %v2443_v60 = vmul.f32 %v3801_v22, %v2061_v40 }
 0x13b   : > { %2395 = vst [vmem:[#allocation2 + $0x48] sm:$0xff] %v4038_v17  ;;  %v2289_v3 = vrot.slane %v2275_v34, %v3503_v7  ;;  %v4054_v52 = vadd.f32 %v2592_v41, %v2555_v10  ;;  %v4056_v13 = vadd.f32 %v2747_v56, %v2710_v51  ;;  %v1903_v0 = vcombine.high %v1901_v39, %v1901_v39 }
 0x13c   : > { %v4058_v26 = vcombine.low %v1894_v19, %v1902_v5  ;;  %v2453_v59 = vmul.f32 %v3801_v22, %v2266_v44  ;;  %v4063_v1 = vmul.f32 %v3805_v16, %v4038_v17  ;;  %v4067_v40 = vmul.f32 %v3850_v2, %v4038_v17 }
 0x13d   : > { %v4069_v21 = vcombine.low %v2282_v45, %v2289_v3  ;;  %v4071_v51 = vcombine.low %v1901_v39, %v1903_v0  ;;  %v4079_v49 = vrot.slane %v3912_v32, %v3503_v7  ;;  %v4093_v3 = vrot.slane %v3947_v57, %v3503_v7  ;;  %v4101_v39 = vld [vmem:[%s4438_s4 + $0x8] ss:$0 sm:$0xff] }
 0x13e   : > { %v2458_v50 = vld [vmem:[#allocation2 + $0x31] sm:$0xff]  ;;  %v2459_v10 = vld [vmem:[#allocation2 + $0x39] sm:$0xff] }
 0x13f   : > { %v2510_v30 = vld [vmem:[#allocation2 + $0x32] sm:$0xff]  ;;  %v2478_v44 = vmul.f32 %v3809_v20, %v2458_v50  ;;  %v2479_v37 = vmul.f32 %v3809_v20, %v2459_v10  ;;  %v2511_v34 = vld [vmem:[#allocation2 + $0x3a] sm:$0xff]  ;;  %v2633_v5 = vmul.f32 %v3845_v58, %v2458_v50  ;;  %2410 = vst [vmem:[#allocation2 + $0xc0] sm:$0xff] %v4069_v21  ;;  %v2634_v19 = vmul.f32 %v3845_v58, %v2459_v10 }
 0x140   : > { %v2530_v41 = vmul.f32 %v3813_v23, %v2510_v30  ;;  %v2531_v56 = vmul.f32 %v3813_v23, %v2511_v34  ;;  %v2788_v9 = vmul.f32 %v3904_v28, %v2458_v50  ;;  %v2685_v46 = vmul.f32 %v3893_v14, %v2510_v30  ;;  %v2469_v48 = vld [vmem:[#allocation2 + $0xb1] sm:$0xff] }
 0x141   : > { %v2494_v0 = vadd.f32 %v2478_v44, %v2442_v4  ;;  %v2649_v11 = vadd.f32 %v2633_v5, %v3991_v61  ;;  %v2495_v31 = vadd.f32 %v2479_v37, %v2443_v60  ;;  %v4105_v45 = vmul.f32 %v3893_v14, %v2511_v34  ;;  %v4108_v4 = vld [vmem:[#allocation2 + $0xa9] sm:$0xff]  ;;  %v4116_v37 = vld [vmem:[%s4439_s5] ss:$0 sm:$0xff] }
 0x142   : > { %v2789_v8 = vmul.f32 %v3904_v28, %v2459_v10  ;;  %4465 = vst [vmem:[#allocation13_spill] sm:$0xff] %v4108_v4  ;;  %v2804_v61 = vadd.f32 %v2788_v9, %v3993_v53  ;;  %v2840_v50 = vmul.f32 %v4101_v39, %v2510_v30  ;;  %v2841_v5 = vmul.f32 %v4101_v39, %v2511_v34  ;;  %v2521_v9 = vld [vmem:[#allocation2 + $0xb2] sm:$0xff] }
 0x143   : > { %v2546_v44 = vadd.f32 %v2530_v41, %v2494_v0  ;;  %v2701_v35 = vadd.f32 %v2685_v46, %v2649_v11  ;;  %v2488_v10 = vmul.f32 %v3809_v20, %v4108_v4  ;;  %v2489_v41 = vmul.f32 %v3809_v20, %v2469_v48  ;;  %v4121_v0 = vld [vmem:[#allocation2 + $0xaa] sm:$0xff]  ;;  %v4131_v11 = vld [vmem:[%s4440_s6] ss:$0 sm:$0xff] }
 0x144   : > { %v2805_v60 = vadd.f32 %v2789_v8, %v2753_v36  ;;  %v2856_v53 = vadd.f32 %v2840_v50, %v2804_v61  ;;  %v2540_v30 = vmul.f32 %v3813_v23, %v4121_v0  ;;  %v2541_v46 = vmul.f32 %v3813_v23, %v2521_v9 }
 0x145   : > { %v2643_v8 = vmul.f32 %v3845_v58, %v4108_v4  ;;  %v2504_v34 = vadd.f32 %v2488_v10, %v2452_v54  ;;  %v2505_v15 = vadd.f32 %v2489_v41, %v2453_v59  ;;  %v2644_v29 = vmul.f32 %v3845_v58, %v2469_v48 }
 0x146   : > { %v2857_v36 = vadd.f32 %v2841_v5, %v2805_v60  ;;  %v2880_v61 = vmul.f32 %v4116_v37, %v2856_v53  ;;  %v2695_v18 = vmul.f32 %v3893_v14, %v4121_v0  ;;  %v2696_v4 = vmul.f32 %v3893_v14, %v2521_v9 }
 0x147   : > { %v2659_v50 = vadd.f32 %v2643_v8, %v4009_v6  ;;  %v4140_v5 = vadd.f32 %v2531_v56, %v2495_v31  ;;  %v2650_v60 = vadd.f32 %v2634_v19, %v4036_v55  ;;  %v2660_v54 = vadd.f32 %v2644_v29, %v4054_v52 }
 0x148   : > { %v2881_v25 = vmul.f32 %v4116_v37, %v2857_v36  ;;  %v2902_v59 = vadd.f32 %v4131_v11, %v2880_v61  ;;  %v2556_v10 = vadd.f32 %v2540_v30, %v2504_v34  ;;  %v2557_v41 = vadd.f32 %v2541_v46, %v2505_v15 }
 0x149   : > { %v2799_v53 = vmul.f32 %v3904_v28, %v2469_v48  ;;  %v2711_v6 = vadd.f32 %v2695_v18, %v2659_v50  ;;  %v2712_v55 = vadd.f32 %v2696_v4, %v2660_v54  ;;  %v2851_v19 = vmul.f32 %v4101_v39, %v2521_v9 }
 0x14a   : > { %v2903_v31 = vadd.f32 %v4131_v11, %v2881_v25  ;;  %v2918_v29 = vmax.f32 %v2902_v59, 0.0  ;;  %v4156_v15 = vadd.f32 %v4063_v1, %v2546_v44  ;;  %v4159_v48 = vadd.f32 %v4067_v40, %v2701_v35 }
 0x14b   : > { %v2815_v52 = vadd.f32 %v2799_v53, %v4056_v13  ;;  %v2593_v30 = vmul.f32 %v3805_v16, %v4069_v21  ;;  %v2748_v18 = vmul.f32 %v3850_v2, %v4069_v21  ;;  %v2306_v25 = vrot.slane %v4071_v51, %v3503_v7 }
 0x14c   : > { %v2919_v56 = vmax.f32 %v2903_v31, 0.0  ;;  %2934 = vst [vmem:[%s4150_s10] sm:$0xff] %v2918_v29  ;;  %v4466_v13 = vcombine.high %v3912_v32, %v3912_v32  ;;  %v1715_v35 = vcombine.high %v4079_v49, %v4079_v49  ;;  %v4467_v40 = vcombine.high %v4019_v24, %v4019_v24 }
 0x14d   : > { %v2867_v4 = vadd.f32 %v2851_v19, %v2815_v52  ;;  %v2609_v21 = vadd.f32 %v2593_v30, %v2556_v10  ;;  %v2764_v9 = vadd.f32 %v2748_v18, %v2711_v6  ;;  %v4468_v51 = vrot.slane %v4058_v26, %v3503_v7 }
 0x14e   : > { %v1714_v1 = vrot.slane %v4466_v13, %v3503_v7  ;;  %v2086_v44 = vcombine.low %v4467_v40, %v4079_v49  ;;  %2935 = vst [vmem:[%s4150_s10 + $0x8] sm:$0xff] %v2919_v56  ;;  %v4469_v32 = vcombine.high %v3947_v57, %v3947_v57  ;;  %v1732_v26 = vcombine.high %v4093_v3, %v4093_v3 }
 0x14f   : > { %v2307_v46 = vcombine.low %v4468_v51, %v2306_v25  ;;  %v2891_v36 = vmul.f32 %v4116_v37, %v2867_v4  ;;  %v1904_v10 = vcombine.high %v3933_v43, %v3933_v43  ;;  %v1911_v53 = vrot.slane %v3933_v43, %v3503_v7 }
 0x150   : > { %v1731_v8 = vrot.slane %v4469_v32, %v3503_v7  ;;  %v1716_v34 = vcombine.high %v1714_v1, %v1714_v1  ;;  %v2087_v61 = vcombine.low %v1715_v35, %v1714_v1  ;;  %v2094_v50 = vrot.slane %v2086_v44, %v3503_v7 }
 0x151   : > { %2411 = vst [vmem:[#allocation2 + $0xc8] sm:$0xff] %v2307_v46  ;;  %v2594_v24 = vmul.f32 %v3805_v16, %v2307_v46  ;;  %v2749_v49 = vmul.f32 %v3850_v2, %v2307_v46  ;;  %v2913_v59 = vadd.f32 %v4131_v11, %v2891_v36  ;;  %v2110_v31 = vcombine.low %v4093_v3, %v1732_v26 }
 0x152   : > { %v1733_v54 = vcombine.high %v1731_v8, %v1731_v8  ;;  %v2101_v57 = vrot.slane %v2087_v61, %v3503_v7  ;;  %3155 = vst.sshfl [vmem:[#allocation2 + $0x58] sm:$0x3 pattern:$0x76325410] %v1716_v34  ;;  %v2702_v52 = vadd.f32 %v4105_v45, %v2650_v60  ;;  %v1919_v18 = vcombine.high %v1911_v53, %v1911_v53 }
 0x153   : > { %v4199_v19 = vadd.f32 %v2594_v24, %v2557_v41  ;;  %v4201_v29 = vadd.f32 %v2749_v49, %v2712_v55  ;;  %v2929_v56 = vmax.f32 %v2913_v59, 0.0  ;;  %3160 = vst.sshfl [vmem:[#allocation2 + $0xd0] sm:$0x3 pattern:$0x76325410] %v1911_v53  ;;  %v2118_v25 = vrot.slane %v2110_v31, %v3503_v7 }
 0x154   : > { %v2111_v6 = vcombine.low %v1731_v8, %v1733_v54  ;;  %v2102_v30 = vcombine.low %v2094_v50, %v2101_v57  ;;  %v1734_v43 = vcombine.high %v3973_v38, %v3973_v38  ;;  %v1741_v3 = vrot.slane %v3973_v38, %v3503_v7 }
 0x155   : > { %v4212_v41 = vmul.f32 %v3904_v28, %v3819_v33  ;;  %2945 = vst [vmem:[%s4150_s10 + $0x58] sm:$0xff] %v2929_v56  ;;  %v4218_v55 = vrot.slane %v1904_v10, %v3503_v7  ;;  %v4222_v13 = vmul.f32 %v4101_v39, %v3833_v47  ;;  %v4229_v33 = vmul.f32 %v3805_v16, %v3815_v27 }
 0x156   : > { %v2125_v4 = vrot.slane %v2111_v6, %v3503_v7  ;;  %2396 = vst [vmem:[#allocation2 + $0x50] sm:$0xff] %v2102_v30  ;;  %v2584_v45 = vmul.f32 %v3805_v16, %v2102_v30  ;;  %v2739_v60 = vmul.f32 %v3850_v2, %v2102_v30  ;;  %v1748_v38 = vrot.slane %v1734_v43, %v3503_v7 }
 0x157   : > { %v1749_v35 = vcombine.high %v1741_v3, %v1741_v3  ;;  %v4233_v32 = vcombine.low %v1919_v18, %v4218_v55  ;;  %v4237_v47 = vmul.f32 %v3850_v2, %v3815_v27  ;;  %v2444_v61 = vmul.f32 %v3801_v22, %v4038_v17 }
 0x158   : > { %v4224_v1 = vcombine.low %v2118_v25, %v2125_v4  ;;  %v2625_v40 = vld [vmem:[#allocation2 + $0xc1] sm:$0xff]  ;;  %v2600_v51 = vadd.f32 %v2584_v45, %v4140_v5  ;;  %v2755_v46 = vadd.f32 %v2739_v60, %v2702_v52  ;;  %v2445_v50 = vmul.f32 %v3801_v22, %v2102_v30 }
 0x159   : > { %v2677_v44 = vld [vmem:[#allocation2 + $0xc2] sm:$0xff]  ;;  %v2645_v8 = vmul.f32 %v3845_v58, %v2625_v40  ;;  %v2800_v36 = vmul.f32 %v3904_v28, %v2625_v40  ;;  %v1920_v24 = vcombine.high %v4218_v55, %v4218_v55  ;;  %v1750_v59 = vcombine.high %v1748_v38, %v1748_v38 }
 0x15a   : > { %v2852_v34 = vmul.f32 %v4101_v39, %v2677_v44  ;;  %2398 = vst [vmem:[#allocation2 + $0x60] sm:$0xff] %v4224_v1  ;;  %v2697_v5 = vmul.f32 %v3893_v14, %v2677_v44  ;;  %v2626_v26 = vld [vmem:[#allocation2 + $0xc9] sm:$0xff]  ;;  %v2127_v57 = vcombine.low %v1741_v3, %v1749_v35  ;;  %v2585_v10 = vmul.f32 %v3805_v16, %v4224_v1 }
 0x15b   : > { %v2661_v27 = vadd.f32 %v2645_v8, %v2609_v21  ;;  %v2816_v49 = vadd.f32 %v2800_v36, %v2764_v9  ;;  %v4249_v54 = vld [vmem:[#allocation2 + $0xca] sm:$0xff]  ;;  %v2740_v17 = vmul.f32 %v3850_v2, %v4224_v1  ;;  %v2323_v53 = vrot.slane %v4233_v32, %v3503_v7 }
 0x15c   : > { %v1921_v31 = vcombine.high %v3981_v42, %v3981_v42  ;;  %v4260_v56 = vmul.f32 %v3845_v58, %v2626_v26  ;;  %v2801_v30 = vmul.f32 %v3904_v28, %v2626_v26  ;;  %v1928_v18 = vrot.slane %v3981_v42, %v3503_v7 }
 0x15d   : > { %v2868_v6 = vadd.f32 %v2852_v34, %v2816_v49  ;;  %v2460_v21 = vld [vmem:[#allocation2 + $0x49] sm:$0xff]  ;;  %v2461_v9 = vld [vmem:[#allocation2 + $0x51] sm:$0xff]  ;;  %v2853_v3 = vmul.f32 %v4101_v39, %v4249_v54  ;;  %v4270_v45 = vadd.f32 %v2697_v5, %v2661_v27  ;;  %v2128_v35 = vcombine.low %v1748_v38, %v1750_v59 }
 0x15e   : > { %v2512_v52 = vld [vmem:[#allocation2 + $0x4a] sm:$0xff]  ;;  %v2480_v25 = vmul.f32 %v3809_v20, %v2460_v21  ;;  %v2481_v4 = vmul.f32 %v3809_v20, %v2461_v9  ;;  %v2635_v43 = vmul.f32 %v3845_v58, %v2460_v21  ;;  %v2513_v55 = vld [vmem:[#allocation2 + $0x52] sm:$0xff]  ;;  %v2135_v40 = vrot.slane %v2127_v57, %v3503_v7 }
 0x15f   : > { %v2892_v60 = vmul.f32 %v4116_v37, %v2868_v6  ;;  %v2532_v42 = vmul.f32 %v3813_v23, %v2512_v52  ;;  %v2687_v8 = vmul.f32 %v3893_v14, %v2512_v52  ;;  %v2636_v34 = vmul.f32 %v3845_v58, %v2461_v9 }
 0x160   : > { %v2496_v44 = vadd.f32 %v2480_v25, %v2444_v61  ;;  %v2651_v32 = vadd.f32 %v2635_v43, %v4156_v15  ;;  %v2790_v5 = vmul.f32 %v3904_v28, %v2460_v21  ;;  %v2791_v27 = vmul.f32 %v3904_v28, %v2461_v9 }
 0x161   : > { %v2914_v36 = vadd.f32 %v4131_v11, %v2892_v60  ;;  %v2497_v49 = vadd.f32 %v2481_v4, %v2445_v50  ;;  %v2533_v38 = vmul.f32 %v3813_v23, %v2513_v55  ;;  %v2842_v6 = vmul.f32 %v4101_v39, %v2512_v52 }
 0x162   : > { %v2548_v26 = vadd.f32 %v2532_v42, %v2496_v44  ;;  %v2703_v61 = vadd.f32 %v2687_v8, %v2651_v32  ;;  %v2806_v57 = vadd.f32 %v2790_v5, %v4159_v48  ;;  %v2807_v15 = vadd.f32 %v2791_v27, %v2755_v46 }
 0x163   : > { %v2930_v59 = vmax.f32 %v2914_v36, 0.0  ;;  %v2688_v25 = vmul.f32 %v3893_v14, %v2513_v55  ;;  %v2843_v43 = vmul.f32 %v4101_v39, %v2513_v55  ;;  %v2652_v50 = vadd.f32 %v2636_v34, %v2600_v51 }
 0x164   : > { %v4286_v60 = vadd.f32 %v2585_v10, %v2548_v26  ;;  %v4288_v21 = vadd.f32 %v2740_v17, %v2703_v61  ;;  %v2858_v9 = vadd.f32 %v2842_v6, %v2806_v57  ;;  %v2817_v4 = vadd.f32 %v2801_v30, %v4201_v29 }
 0x165   : > { %2946 = vst [vmem:[%s4150_s10 + $0x60] sm:$0xff] %v2930_v59  ;;  %v2142_v44 = vrot.slane %v2128_v35, %v3503_v7  ;;  %v2859_v42 = vadd.f32 %v2843_v43, %v2807_v15  ;;  %v1935_v48 = vrot.slane %v1921_v31, %v3503_v7  ;;  %v1936_v46 = vcombine.high %v1928_v18, %v1928_v18 }
 0x166   : > { %v2316_v52 = vcombine.low %v1920_v24, %v1928_v18  ;;  %v2882_v32 = vmul.f32 %v4116_v37, %v2858_v9  ;;  %v2869_v8 = vadd.f32 %v2853_v3, %v2817_v4  ;;  %v1751_v10 = vcombine.high %v3999_v12, %v3999_v12  ;;  %v4470_v9 = vld [vmem:[#allocation11_spill] sm:$0xff] }
 0x167   : > { %v2143_v55 = vcombine.low %v2135_v40, %v2142_v44  ;;  %v2549_v17 = vadd.f32 %v2533_v38, %v2497_v49  ;;  %v2883_v51 = vmul.f32 %v4116_v37, %v2859_v42  ;;  %v1758_v29 = vrot.slane %v3999_v12, %v3503_v7 }
 0x168   : > { %v2330_v36 = vrot.slane %v2316_v52, %v3503_v7  ;;  %v2704_v30 = vadd.f32 %v2688_v25, %v2652_v50  ;;  %v2904_v31 = vadd.f32 %v4131_v11, %v2882_v32  ;;  %v2893_v24 = vmul.f32 %v4116_v37, %v2869_v8 }
 0x169   : > { %2399 = vst [vmem:[#allocation2 + $0x68] sm:$0xff] %v2143_v55  ;;  %v4303_v18 = vcombine.low %v1936_v46, %v1935_v48  ;;  %v2905_v3 = vadd.f32 %v4131_v11, %v2883_v51  ;;  %v2586_v35 = vmul.f32 %v3805_v16, %v2143_v55  ;;  %v1765_v34 = vrot.slane %v1751_v10, %v3503_v7 }
 0x16a   : > { %v2331_v40 = vcombine.low %v2323_v53, %v2330_v36  ;;  %3156 = vst.sshfl [vmem:[#allocation2 + $0x70] sm:$0x3 pattern:$0x76325410] %v1758_v29  ;;  %v2920_v5 = vmax.f32 %v2904_v31, 0.0  ;;  %v2915_v12 = vadd.f32 %v4131_v11, %v2893_v24  ;;  %v2741_v27 = vmul.f32 %v3850_v2, %v2143_v55 }
 0x16b   : > { %v1766_v49 = vcombine.high %v1758_v29, %v1758_v29  ;;  %v2921_v38 = vmax.f32 %v2905_v3, 0.0  ;;  %v1767_v61 = vcombine.high %v1765_v34, %v1765_v34  ;;  %v2602_v59 = vadd.f32 %v2586_v35, %v2549_v17 }
 0x16c   : > { %2413 = vst [vmem:[#allocation2 + $0xd8] sm:$0xff] %v2331_v40  ;;  %v2750_v26 = vmul.f32 %v3850_v2, %v2331_v40  ;;  %2936 = vst [vmem:[%s4150_s10 + $0x10] sm:$0xff] %v2920_v5  ;;  %v2931_v57 = vmax.f32 %v2915_v12, 0.0  ;;  %v2757_v15 = vadd.f32 %v2741_v27, %v2704_v30  ;;  %v1937_v6 = vcombine.high %v1935_v48, %v1935_v48 }
 0x16d   : > { %v2151_v53 = vcombine.low %v1766_v49, %v1765_v34  ;;  %v4314_v25 = vmul.f32 %v3850_v2, %v3881_v62  ;;  %2937 = vst [vmem:[%s4150_s10 + $0x18] sm:$0xff] %v2921_v38  ;;  %v2152_v50 = vcombine.low %v1767_v61, %v3768_v63  ;;  %v1944_v4 = vrot.slane %v4470_v9, %v3503_v7 }
 0x16e   : > { %v4318_v43 = vadd.f32 %v2750_v26, %v4270_v45  ;;  %v2446_v44 = vmul.f32 %v3801_v22, %v4224_v1  ;;  %v2662_v42 = vadd.f32 %v4260_v56, %v4199_v19  ;;  %v2698_v48 = vmul.f32 %v3893_v14, %v4249_v54  ;;  %2947 = vst [vmem:[%s4150_s10 + $0x68] sm:$0xff] %v2931_v57 }
 0x16f   : > { %v2340_v62 = vrot.slane %v4303_v18, %v3503_v7  ;;  %v2159_v63 = vrot.slane %v2151_v53, %v3503_v7  ;;  %v2166_v52 = vrot.slane %v2152_v50, %v3503_v7  ;;  %v1945_v32 = vcombine.high %v1944_v4, %v1944_v4 }
 0x170   : > { %v2462_v45 = vld [vmem:[#allocation2 + $0x61] sm:$0xff]  ;;  %v2333_v8 = vcombine.low %v1937_v6, %v1944_v4  ;;  %v2447_v54 = vmul.f32 %v3801_v22, %v2143_v55 }
 0x171   : > { %v2514_v46 = vld [vmem:[#allocation2 + $0x62] sm:$0xff]  ;;  %v2482_v1 = vmul.f32 %v3809_v20, %v2462_v45  ;;  %v2637_v19 = vmul.f32 %v3845_v58, %v2462_v45  ;;  %v2515_v17 = vld [vmem:[#allocation2 + $0x6a] sm:$0xff]  ;;  %v2792_v36 = vmul.f32 %v3904_v28, %v2462_v45  ;;  %v2167_v29 = vcombine.low %v2159_v63, %v2166_v52  ;;  %3161 = vst.sshfl [vmem:[#allocation2 + $0xe8] sm:$0x3 pattern:$0x76325410] %v1945_v32 }
 0x172   : > { %v2534_v10 = vmul.f32 %v3813_v23, %v2514_v46  ;;  %v2463_v56 = vld [vmem:[#allocation2 + $0x69] sm:$0xff]  ;;  %v2689_v51 = vmul.f32 %v3893_v14, %v2514_v46  ;;  %v2844_v18 = vmul.f32 %v4101_v39, %v2514_v46  ;;  %v2535_v40 = vmul.f32 %v3813_v23, %v2515_v17  ;;  %v4474_v52 = vld [vmem:[#allocation4_spill] sm:$0xff] }
 0x173   : > { %v2483_v30 = vmul.f32 %v3809_v20, %v2463_v56  ;;  %v2498_v31 = vadd.f32 %v2482_v1, %v2446_v44  ;;  %v2653_v24 = vadd.f32 %v2637_v19, %v4286_v60  ;;  %v2638_v3 = vmul.f32 %v3845_v58, %v2463_v56  ;;  %2401 = vst [vmem:[#allocation2 + $0x78] sm:$0xff] %v2167_v29  ;;  %v4472_v44 = vld [vmem:[#allocation5_spill] sm:$0xff]  ;;  %v4473_v46 = vld [vmem:[#allocation7_spill] sm:$0xff] }
 0x174   : > { %v2808_v35 = vadd.f32 %v2792_v36, %v4288_v21  ;;  %v2587_v34 = vmul.f32 %v3805_v16, %v2167_v29  ;;  %v2690_v49 = vmul.f32 %v3893_v14, %v2515_v17  ;;  %v2742_v60 = vmul.f32 %v3850_v2, %v2167_v29  ;;  %v4471_v16 = vld [vmem:[#allocation3_spill] sm:$0xff] }
 0x175   : > { %v2499_v55 = vadd.f32 %v2483_v30, %v2447_v54  ;;  %v2550_v5 = vadd.f32 %v2534_v10, %v2498_v31  ;;  %v2705_v12 = vadd.f32 %v2689_v51, %v2653_v24  ;;  %v2654_v27 = vadd.f32 %v2638_v3, %v2602_v59 }
 0x176   : > { %v2860_v38 = vadd.f32 %v2844_v18, %v2808_v35  ;;  %v2793_v61 = vmul.f32 %v3904_v28, %v2463_v56  ;;  %v2845_v21 = vmul.f32 %v4101_v39, %v2515_v17  ;;  %v2347_v6 = vrot.slane %v2333_v8, %v3503_v7  ;;  %v4475_v8 = vld [vmem:[#allocation10_spill] sm:$0xff] }
 0x177   : > { %v2551_v26 = vadd.f32 %v2535_v40, %v2499_v55  ;;  %v2603_v57 = vadd.f32 %v2587_v34, %v2550_v5  ;;  %v2706_v53 = vadd.f32 %v2690_v49, %v2654_v27  ;;  %v2758_v4 = vadd.f32 %v2742_v60, %v2705_v12  ;;  %v4476_v56 = vld [vmem:[#allocation6_spill] sm:$0xff]  ;;  %v4477_v40 = vld [vmem:[#allocation12_spill] sm:$0xff] }
 0x178   : > { %v2884_v50 = vmul.f32 %v4116_v37, %v2860_v38  ;;  %v2809_v59 = vadd.f32 %v2793_v61, %v2757_v15  ;;  %v2641_v45 = vmul.f32 %v3845_v58, %v4472_v44  ;;  %v2693_v63 = vmul.f32 %v3893_v14, %v4473_v46 }
 0x179   : > { %v2604_v9 = vadd.f32 %v4471_v16, %v2551_v26  ;;  %v2759_v32 = vadd.f32 %v4474_v52, %v2706_v53  ;;  %v2348_v1 = vcombine.low %v2340_v62, %v2347_v6  ;;  %v2796_v10 = vmul.f32 %v3904_v28, %v4472_v44  ;;  %v4478_v26 = vld [vmem:[#allocation9_spill] sm:$0xff] }
 0x17a   : > { %v2906_v7 = vadd.f32 %v4131_v11, %v2884_v50  ;;  %v2861_v54 = vadd.f32 %v2845_v21, %v2809_v59  ;;  %v2797_v15 = vmul.f32 %v3904_v28, %v4476_v56  ;;  %v2714_v17 = vadd.f32 %v2698_v48, %v2662_v42  ;;  %v2464_v51 = vld [vmem:[#allocation2 + $0x79] sm:$0xff] }
 0x17b   : > { %v2656_v19 = vadd.f32 %v4475_v8, %v2604_v9  ;;  %v2516_v36 = vld [vmem:[#allocation2 + $0x7a] sm:$0xff]  ;;  %v2811_v30 = vadd.f32 %v4212_v41, %v2759_v32  ;;  %2414 = vst [vmem:[#allocation2 + $0xe0] sm:$0xff] %v2348_v1  ;;  %v2751_v62 = vmul.f32 %v3850_v2, %v2348_v1  ;;  %v2448_v24 = vmul.f32 %v3801_v22, %v2167_v29 }
 0x17c   : > { %v2922_v31 = vmax.f32 %v2906_v7, 0.0  ;;  %v2484_v18 = vmul.f32 %v3809_v20, %v2464_v51  ;;  %v2639_v3 = vmul.f32 %v3845_v58, %v2464_v51  ;;  %v2536_v35 = vmul.f32 %v3813_v23, %v2516_v36 }
 0x17d   : > { %v2691_v55 = vmul.f32 %v3893_v14, %v2516_v36  ;;  %v2708_v42 = vadd.f32 %v4477_v40, %v2656_v19  ;;  %v2794_v48 = vmul.f32 %v3904_v28, %v2464_v51  ;;  %v2863_v5 = vadd.f32 %v4222_v13, %v2811_v30  ;;  %v4480_v30 = vld [vmem:[#allocation13_spill] sm:$0xff] }
 0x17e   : > { %2938 = vst [vmem:[%s4150_s10 + $0x20] sm:$0xff] %v2922_v31  ;;  %v2500_v41 = vadd.f32 %v2484_v18, %v2448_v24  ;;  %v2655_v34 = vadd.f32 %v2639_v3, %v2603_v57  ;;  %v2885_v12 = vmul.f32 %v4116_v37, %v2861_v54  ;;  %v2846_v58 = vmul.f32 %v4101_v39, %v2516_v36  ;;  %v4479_v54 = vld [vmem:[#allocation8_spill] sm:$0xff] }
 0x17f   : > { %v2761_v22 = vadd.f32 %v4314_v25, %v2708_v42  ;;  %v2810_v20 = vadd.f32 %v2794_v48, %v2758_v4  ;;  %v2767_v29 = vadd.f32 %v2751_v62, %v2714_v17  ;;  %v2887_v14 = vmul.f32 %v4116_v37, %v2863_v5 }
 0x180   : > { %v2552_v23 = vadd.f32 %v2536_v35, %v2500_v41  ;;  %v2707_v27 = vadd.f32 %v2691_v55, %v2655_v34  ;;  %v2907_v49 = vadd.f32 %v4131_v11, %v2885_v12  ;;  %v2848_v38 = vmul.f32 %v4101_v39, %v4473_v46 }
 0x181   : > { %v2849_v13 = vmul.f32 %v4101_v39, %v4478_v26  ;;  %v2813_v60 = vadd.f32 %v2797_v15, %v2761_v22  ;;  %v2862_v61 = vadd.f32 %v2846_v58, %v2810_v20  ;;  %v2909_v53 = vadd.f32 %v4131_v11, %v2887_v14 }
 0x182   : > { %v2605_v25 = vadd.f32 %v4229_v33, %v2552_v23  ;;  %v2760_v57 = vadd.f32 %v4237_v47, %v2707_v27  ;;  %v2923_v21 = vmax.f32 %v2907_v49, 0.0  ;;  %v2782_v6 = vld [vmem:[#allocation2 + $0xd9] sm:$0xff]  ;;  %v2783_v50 = vld [vmem:[#allocation2 + $0xe1] sm:$0xff]  ;;  %v2746_v56 = vmul.f32 %v3850_v2, %v4479_v54 }
 0x183   : > { %v2834_v16 = vld [vmem:[#allocation2 + $0xda] sm:$0xff]  ;;  %v2865_v9 = vadd.f32 %v2849_v13, %v2813_v60  ;;  %v2886_v4 = vmul.f32 %v4116_v37, %v2862_v61  ;;  %v2802_v59 = vmul.f32 %v3904_v28, %v2782_v6  ;;  %v2803_v44 = vmul.f32 %v3904_v28, %v2783_v50  ;;  %v2835_v46 = vld [vmem:[#allocation2 + $0xe2] sm:$0xff] }
 0x184   : > { %v2657_v52 = vadd.f32 %v2641_v45, %v2605_v25  ;;  %v2812_v32 = vadd.f32 %v2796_v10, %v2760_v57  ;;  %v2925_v33 = vmax.f32 %v2909_v53, 0.0  ;;  %2939 = vst [vmem:[%s4150_s10 + $0x28] sm:$0xff] %v2923_v21  ;;  %v2854_v47 = vmul.f32 %v4101_v39, %v2834_v16 }
 0x185   : > { %v2889_v1 = vmul.f32 %v4116_v37, %v2865_v9  ;;  %v2908_v7 = vadd.f32 %v4131_v11, %v2886_v4  ;;  %v2818_v8 = vadd.f32 %v2802_v59, %v4318_v43  ;;  %v2819_v19 = vadd.f32 %v2803_v44, %v2767_v29 }
 0x186   : > { %v2709_v15 = vadd.f32 %v2693_v63, %v2657_v52  ;;  %v2864_v17 = vadd.f32 %v2848_v38, %v2812_v32  ;;  %2941 = vst [vmem:[%s4150_s10 + $0x38] sm:$0xff] %v2925_v33  ;;  %v2855_v45 = vmul.f32 %v4101_v39, %v2835_v46  ;;  %v2798_v62 = vmul.f32 %v3904_v28, %v4480_v30 }
 0x187   : > { %v2911_v10 = vadd.f32 %v4131_v11, %v2889_v1  ;;  %v2924_v51 = vmax.f32 %v2908_v7, 0.0  ;;  %v2870_v36 = vadd.f32 %v2854_v47, %v2818_v8  ;;  %v2850_v63 = vmul.f32 %v4101_v39, %v4121_v0 }
 0x188   : > { %v2762_v31 = vadd.f32 %v2746_v56, %v2709_v15  ;;  %v2888_v43 = vmul.f32 %v4116_v37, %v2864_v17  ;;  %v2871_v24 = vadd.f32 %v2855_v45, %v2819_v19 }
 0x189   : > { %v2927_v18 = vmax.f32 %v2911_v10, 0.0  ;;  %2940 = vst [vmem:[%s4150_s10 + $0x30] sm:$0xff] %v2924_v51  ;;  %v2894_v2 = vmul.f32 %v4116_v37, %v2870_v36 }
 0x18a   : > { %v2814_v3 = vadd.f32 %v2798_v62, %v2762_v31  ;;  %v2910_v35 = vadd.f32 %v4131_v11, %v2888_v43  ;;  %v2895_v28 = vmul.f32 %v4116_v37, %v2871_v24 }
 0x18b   : > { %2943 = vst [vmem:[%s4150_s10 + $0x48] sm:$0xff] %v2927_v18  ;;  %v2916_v55 = vadd.f32 %v4131_v11, %v2894_v2 }
 0x18c   : > { %v2866_v40 = vadd.f32 %v2850_v63, %v2814_v3  ;;  %v2926_v42 = vmax.f32 %v2910_v35, 0.0  ;;  %v2917_v48 = vadd.f32 %v4131_v11, %v2895_v28 }
 0x18d   : > { %v2932_v41 = vmax.f32 %v2916_v55, 0.0 }
 0x18e   : > { %v2890_v34 = vmul.f32 %v4116_v37, %v2866_v40  ;;  %2942 = vst [vmem:[%s4150_s10 + $0x40] sm:$0xff] %v2926_v42  ;;  %v2933_v5 = vmax.f32 %v2917_v48, 0.0 }
 0x18f   : > { %2948 = vst [vmem:[%s4150_s10 + $0x70] sm:$0xff] %v2932_v41 }
 0x190   : > { %v2912_v39 = vadd.f32 %v4131_v11, %v2890_v34  ;;  %2949 = vst [vmem:[%s4150_s10 + $0x78] sm:$0xff] %v2933_v5 }
 0x192   : > { %v2928_v0 = vmax.f32 %v2912_v39, 0.0 }
 0x194   : > { %2944 = vst [vmem:[%s4150_s10 + $0x50] sm:$0xff] %v2928_v0 }
 0x195 PF: > { %s17_s28 = sadd.s32 1, %s3399_s28   ;;  %s4481_s24 = smov %s3391_s26 }
 0x196   : > { %p14_p12 = scmp.ge.s32.totalorder %s17_s28, 6   ;;  %s4482_s25 = smov %s3395_s27 }
 0x197   : > { %s4483_s26 = smov %s4486_s29  ;;  %s4484_s27 = smov %s4490_s30 }
 0x198   :  { %16 = sbr.rel (!%p14_p12) target bundleno = 3 (0x3), region = 86 }

// kernel: dwunit_forward.2
= control target key start
LH: loop header
LB: loop body
LE: loop exit
PB: predicated region body
PF: predicated region fallthrough
CT: control target
= control target key end

     0   :  { %s3362_s18 = smov 0   ;;  %s3364_s19 = smov 0   ;;  %s4322_s0 = inlined_call_operand.vmem [shape: f32[2,16,18,8], index: 0, kind: input, shape index: {}, may-alias: {0,1,2}]   ;;  %s4323_s1 = inlined_call_operand.vmem [shape: f32[2,16,18,8], index: 1, kind: input, shape index: {}, may-alias: {0,1,2}]   ;;  %s4324_s2 = inlined_call_operand.vmem [shape: f32[2,16,18,8], index: 2, kind: input, shape index: {}, may-alias: {0,1,2}]   ;;  %s4325_s3 = inlined_call_operand.vmem [shape: f32[8,128], index: 3, kind: input, shape index: {}]   ;;  %s4326_s4 = inlined_call_operand.vmem [shape: f32[9,128], index: 4, kind: input, shape index: {}]   ;;  %s4327_s5 = inlined_call_operand.vmem [shape: f32[2,2,2,128], index: 5, kind: output, shape index: {}]  }
   0x1   :  { %s3366_s20 = smov 0   ;;  %s3368_s21 = smov 0  }
   0x2   :  { %s3370_s22 = smov 0  }
   0x3 LB: > { %s24_s23 = sadd.s32 1, %s3319_s20  ;;  %s27_s24 = sadd.s32 1, %s3323_s21  ;;  %s3327_s22 = sphi %s3370_s22, %s15_s22   ;;  %s3323_s21 = sphi %s3368_s21, %s4371_s21   ;;  %s3319_s20 = sphi %s3366_s20, %s4370_s20   ;;  %s3315_s19 = sphi %s3364_s19, %s4369_s19   ;;  %s3311_s18 = sphi %s3362_s18, %s4368_s18  }
   0x4   : > { %p25_p0 = scmp.ge.s32.totalorder %s24_s23, 2  ;;  %p3033_p1 = scmp.ge.s32.totalorder %s3327_s22, 1 }
   0x5   : > { %p273_p2 = scmp.lt.s32.totalorder %s3327_s22, 5 }
   0x6   : > { %s4373_s23 = smov (%p25_p0, %s24_s23), 0  ;;  %s4375_s24 = smov (!%p25_p0, %s27_s24), %s3323_s21 }
   0x7   : > { %p274_p3 = pnand %p3033_p1, %p273_p2  ;;  %p29_p4 = scmp.ge.s32.totalorder %s4375_s24, 2 }
   0x9   : > { %s4377_s24 = smov (%p29_p4, %s4375_s24), 0  ;;  %277 = sbr.rel (%p274_p3) target bundleno = 466 (0x1d2), region = 40 }
  0x10   : > { %v872_v0 = vld [vmem:[%s4325_s3] sm:$0xff]  ;;  %s3398_s27 = sshll.u32 %s3311_s18, 3  ;;  %p339_p5 = scmp.lt.s32.totalorder %s3315_s19, 1  ;;  %v3329_v1 = vmov 0.0   ;;  %vm3330_vm0 = vmmov 0   ;;  %v466_v4 = vlaneseq  ;;  %vm1255_vm2 = vcmask 64512  }
  0x11   : > { %3121 = vmatprep.subr.mxu0 %v3329_v1  ;;  %3123 = vmatprep.mubr.msk.f32.mxu0 %vm3330_vm0, %v3329_v1  ;;  %s3035_s28 = sadd.s32 4294967295, %s3398_s27  ;;  %p355_p6 = scmp.lt.s32.totalorder %s3398_s27, 15  ;;  %v3331_v2 = vmov 1983009808   ;;  %vm2889_vm4 = vcmask 1040384  }
  0x12   : > { %3122 = vmatpush3.msra.mxu0 %v872_v0  ;;  %p337_p7 = scmp.gt.s32.totalorder %s3035_s28, 0  ;;  %p3036_p8 = scmp.lt.s32.totalorder %s3035_s28, 15  ;;  %3192 = vmatprep.subr.mxu1 %v3329_v1  ;;  %v464_v3 = vunpack.c.l.s4 %v3331_v2  ;;  %v3416_v6 = vshrl.u32 %v466_v4, 7 }
  0x13   : > { %s4379_s19 = smov (!%p339_p5, %s3315_s19), 1  ;;  %3193 = vmatpush3.msra.mxu1 %v872_v0  ;;  %3159 = vmatprep.mubr.msk.f32.mxu1 %vm3330_vm0, %v3329_v1  ;;  %p388_p9 = scmp.eq.s32.totalorder %s3311_s18, 0 }
  0x14   : > { %s4381_s28 = smov (!%p337_p7, %s3035_s28), 0  ;;  %s3411_s29 = smul.u32 48, %s4379_s19  ;;  %v465_v5 = vunpack.c.0.s8 %v464_v3 }
  0x15   : > { %s4383_s28 = smov (!%p3036_p8, %s4381_s28), 15  ;;  %p398_p11 = scmp.eq.s32.totalorder %s3311_s18, 1 }
  0x16   : > { %s356_s30 = scalar_select %p355_p6, %s3398_s27, 15  ;;  %v3427_v7 = vsub.s32 %v465_v5, %v3416_v6 }
  0x17   : > { %s3194_s6 = smul.u32 3, %s4383_s28  ;;  %s364_s28 = sadd.s32 8, %s3398_s27 }
  0x18   : > { %s3196_s7 = smul.u32 3, %s356_s30  ;;  %p3509_p10 = scmp.lt.s32.totalorder %s364_s28, 15 }
  0x19   : > { %s345_s8 = sadd.s32 %s3411_s29, %s3194_s6  ;;  %p382_p12 = scmp.lt.s32.totalorder %s3311_s18, 1 }
  0x1a   : > { %s3041_s9 = sshll.u32 %s345_s8, 3  ;;  %s359_s10 = sadd.s32 %s3196_s7, %s3411_s29 }
  0x1b   : > { %s3043_s11 = sshll.u32 %s359_s10, 3  ;;  %s3432_s17 = scalar_lea.vmem %s4322_s0, %s3041_s9 }
  0x1c   : > { %s3424_s14 = scalar_lea.vmem %s4323_s1, %s3043_s11  ;;  %v391_v16 = vld [vmem:[%s3432_s17 + $0x10] sm:$0x3]  ;;  %s4385_s28 = smov (!%p3509_p10, %s364_s28), 15 }
  0x1d   : > { %v408_v8 = vld [vmem:[%s3424_s14] sm:$0xff]  ;;  %v409_v9 = vld [vmem:[%s3424_s14 + $0x8] sm:$0xff]  ;;  %s392_s25 = scalar_select %p388_p9, 1, 0  ;;  %v3451_v24 = vld [vmem:[%s3424_s14 + $0x18] sm:$0xff] }
  0x1e   : > { %v3437_v10 = vld [vmem:[%s3424_s14 + $0x60] sm:$0xff]  ;;  %v503_v11 = vcombine.high %v408_v8, %v408_v8  ;;  %v510_v12 = vrot.slane %v408_v8, %v3427_v7  ;;  %v520_v13 = vcombine.high %v409_v9, %v409_v9  ;;  %v527_v14 = vrot.slane %v409_v9, %v3427_v7  ;;  %v421_v15 = vld [vmem:[%s3424_s14 + $0x68] sm:$0xff]  ;;  %s3242_s26 = scalar_select %p388_p9, 0, 255  ;;  %v423_v62 = vld [vmem:[%s3424_s14 + $0x78] sm:$0xff] }
  0x1f   : > { %v667_v17 = vcombine.high %v3437_v10, %v3437_v10  ;;  %v684_v18 = vcombine.high %v421_v15, %v421_v15  ;;  %v691_v19 = vrot.slane %v421_v15, %v3427_v7  ;;  %v393_v20 = vstv %s392_s25  ;;  %v3051_v54 = vld.sshfl [vmem:[%s3424_s14 + $0x10] sm:$0x3 pattern:$0x76325410]  ;;  %v412_v5 = vld [vmem:[%s3424_s14 + $0x20] sm:$0xff]  ;;  %s4387_s28 = smov (!%p3509_p10, %s4385_s28), 15 }
  0x20   : > { %v517_v21 = vrot.slane %v503_v11, %v3427_v7  ;;  %v518_v22 = vcombine.high %v510_v12, %v510_v12  ;;  %v534_v23 = vrot.slane %v520_v13, %v3427_v7  ;;  %vm394_vm1 = vcmp.eq.s32.totalorder %v393_v20, 1  ;;  %v3243_v36 = vld [vmem:[%s3432_s17] sm:%s3242_s26]  ;;  %v3251_v43 = vld [vmem:[%s3432_s17 + $0x8] sm:%s3242_s26]  ;;  %s3562_s27 = smul.u32 3, %s4387_s28  ;;  %s4389_s18 = smov (!%p382_p12, %s3311_s18), 1 }
  0x21   : > { %v535_v25 = vcombine.high %v527_v14, %v527_v14  ;;  %v3454_v26 = vrot.slane %v667_v17, %v3427_v7  ;;  %v698_v27 = vrot.slane %v684_v18, %v3427_v7  ;;  %v397_v28 = vsel %vm394_vm1, 0.0, %v391_v16  ;;  %v3055_v4 = vld.sshfl [vmem:[%s3424_s14 + $0x70] sm:$0x3 pattern:$0x76325410]  ;;  %s3049_s16 = sshll.u32 %s4379_s19, 1 }
  0x22   : > { %v908_v29 = vcombine.low %v518_v22, %v517_v21  ;;  %v519_v30 = vcombine.high %v517_v21, %v517_v21  ;;  %v699_v31 = vcombine.high %v691_v19, %v691_v19  ;;  %v502_v32 = vrot.slane %v397_v28, %v3427_v7  ;;  %v424_v21 = vld [vmem:[%s3424_s14 + $0x80] sm:$0xff]  ;;  %v414_v28 = vld [vmem:[%s3424_s14 + $0x30] sm:$0xff]  ;;  %s3568_s6 = scalar_select %p398_p11, 1, 0 }
  0x23   : > { %v925_v33 = vcombine.low %v535_v25, %v534_v23  ;;  %v683_v34 = vcombine.high %v3454_v26, %v3454_v26  ;;  %v551_v35 = vrot.slane %v3451_v24, %v3427_v7  ;;  %v536_v40 = vcombine.high %v534_v23, %v534_v23  ;;  %s373_s7 = sadd.s32 %s3562_s27, %s3411_s29  ;;  %s385_s17 = sadd.s32 %s3049_s16, %s4389_s18 }
  0x24   : > { %v922_v37 = vrot.slane %v908_v29, %v3427_v7  ;;  %v924_v38 = vcombine.low %v519_v30, %v527_v14  ;;  %v1078_v39 = vcombine.low %v699_v31, %v698_v27  ;;  %v462_v41 = vcombine.high %v3243_v36, %v3243_v36  ;;  %s3048_s29 = sshll.u32 %s373_s7, 3  ;;  %s3050_s25 = sshll.u32 %s385_s17, 1 }
  0x25   : > { %v469_v42 = vrot.slane %v3243_v36, %v3427_v7  ;;  %v907_v44 = vcombine.low %v502_v32, %v510_v12  ;;  %v939_v45 = vrot.slane %v925_v33, %v3427_v7  ;;  %v479_v46 = vcombine.high %v3251_v43, %v3251_v43  ;;  %v3052_v36 = vld.sshfl [vmem:[%s3424_s14 + $0x28] sm:$0x3 pattern:$0x76325410]  ;;  %s3601_s8 = scalar_select %p398_p11, 0, 255 }
  0x26   : > { %v486_v47 = vrot.slane %v3251_v43, %v3427_v7  ;;  %v932_v48 = vrot.slane %v924_v38, %v3427_v7  ;;  %v1077_v49 = vcombine.low %v683_v34, %v691_v19  ;;  %v476_v50 = vrot.slane %v462_v41, %v3427_v7  ;;  %s3611_s11 = scalar_lea.vmem %s4324_s2, %s3048_s29  ;;  %s387_s30 = scalar_lea.vmem %s4327_s5, %s3050_s25 }
  0x27   : > { %v477_v51 = vcombine.high %v469_v42, %v469_v42  ;;  %v915_v52 = vrot.slane %v907_v44, %v3427_v7  ;;  %v1092_v53 = vrot.slane %v1078_v39, %v3427_v7  ;;  %v493_v55 = vrot.slane %v479_v46, %v3427_v7  ;;  %v426_v44 = vld [vmem:[%s3424_s14 + $0x90] sm:$0xff] }
  0x28   : > { %v494_v56 = vcombine.high %v486_v47, %v486_v47  ;;  %v1085_v57 = vrot.slane %v1077_v49, %v3427_v7  ;;  %v559_v58 = vcombine.high %v551_v35, %v551_v35  ;;  %v478_v59 = vcombine.high %v476_v50, %v476_v50 }
  0x29   : > { %v873_v60 = vcombine.low %v469_v42, %v477_v51  ;;  %v3477_v61 = vcombine.low %v932_v48, %v939_v45  ;;  %v495_v63 = vcombine.high %v493_v55, %v493_v55  ;;  %v3480_v3 = vcombine.low %v536_v40, %v3051_v54 }
  0x2a   : > { %v890_v0 = vcombine.low %v486_v47, %v494_v56  ;;  %v1093_v2 = vcombine.low %v1085_v57, %v1092_v53  ;;  %v874_v8 = vcombine.low %v476_v50, %v478_v59  ;;  %v3485_v11 = vcombine.low %v915_v52, %v922_v37  ;;  %v3056_v53 = vld.sshfl [vmem:[%s3424_s14 + $0x88] sm:$0x3 pattern:$0x76325410] }
  0x2b   : > { %v881_v9 = vrot.slane %v873_v60, %v3427_v7  ;;  %v700_v12 = vcombine.high %v698_v27, %v698_v27  ;;  %v891_v13 = vcombine.low %v493_v55, %v495_v63  ;;  %v942_v15 = vcombine.low %v551_v35, %v559_v58  ;;  %v415_v63 = vld [vmem:[%s3424_s14 + $0x38] sm:$0xff] }
  0x2c   : > { %v898_v14 = vrot.slane %v890_v0, %v3427_v7  ;;  %3160 = vmatmul.mubr.msk.f32.vlgmr.msra.gmra.mrb[0].mxu1 %vm1255_vm2, %v1093_v2  ;;  %v715_v16 = vrot.slane %v423_v62, %v3427_v7  ;;  %v888_v17 = vrot.slane %v874_v8, %v3427_v7  ;;  %v544_v19 = vcombine.high %v3451_v24, %v3451_v24 }
  0x2d   : > { %3162 = vmatprep.mubr.msk.f32.mxu1 %vm3330_vm0, %v3329_v1  ;;  %v1094_v18 = vcombine.low %v700_v12, %v3055_v4  ;;  %v568_v20 = vrot.slane %v412_v5, %v3427_v7  ;;  %v905_v22 = vrot.slane %v891_v13, %v3427_v7  ;;  %v949_v23 = vrot.slane %v3480_v3, %v3427_v7  ;;  %v427_v13 = vld [vmem:[%s3424_s14 + $0x98] sm:$0xff] }
  0x2e   : > { %v723_v25 = vcombine.high %v715_v16, %v715_v16  ;;  %v708_v27 = vcombine.high %v423_v62, %v423_v62  ;;  %v889_v29 = vcombine.low %v881_v9, %v888_v17  ;;  %v558_v31 = vrot.slane %v544_v19, %v3427_v7 }
  0x2f   : > { %v1102_v30 = vrot.slane %v1094_v18, %v3427_v7  ;;  %v576_v24 = vcombine.high %v568_v20, %v568_v20  ;;  %v906_v32 = vcombine.low %v898_v14, %v905_v22  ;;  %v732_v35 = vrot.slane %v424_v21, %v3427_v7 }
  0x30   : > { %v1095_v33 = vcombine.low %v715_v16, %v723_v25  ;;  %v722_v34 = vrot.slane %v708_v27, %v3427_v7  ;;  %3124 = vmatmul.mubr.msk.f32.vlgmr.msra.gmra.mrb[0].mxu0 %vm1255_vm2, %v889_v29  ;;  %v560_v37 = vcombine.high %v558_v31, %v558_v31  ;;  %v561_v39 = vcombine.high %v412_v5, %v412_v5 }
  0x31   : > { %v959_v38 = vcombine.low %v568_v20, %v576_v24  ;;  %v592_v40 = vrot.slane %v414_v28, %v3427_v7  ;;  %3126 = vmatprep.mubr.msk.f32.mxu0 %vm3330_vm0, %v3329_v1  ;;  %v740_v43 = vcombine.high %v732_v35, %v732_v35  ;;  %v725_v45 = vcombine.high %v424_v21, %v424_v21 }
  0x32   : > { %v1109_v41 = vrot.slane %v1095_v33, %v3427_v7  ;;  %v724_v42 = vcombine.high %v722_v34, %v722_v34  ;;  %v956_v46 = vrot.slane %v942_v15, %v3427_v7  ;;  %v958_v47 = vcombine.low %v558_v31, %v560_v37 }
  0x33   : > { %v575_v48 = vrot.slane %v561_v39, %v3427_v7  ;;  %v976_v49 = vcombine.low %v3052_v36, %v592_v40  ;;  %v1112_v52 = vcombine.low %v732_v35, %v740_v43  ;;  %v739_v54 = vrot.slane %v725_v45, %v3427_v7 }
  0x34   : > { %v1110_v50 = vcombine.low %v1102_v30, %v1109_v41  ;;  %v1111_v51 = vcombine.low %v722_v34, %v724_v42  ;;  %3127 = vmatmul.mubr.msk.f32.gmra.mrb[2].mxu0 %vm1255_vm2, %v906_v32  ;;  %v966_v55 = vrot.slane %v958_v47, %v3427_v7  ;;  %v973_v56 = vrot.slane %v959_v38, %v3427_v7  ;;  %v417_v30 = vld [vmem:[%s3424_s14 + $0x48] sm:$0xff]  ;;  %v3053_v34 = vld.sshfl [vmem:[%s3424_s14 + $0x40] sm:$0x3 pattern:$0x76325410] }
  0x35   : > { %v577_v57 = vcombine.high %v575_v48, %v575_v48  ;;  %v756_v58 = vrot.slane %v426_v44, %v3427_v7  ;;  %3129 = vmatprep.mubr.msk.f32.mxu0 %vm3330_vm0, %v3329_v1  ;;  %v1126_v60 = vrot.slane %v1112_v52, %v3427_v7  ;;  %v741_v62 = vcombine.high %v739_v54, %v739_v54 }
  0x36   : > { %3163 = vmatmul.mubr.msk.f32.gmra.mrb[2].mxu1 %vm1255_vm2, %v1110_v50  ;;  %v1119_v59 = vrot.slane %v1111_v51, %v3427_v7  ;;  %v957_v0 = vcombine.low %v949_v23, %v956_v46  ;;  %v990_v2 = vrot.slane %v976_v49, %v3427_v7  ;;  %v585_v4 = vcombine.high %v414_v28, %v414_v28  ;;  %v429_v46 = vld [vmem:[%s3424_s14 + $0xa8] sm:$0xff]  ;;  %v418_v51 = vld [vmem:[%s3424_s14 + $0x50] sm:$0xff] }
  0x37   : > { %3165 = vmatprep.mubr.msk.f32.mxu1 %vm3330_vm0, %v3329_v1  ;;  %v1129_v3 = vcombine.low %v3056_v53, %v756_v58  ;;  %v975_v8 = vcombine.low %v575_v48, %v577_v57  ;;  %v1128_v9 = vcombine.low %v739_v54, %v741_v62  ;;  %v600_v12 = vcombine.high %v592_v40, %v592_v40  ;;  %v3057_v40 = vld.sshfl [vmem:[%s3424_s14 + $0xa0] sm:$0x3 pattern:$0x76325410] }
  0x38   : > { %v1127_v5 = vcombine.low %v1119_v59, %v1126_v60  ;;  %3130 = vmatmul.mubr.msk.f32.gmra.mrb[4].mxu0 %vm1255_vm2, %v3485_v11  ;;  %v599_v15 = vrot.slane %v585_v4, %v3427_v7  ;;  %v609_v16 = vrot.slane %v415_v63, %v3427_v7  ;;  %v749_v17 = vcombine.high %v426_v44, %v426_v44 }
  0x39   : > { %v1143_v14 = vrot.slane %v1129_v3, %v3427_v7  ;;  %3132 = vmatprep.mubr.msk.f32.mxu0 %vm3330_vm0, %v3329_v1  ;;  %v974_v18 = vcombine.low %v966_v55, %v973_v56  ;;  %v1136_v19 = vrot.slane %v1128_v9, %v3427_v7  ;;  %v764_v20 = vcombine.high %v756_v58, %v756_v58 }
  0x3a   : > { %3166 = vmatmul.mubr.msk.f32.gmra.mrb[4].mxu1 %vm1255_vm2, %v1127_v5  ;;  %v601_v11 = vcombine.high %v599_v15, %v599_v15  ;;  %v992_v21 = vcombine.low %v600_v12, %v599_v15  ;;  %v763_v22 = vrot.slane %v749_v17, %v3427_v7  ;;  %v773_v23 = vrot.slane %v427_v13, %v3427_v7  ;;  %v430_v5 = vld [vmem:[%s3424_s14 + $0xb0] sm:$0xff] }
  0x3b   : > { %3168 = vmatprep.mubr.msk.f32.mxu1 %vm3330_vm0, %v3329_v1  ;;  %v983_v25 = vrot.slane %v975_v8, %v3427_v7  ;;  %v1144_v27 = vcombine.low %v1136_v19, %v1143_v14  ;;  %v602_v28 = vcombine.high %v415_v63, %v415_v63  ;;  %v766_v29 = vcombine.high %v427_v13, %v427_v13 }
  0x3c   : > { %3133 = vmatmul.mubr.msk.f32.gmra.mrb[6].mxu0 %vm1255_vm2, %v3477_v61  ;;  %v993_v31 = vcombine.low %v601_v11, %v609_v16  ;;  %v765_v24 = vcombine.high %v763_v22, %v763_v22  ;;  %v1145_v32 = vcombine.low %v764_v20, %v763_v22  ;;  %v617_v33 = vcombine.high %v609_v16, %v609_v16 }
  0x3d   : > { %3135 = vmatprep.mubr.msk.f32.mxu0 %vm3330_vm0, %v3329_v1  ;;  %v616_v35 = vrot.slane %v602_v28, %v3427_v7  ;;  %v780_v61 = vrot.slane %v766_v29, %v3427_v7  ;;  %v781_v36 = vcombine.high %v773_v23, %v773_v23  ;;  %v1000_v37 = vrot.slane %v992_v21, %v3427_v7 }
  0x3e   : > { %3169 = vmatmul.mubr.msk.f32.gmra.mrb[6].mxu1 %vm1255_vm2, %v1144_v27  ;;  %v1146_v38 = vcombine.low %v765_v24, %v773_v23  ;;  %v1153_v39 = vrot.slane %v1145_v32, %v3427_v7  ;;  %v626_v41 = vcombine.high %v417_v30, %v417_v30  ;;  %v1007_v42 = vrot.slane %v993_v31, %v3427_v7 }
  0x3f   : > { %3171 = vmatprep.mubr.msk.f32.mxu1 %vm3330_vm0, %v3329_v1  ;;  %v618_v43 = vcombine.high %v616_v35, %v616_v35  ;;  %v782_v44 = vcombine.high %v780_v61, %v780_v61  ;;  %v1162_v45 = vcombine.low %v781_v36, %v780_v61  ;;  %v991_v47 = vcombine.low %v983_v25, %v990_v2  ;;  %v3275_v25 = vld [vmem:[%s3611_s11] sm:%s3601_s8]  ;;  %v3058_v36 = vld.sshfl [vmem:[%s3424_s14 + $0xb8] sm:$0x3 pattern:$0x76325410] }
  0x40   : > { %3136 = vmatmul.mubr.msk.f32.gmra.mrb[8].mxu0 %vm1255_vm2, %v957_v0  ;;  %v1160_v48 = vrot.slane %v1146_v38, %v3427_v7  ;;  %v633_v49 = vrot.slane %v417_v30, %v3427_v7  ;;  %v640_v50 = vrot.slane %v626_v41, %v3427_v7  ;;  %v1009_v52 = vcombine.low %v617_v33, %v616_v35 }
  0x41   : > { %3138 = vmatprep.mubr.msk.f32.mxu0 %vm3330_vm0, %v3329_v1  ;;  %v1010_v53 = vcombine.low %v618_v43, %v3053_v34  ;;  %v1163_v54 = vcombine.low %v782_v44, %v3057_v40  ;;  %v1170_v55 = vrot.slane %v1162_v45, %v3427_v7  ;;  %v790_v59 = vcombine.high %v429_v46, %v429_v46  ;;  %v401_v34 = vld [vmem:[%s3611_s11 + $0x10] sm:$0x3] }
  0x42   : > { %v1161_v56 = vcombine.low %v1153_v39, %v1160_v48  ;;  %v641_v57 = vcombine.high %v633_v49, %v633_v49  ;;  %v642_v58 = vcombine.high %v640_v50, %v640_v50  ;;  %v1008_v60 = vcombine.low %v1000_v37, %v1007_v42  ;;  %v3054_v42 = vld.sshfl [vmem:[%s3424_s14 + $0x58] sm:$0x3 pattern:$0x76325410] }
  0x43   : > { %v1177_v62 = vrot.slane %v1163_v54, %v3427_v7  ;;  %v797_v63 = vrot.slane %v429_v46, %v3427_v7  ;;  %v643_v0 = vcombine.high %v418_v51, %v418_v51  ;;  %v804_v4 = vrot.slane %v790_v59, %v3427_v7  ;;  %v3283_v46 = vld [vmem:[%s3611_s11 + $0x8] sm:%s3601_s8] }
  0x44   : > { %3139 = vmatmul.mubr.msk.f32.gmra.mrb[10].mxu0 %vm1255_vm2, %v974_v18  ;;  %3172 = vmatmul.mubr.msk.f32.gmra.mrb[8].mxu1 %vm1255_vm2, %v1161_v56  ;;  %v1026_v2 = vcombine.low %v633_v49, %v641_v57  ;;  %v1027_v3 = vcombine.low %v640_v50, %v642_v58  ;;  %v1017_v8 = vrot.slane %v1009_v52, %v3427_v7  ;;  %v403_v13 = vstv %s3568_s6 }
  0x45   : > { %3141 = vmatprep.mubr.msk.f32.mxu0 %vm3330_vm0, %v3329_v1  ;;  %3174 = vmatprep.mubr.msk.f32.mxu1 %vm3330_vm0, %v3329_v1  ;;  %v1178_v9 = vcombine.low %v1170_v55, %v1177_v62  ;;  %v805_v12 = vcombine.high %v797_v63, %v797_v63  ;;  %v1024_v14 = vrot.slane %v1010_v53, %v3427_v7  ;;  %vm3630_vm3 = vcmp.eq.s32.totalorder %v403_v13, 1 }
  0x46   : > { %v1034_v15 = vrot.slane %v1026_v2, %v3427_v7  ;;  %v806_v16 = vcombine.high %v804_v4, %v804_v4  ;;  %v650_v17 = vrot.slane %v418_v51, %v3427_v7  ;;  %v657_v19 = vrot.slane %v643_v0, %v3427_v7 }
  0x47   : > { %v1179_v18 = vcombine.low %v797_v63, %v805_v12  ;;  %v807_v20 = vcombine.high %v430_v5, %v430_v5  ;;  %v814_v11 = vrot.slane %v430_v5, %v3427_v7  ;;  %v1041_v21 = vrot.slane %v1027_v3, %v3427_v7 }
  0x48   : > { %3142 = vmatmul.mubr.msk.f32.gmra.mrb[12].mxu0 %vm1255_vm2, %v991_v47  ;;  %3175 = vmatmul.mubr.msk.f32.gmra.mrb[10].mxu1 %vm1255_vm2, %v1178_v9  ;;  %v1180_v22 = vcombine.low %v804_v4, %v806_v16  ;;  %v658_v23 = vcombine.high %v650_v17, %v650_v17  ;;  %v659_v28 = vcombine.high %v657_v19, %v657_v19  ;;  %v407_v47 = vsel %vm3630_vm3, 0.0, %v401_v34 }
  0x49   : > { %3144 = vmatprep.mubr.msk.f32.mxu0 %vm3330_vm0, %v3329_v1  ;;  %3177 = vmatprep.mubr.msk.f32.mxu1 %vm3330_vm0, %v3329_v1  ;;  %v1187_v27 = vrot.slane %v1179_v18, %v3427_v7  ;;  %v821_v29 = vrot.slane %v807_v20, %v3427_v7  ;;  %v822_v32 = vcombine.high %v814_v11, %v814_v11 }
  0x4a   : > { %v1194_v31 = vrot.slane %v1180_v22, %v3427_v7  ;;  %v1043_v24 = vcombine.low %v650_v17, %v658_v23  ;;  %v674_v33 = vrot.slane %v3437_v10, %v3427_v7  ;;  %v1044_v35 = vcombine.low %v657_v19, %v659_v28 }
  0x4b   : > { %v823_v61 = vcombine.high %v821_v29, %v821_v29  ;;  %v831_v37 = vcombine.high %v3275_v25, %v3275_v25  ;;  %v838_v38 = vrot.slane %v3275_v25, %v3427_v7  ;;  %v1025_v39 = vcombine.low %v1017_v8, %v1024_v14 }
  0x4c   : > { %3145 = vmatmul.mubr.msk.f32.gmra.mrb[14].mxu0 %vm1255_vm2, %v1008_v60  ;;  %v1195_v40 = vcombine.low %v1187_v27, %v1194_v31  ;;  %v1196_v41 = vcombine.low %v814_v11, %v822_v32  ;;  %v682_v43 = vcombine.high %v674_v33, %v674_v33  ;;  %v1051_v10 = vrot.slane %v1043_v24, %v3427_v7  ;;  %v3699_v32 = vld [vmem:[%s4326_s4] sm:$0xff] }
  0x4d   : > { %3147 = vmatprep.mubr.msk.f32.mxu0 %vm3330_vm0, %v3329_v1  ;;  %v1197_v44 = vcombine.low %v821_v29, %v823_v61  ;;  %v845_v45 = vrot.slane %v831_v37, %v3427_v7  ;;  %v1058_v48 = vrot.slane %v1044_v35, %v3427_v7  ;;  %v846_v50 = vcombine.high %v838_v38, %v838_v38 }
  0x4e   : > { %3178 = vmatmul.mubr.msk.f32.gmra.mrb[12].mxu1 %vm1255_vm2, %v1195_v40  ;;  %v1204_v49 = vrot.slane %v1196_v41, %v3427_v7  ;;  %v1213_v51 = vcombine.low %v3058_v36, %v838_v38  ;;  %v1042_v52 = vcombine.low %v1034_v15, %v1041_v21  ;;  %v1060_v54 = vcombine.low %v3054_v42, %v674_v33 }
  0x4f   : > { %3180 = vmatprep.mubr.msk.f32.mxu1 %vm3330_vm0, %v3329_v1  ;;  %v1211_v53 = vrot.slane %v1197_v44, %v3427_v7  ;;  %v847_v55 = vcombine.high %v845_v45, %v845_v45  ;;  %v1061_v56 = vcombine.low %v682_v43, %v3454_v26  ;;  %v1214_v57 = vcombine.low %v846_v50, %v845_v45 }
  0x50   : > { %3148 = vmatmul.mubr.msk.f32.gmra.mrb[16].mxu0 %vm1255_vm2, %v1025_v39  ;;  %v1221_v58 = vrot.slane %v1213_v51, %v3427_v7  ;;  %v848_v59 = vcombine.high %v3283_v46, %v3283_v46  ;;  %v855_v62 = vrot.slane %v3283_v46, %v3427_v7  ;;  %v1059_v63 = vcombine.low %v1051_v10, %v1058_v48 }
  0x51   : > { %3150 = vmatprep.mubr.msk.f32.mxu0 %vm3330_vm0, %v3329_v1  ;;  %v1212_v60 = vcombine.low %v1204_v49, %v1211_v53  ;;  %v1228_v0 = vrot.slane %v1214_v57, %v3427_v7  ;;  %v1068_v3 = vrot.slane %v1060_v54, %v3427_v7  ;;  %v871_v5 = vrot.slane %v407_v47, %v3427_v7 }
  0x52   : > { %v862_v2 = vrot.slane %v848_v59, %v3427_v7  ;;  %v863_v26 = vcombine.high %v855_v62, %v855_v62  ;;  %v1230_v4 = vcombine.low %v847_v55, %v855_v62  ;;  %v1075_v8 = vrot.slane %v1061_v56, %v3427_v7 }
  0x53   : > { %3181 = vmatmul.mubr.msk.f32.gmra.mrb[14].mxu1 %vm1255_vm2, %v1212_v60  ;;  %v1229_v9 = vcombine.low %v1221_v58, %v1228_v0  ;;  %v2518_v42 = vsub.s32 3, %v3416_v6  ;;  %v2413_v59 = vsub.s32 1, %v3416_v6  ;;  %v2465_v60 = vsub.s32 2, %v3416_v6 }
  0x54   : > { %3151 = vmatmul.mubr.msk.f32.gmra.mrb[18].mxu0 %vm1255_vm2, %v1042_v52  ;;  %3183 = vmatprep.mubr.msk.f32.mxu1 %vm3330_vm0, %v3329_v1  ;;  %v864_v12 = vcombine.high %v862_v2, %v862_v2  ;;  %v1231_v13 = vcombine.low %v863_v26, %v862_v2  ;;  %v1238_v14 = vrot.slane %v1230_v4, %v3427_v7 }
  0x55   : > { %3153 = vmatprep.mubr.msk.f32.mxu0 %vm3330_vm0, %v3329_v1  ;;  %v1076_v17 = vcombine.low %v1068_v3, %v1075_v8 }
  0x56   : > { %v1245_v15 = vrot.slane %v1231_v13, %v3427_v7  ;;  %v1247_v16 = vcombine.low %v864_v12, %v871_v5  ;;  %v2570_v12 = vsub.s32 4, %v3416_v6 }
  0x57   : > { %3184 = vmatmul.mubr.msk.f32.gmra.mrb[16].mxu1 %vm1255_vm2, %v1229_v9  ;;  %v3718_v9 = vrot.slane %v3699_v32, %v2518_v42 }
  0x58   : > { %3154 = vmatmul.mubr.msk.f32.gmra.mrb[20].mxu0 %vm1255_vm2, %v1059_v63  ;;  %3186 = vmatprep.mubr.msk.f32.mxu1 %vm3330_vm0, %v3329_v1  ;;  %v1246_v18 = vcombine.low %v1238_v14, %v1245_v15  ;;  %v1254_v19 = vrot.slane %v1247_v16, %v3427_v7 }
  0x59   : > { %3156 = vmatprep.mubr.msk.f32.mxu0 %vm3330_vm0, %v3329_v1 }
  0x5b   : > { %3187 = vmatmul.mubr.msk.f32.gmra.mrb[18].mxu1 %vm1255_vm2, %v1246_v18 }
  0x5c   : > { %3157 = vmatmul.mubr.msk.f32.gmra.mrb[22].mxu0 %vm1255_vm2, %v1076_v17  ;;  %3189 = vmatprep.mubr.msk.f32.mxu1 %vm3330_vm0, %v3329_v1  ;;  %v2377_v1 = vsub.s32 0, %v3416_v6 }
  0x5e   : > { %v3703_v41 = vrot.slane %v3699_v32, %v2377_v1 }
  0x5f   : > { %3190 = vmatmul.mubr.msk.f32.gmra.mrb[20].mxu1 %vm1255_vm2, %v1254_v19 }
  0xff   : > { %v1428_v20 = vpop.f32.mrb[0].mxu1 }
 0x100   : > { %v1709_v11 = vcombine.high %v1428_v20, %v1428_v20  ;;  %v3688_v21 = vrot.slane %v1428_v20, %v3427_v7  ;;  %v3161_v22 = vpop.f32.mrb[1].mxu1  ;;  %v3728_v20 = vrot.slane %v3699_v32, %v2413_v59 }
 0x102   : > { %v1723_v25 = vrot.slane %v1709_v11, %v3427_v7  ;;  %v1724_v27 = vcombine.high %v3688_v21, %v3688_v21  ;;  %v3731_v11 = vrot.slane %v3699_v32, %v2465_v60 }
 0x103   : > { %v1368_v23 = vpop.f32.mrb[0].mxu0 }
 0x104   : > { %v1505_v28 = vcombine.high %v1368_v23, %v1368_v23  ;;  %v1512_v29 = vrot.slane %v1368_v23, %v3427_v7  ;;  %v3125_v30 = vpop.f32.mrb[1].mxu0  ;;  %v2109_v34 = vcombine.low %v1724_v27, %v1723_v25  ;;  %v1725_v35 = vcombine.high %v1723_v25, %v1723_v25 }
 0x106   : > { %v1519_v31 = vrot.slane %v1505_v28, %v3427_v7  ;;  %v1520_v24 = vcombine.high %v1512_v29, %v1512_v29  ;;  %v2117_v50 = vrot.slane %v2109_v34, %v3427_v7 }
 0x107   : > { %v1373_v33 = vpop.f32.mrb[2].mxu0 }
 0x108   : > { %v1521_v61 = vcombine.high %v1519_v31, %v1519_v31  ;;  %v1887_v36 = vcombine.low %v1512_v29, %v1520_v24  ;;  %v1522_v37 = vcombine.high %v1373_v33, %v1373_v33  ;;  %v1529_v38 = vrot.slane %v1373_v33, %v3427_v7  ;;  %v3128_v39 = vpop.f32.mrb[3].mxu0 }
 0x109   : > { %v1433_v40 = vpop.f32.mrb[2].mxu1  ;;  %v2622_v29 = vsub.s32 5, %v3416_v6 }
 0x10a   : > { %v1733_v43 = vrot.slane %v1433_v40, %v3427_v7  ;;  %v3164_v10 = vpop.f32.mrb[3].mxu1  ;;  %v1888_v44 = vcombine.low %v1519_v31, %v1521_v61  ;;  %v1536_v45 = vrot.slane %v1522_v37, %v3427_v7  ;;  %v1537_v46 = vcombine.high %v1529_v38, %v1529_v38 }
 0x10b   : > { %v1726_v47 = vcombine.high %v1433_v40, %v1433_v40  ;;  %v1895_v48 = vrot.slane %v1887_v36, %v3427_v7  ;;  %v1378_v49 = vpop.f32.mrb[4].mxu0  ;;  %v3740_v37 = vrot.slane %v3699_v32, %v2570_v12  ;;  %v3756_v60 = vrot.slane %v3699_v32, %v2622_v29 }
 0x10c   : > { %v1741_v51 = vcombine.high %v1733_v43, %v1733_v43  ;;  %v2110_v52 = vcombine.low %v1725_v35, %v1733_v43  ;;  %v1902_v53 = vrot.slane %v1888_v44, %v3427_v7  ;;  %v1538_v54 = vcombine.high %v1536_v45, %v1536_v45  ;;  %v3131_v57 = vpop.f32.mrb[5].mxu0 }
 0x10d   : > { %v1904_v55 = vcombine.low %v1529_v38, %v1537_v46  ;;  %v1539_v56 = vcombine.high %v1378_v49, %v1378_v49  ;;  %v1438_v58 = vpop.f32.mrb[4].mxu1  ;;  %v1546_v62 = vrot.slane %v1378_v49, %v3427_v7  ;;  %v1740_v4 = vrot.slane %v1726_v47, %v3427_v7 }
 0x10e   : > { %v2124_v63 = vrot.slane %v2110_v52, %v3427_v7  ;;  %3087 = vst.sshfl [vmem:[#allocation2 + $0x88] sm:$0x3 pattern:$0x76325410] %v1741_v51  ;;  %v3167_v0 = vpop.f32.mrb[5].mxu1  ;;  %v1903_v2 = vcombine.low %v1895_v48, %v1902_v53  ;;  %v1905_v3 = vcombine.low %v1536_v45, %v1538_v54  ;;  %v1743_v33 = vcombine.high %v1438_v58, %v1438_v58 }
 0x10f   : > { %v1553_v26 = vrot.slane %v1539_v56, %v3427_v7  ;;  %v1554_v5 = vcombine.high %v1546_v62, %v1546_v62  ;;  %3082 = vst.sshfl [vmem:[#allocation2 + $0x10] sm:$0x3 pattern:$0x76325410] %v1546_v62  ;;  %v1383_v8 = vpop.f32.mrb[6].mxu0  ;;  %v1912_v14 = vrot.slane %v1904_v55, %v3427_v7  ;;  %v1742_v30 = vcombine.high %v1740_v4, %v1740_v4 }
 0x110   : > { %v3721_v13 = vcombine.low %v2117_v50, %v2124_v63  ;;  %2327 = vst [vmem:[#allocation2] sm:$0xff] %v1903_v2  ;;  %v1919_v15 = vrot.slane %v1905_v3, %v3427_v7  ;;  %v1556_v17 = vcombine.high %v1383_v8, %v1383_v8  ;;  %v3134_v18 = vpop.f32.mrb[7].mxu0  ;;  %v1563_v23 = vrot.slane %v1383_v8, %v3427_v7 }
 0x111   : > { %v1555_v16 = vcombine.high %v1553_v26, %v1553_v26  ;;  %v3725_v19 = vpop.f32.mrb[6].mxu1  ;;  %v1928_v22 = vcombine.low %v1554_v5, %v1553_v26  ;;  %v1750_v34 = vrot.slane %v1438_v58, %v3427_v7  ;;  %v2675_v43 = vsub.s32 6, %v3416_v6 }
 0x112   : > { %2343 = vst [vmem:[#allocation2 + $0x80] sm:$0xff] %v3721_v13  ;;  %v3170_v25 = vpop.f32.mrb[7].mxu1  ;;  %v1920_v27 = vcombine.low %v1912_v14, %v1919_v15  ;;  %v1570_v28 = vrot.slane %v1556_v17, %v3427_v7  ;;  %v1571_v1 = vcombine.high %v1563_v23, %v1563_v23  ;;  %v3746_v46 = vcombine.low %v1740_v4, %v1742_v30 }
 0x113   : > { %v1929_v31 = vcombine.low %v1555_v16, %v1563_v23  ;;  %v1388_v24 = vpop.f32.mrb[8].mxu0  ;;  %v1936_v39 = vrot.slane %v1928_v22, %v3427_v7  ;;  %v1757_v50 = vrot.slane %v1743_v33, %v3427_v7  ;;  %v1758_v51 = vcombine.high %v1750_v34, %v1750_v34 }
 0x114   : > { %2328 = vst [vmem:[#allocation2 + $0x8] sm:$0xff] %v1920_v27  ;;  %v1572_v35 = vcombine.high %v1570_v28, %v1570_v28  ;;  %v1573_v61 = vcombine.high %v1388_v24, %v1388_v24  ;;  %v1580_v36 = vrot.slane %v1388_v24, %v3427_v7  ;;  %v3137_v38 = vpop.f32.mrb[9].mxu0  ;;  %v1945_v42 = vcombine.low %v1571_v1, %v1570_v28 }
 0x115   : > { %v1943_v40 = vrot.slane %v1929_v31, %v3427_v7  ;;  %v2379_v59 = vmul.f32 %v3703_v41, %v1903_v2  ;;  %v3759_v62 = vrot.slane %v3699_v32, %v2675_v43  ;;  %v2727_v63 = vsub.s32 7, %v3416_v6 }
 0x116   : > { %v1587_v10 = vrot.slane %v1573_v61, %v3427_v7  ;;  %v1588_v44 = vcombine.high %v1580_v36, %v1580_v36  ;;  %v1946_v45 = vcombine.low %v1572_v35, %v1580_v36  ;;  %v1953_v48 = vrot.slane %v1945_v42, %v3427_v7 }
 0x117   : > { %v1944_v47 = vcombine.low %v1936_v39, %v1943_v40  ;;  %v1393_v49 = vpop.f32.mrb[10].mxu0  ;;  %v3750_v52 = vpop.f32.mrb[8].mxu1  ;;  %v2141_v4 = vrot.slane %v3746_v46, %v3427_v7  ;;  %v2380_v2 = vmul.f32 %v3703_v41, %v1920_v27  ;;  %v3768_v16 = vmul.f32 %v3703_v41, %v3721_v13 }
 0x118   : > { %v1589_v53 = vcombine.high %v1587_v10, %v1587_v10  ;;  %v1960_v54 = vrot.slane %v1946_v45, %v3427_v7  ;;  %3083 = vst.sshfl [vmem:[#allocation2 + $0x28] sm:$0x3 pattern:$0x76325410] %v1588_v44  ;;  %v1590_v55 = vcombine.high %v1393_v49, %v1393_v49  ;;  %v1597_v56 = vrot.slane %v1393_v49, %v3427_v7  ;;  %v3140_v57 = vpop.f32.mrb[11].mxu0  ;;  %v3173_v58 = vpop.f32.mrb[9].mxu1 }
 0x119   : > { %2330 = vst [vmem:[#allocation2 + $0x18] sm:$0xff] %v1944_v47  ;;  %v1759_v17 = vcombine.high %v1757_v50, %v1757_v50  ;;  %v2134_v29 = vcombine.low %v1750_v34, %v1758_v51  ;;  %v1760_v27 = vcombine.high %v3725_v19, %v3725_v19  ;;  %v2520_v24 = vmul.f32 %v3718_v9, %v1944_v47  ;;  %v3782_v43 = vld [vmem:[#allocation2 + $0x81] sm:$0xff] }
 0x11a   : > { %v1961_v0 = vcombine.low %v1953_v48, %v1960_v54  ;;  %v1604_v3 = vrot.slane %v1590_v55, %v3427_v7  ;;  %v1605_v26 = vcombine.high %v1597_v56, %v1597_v56  ;;  %v1969_v14 = vcombine.low %v1587_v10, %v1589_v53 }
 0x11b   : > { %v2395_v5 = vld [vmem:[#allocation2 + $0x1] sm:$0xff]  ;;  %v2396_v12 = vld [vmem:[#allocation2 + $0x9] sm:$0xff]  ;;  %v1398_v15 = vpop.f32.mrb[12].mxu0  ;;  %v3770_v18 = vpop.f32.mrb[10].mxu1  ;;  %v2381_v51 = vmul.f32 %v3703_v41, %v1944_v47  ;;  %v2148_v54 = vrot.slane %v2134_v29, %v3427_v7  ;;  %v3790_v55 = vcombine.low %v1757_v50, %v1759_v17 }
 0x11c   : > { %v2447_v8 = vld [vmem:[#allocation2 + $0x2] sm:$0xff]  ;;  %v2415_v22 = vmul.f32 %v3728_v20, %v2395_v5  ;;  %v2416_v23 = vmul.f32 %v3728_v20, %v2396_v12  ;;  %v2448_v25 = vld [vmem:[#allocation2 + $0xa] sm:$0xff]  ;;  %2331 = vst [vmem:[#allocation2 + $0x20] sm:$0xff] %v1961_v0  ;;  %v3143_v28 = vpop.f32.mrb[13].mxu0  ;;  %v3176_v30 = vpop.f32.mrb[11].mxu1  ;;  %v1606_v33 = vcombine.high %v1604_v3, %v1604_v3  ;;  %v1970_v36 = vcombine.low %v1597_v56, %v1605_v26 }
 0x11d   : > { %v2467_v1 = vmul.f32 %v3731_v11, %v2447_v8  ;;  %v2468_v31 = vmul.f32 %v3731_v11, %v2448_v25  ;;  %v1607_v38 = vcombine.high %v1398_v15, %v1398_v15  ;;  %v1977_v39 = vrot.slane %v1969_v14, %v3427_v7 }
 0x11e   : > { %v2431_v35 = vadd.f32 %v2415_v22, %v2379_v59  ;;  %v2432_v61 = vadd.f32 %v2416_v23, %v2380_v2  ;;  %v2521_v40 = vmul.f32 %v3718_v9, %v1961_v0  ;;  %v1986_v34 = vcombine.low %v1604_v3, %v1606_v33 }
 0x11f   : > { %v1614_v42 = vrot.slane %v1398_v15, %v3427_v7  ;;  %v1403_v10 = vpop.f32.mrb[14].mxu0  ;;  %v1984_v46 = vrot.slane %v1970_v36, %v3427_v7  ;;  %v3786_v48 = vrot.slane %v1607_v38, %v3427_v7  ;;  %v2426_v3 = vmul.f32 %v3728_v20, %v3782_v43 }
 0x120   : > { %v2483_v44 = vadd.f32 %v2467_v1, %v2431_v35  ;;  %v2484_v45 = vadd.f32 %v2468_v31, %v2432_v61  ;;  %v3146_v49 = vpop.f32.mrb[15].mxu0  ;;  %v2382_v5 = vmul.f32 %v3703_v41, %v1961_v0  ;;  %v1994_v50 = vrot.slane %v1986_v34, %v3427_v7  ;;  %v3816_v61 = vld [vmem:[#allocation2 + $0x82] sm:$0xff] }
 0x121   : > { %v1622_v53 = vcombine.high %v1614_v42, %v1614_v42  ;;  %v3792_v56 = vpop.f32.mrb[12].mxu1  ;;  %v3794_v59 = vcombine.low %v1977_v39, %v1984_v46  ;;  %3084 = vst.sshfl [vmem:[#allocation2 + $0x40] sm:$0x3 pattern:$0x76325410] %v3786_v48  ;;  %v3801_v14 = vcombine.low %v2141_v4, %v2148_v54  ;;  %v1623_v0 = vcombine.high %v3786_v48, %v3786_v48 }
 0x122   : > { %v2536_v57 = vadd.f32 %v2520_v24, %v2483_v44  ;;  %v2537_v58 = vadd.f32 %v2521_v40, %v2484_v45  ;;  %v3179_v26 = vpop.f32.mrb[13].mxu1  ;;  %v1624_v30 = vcombine.high %v1403_v10, %v1403_v10  ;;  %v1631_v1 = vrot.slane %v1403_v10, %v3427_v7 }
 0x123   : > { %v2397_v47 = vld [vmem:[#allocation2 + $0x19] sm:$0xff]  ;;  %v2398_v8 = vld [vmem:[#allocation2 + $0x21] sm:$0xff]  ;;  %v1987_v12 = vcombine.low %v1614_v42, %v1622_v53  ;;  %v3803_v15 = vpop.f32.mrb[16].mxu0  ;;  %2333 = vst [vmem:[#allocation2 + $0x30] sm:$0xff] %v3794_v59  ;;  %2345 = vst [vmem:[#allocation2 + $0x90] sm:$0xff] %v3801_v14  ;;  %v2522_v46 = vmul.f32 %v3718_v9, %v3794_v59  ;;  %v2677_v48 = vmul.f32 %v3759_v62, %v3794_v59 }
 0x124   : > { %v2449_v2 = vld [vmem:[#allocation2 + $0x1a] sm:$0xff]  ;;  %v2417_v17 = vmul.f32 %v3728_v20, %v2397_v47  ;;  %v2418_v22 = vmul.f32 %v3728_v20, %v2398_v8  ;;  %v2450_v23 = vld [vmem:[#allocation2 + $0x22] sm:$0xff]  ;;  %v2572_v25 = vmul.f32 %v3740_v37, %v2397_v47  ;;  %v3149_v28 = vpop.f32.mrb[17].mxu0  ;;  %v2573_v4 = vmul.f32 %v3740_v37, %v2398_v8 }
 0x125   : > { %v2469_v29 = vmul.f32 %v3731_v11, %v2449_v2  ;;  %v2624_v35 = vmul.f32 %v3756_v60, %v2449_v2  ;;  %v2470_v38 = vmul.f32 %v3731_v11, %v2450_v23  ;;  %v2625_v40 = vmul.f32 %v3756_v60, %v2450_v23 }
 0x126   : > { %v2433_v31 = vadd.f32 %v2417_v17, %v2381_v51  ;;  %v2434_v24 = vadd.f32 %v2418_v22, %v2382_v5  ;;  %v2588_v33 = vadd.f32 %v2572_v25, %v2536_v57  ;;  %v3818_v36 = vpop.f32.mrb[14].mxu1  ;;  %v2589_v39 = vadd.f32 %v2573_v4, %v2537_v58 }
 0x127   : > { %v2001_v34 = vrot.slane %v1987_v12, %v3427_v7  ;;  %v3823_v42 = vpop.f32.mrb[18].mxu0  ;;  %v3182_v44 = vpop.f32.mrb[15].mxu1  ;;  %v2478_v57 = vmul.f32 %v3731_v11, %v3816_v61  ;;  %v1638_v5 = vrot.slane %v1624_v30, %v3427_v7  ;;  %v1639_v47 = vcombine.high %v1631_v1, %v1631_v1 }
 0x128   : > { %v2485_v10 = vadd.f32 %v2469_v29, %v2433_v31  ;;  %v2640_v45 = vadd.f32 %v2624_v35, %v2588_v33  ;;  %v3152_v49 = vpop.f32.mrb[19].mxu0  ;;  %v2486_v51 = vadd.f32 %v2470_v38, %v2434_v24  ;;  %v2641_v53 = vadd.f32 %v2625_v40, %v2589_v39 }
 0x129   : > { %v2002_v54 = vcombine.low %v1994_v50, %v2001_v34  ;;  %v2442_v17 = vadd.f32 %v2426_v3, %v3768_v16  ;;  %v2010_v50 = vcombine.low %v1623_v0, %v1631_v1  ;;  %v2011_v25 = vcombine.low %v1639_v47, %v1638_v5 }
 0x12a   : > { %v3831_v58 = vadd.f32 %v2522_v46, %v2485_v10  ;;  %v3833_v26 = vadd.f32 %v2677_v48, %v2640_v45  ;;  %v3836_v8 = vpop.f32.mrb[16].mxu1  ;;  %v1767_v28 = vrot.slane %v3725_v19, %v3427_v7  ;;  %v1774_v29 = vrot.slane %v1760_v27, %v3427_v7 }
 0x12b   : > { %2334 = vst [vmem:[#allocation2 + $0x38] sm:$0xff] %v2002_v54  ;;  %v2523_v2 = vmul.f32 %v3718_v9, %v2002_v54  ;;  %v2678_v12 = vmul.f32 %v3759_v62, %v2002_v54  ;;  %v3841_v22 = vpop.f32.mrb[20].mxu0  ;;  %v3185_v23 = vpop.f32.mrb[17].mxu1  ;;  %v1640_v4 = vcombine.high %v1638_v5, %v1638_v5  ;;  %v2018_v33 = vrot.slane %v2010_v50, %v3427_v7 }
 0x12c   : > { %v3155_v30 = vpop.f32.mrb[21].mxu0  ;;  %v1641_v16 = vcombine.high %v3803_v15, %v3803_v15  ;;  %v2025_v3 = vrot.slane %v2011_v25, %v3427_v7  ;;  %v1775_v0 = vcombine.high %v1767_v28, %v1767_v28  ;;  %3088 = vst.sshfl [vmem:[#allocation2 + $0xa0] sm:$0x3 pattern:$0x76325410] %v1774_v29  ;;  %v1648_v1 = vrot.slane %v3803_v15, %v3427_v7 }
 0x12d   : > { %v2539_v31 = vadd.f32 %v2523_v2, %v2486_v51  ;;  %v2694_v24 = vadd.f32 %v2678_v12, %v2641_v53  ;;  %v1776_v35 = vcombine.high %v1774_v29, %v1774_v29  ;;  %v3860_v19 = vrot.slane %v3699_v32, %v2727_v63  ;;  %v3892_v25 = vld [vmem:[%s4326_s4 + $0x8] ss:$0 sm:$0xff] }
 0x12e   : > { %v3855_v38 = vpop.f32.mrb[18].mxu1  ;;  %v1655_v27 = vrot.slane %v1641_v16, %v3427_v7  ;;  %v1777_v39 = vcombine.high %v3750_v52, %v3750_v52  ;;  %v1784_v40 = vrot.slane %v3750_v52, %v3427_v7  ;;  %v2494_v15 = vadd.f32 %v2478_v57, %v2442_v17 }
 0x12f   : > { %v3867_v34 = vpop.f32.mrb[22].mxu0  ;;  %v3188_v44 = vpop.f32.mrb[19].mxu1  ;;  %v3869_v10 = vcombine.low %v2018_v33, %v2025_v3  ;;  %v2151_v45 = vcombine.low %v1767_v28, %v1775_v0  ;;  %v3871_v46 = vcombine.low %v1640_v4, %v1648_v1  ;;  %v2383_v32 = vmul.f32 %v3703_v41, %v3794_v59 }
 0x130   : > { %v3158_v6 = vpop.f32.mrb[23].mxu0  ;;  %v2158_v63 = vrot.slane %v3790_v55, %v3427_v7  ;;  %v1657_v48 = vcombine.high %v1655_v27, %v1655_v27  ;;  %v3877_v49 = vcombine.low %v1776_v35, %v1784_v40  ;;  %v2384_v52 = vmul.f32 %v3703_v41, %v2002_v54 }
 0x131   : > { %2336 = vst [vmem:[#allocation2 + $0x48] sm:$0xff] %v3869_v10  ;;  %v1656_v5 = vcombine.high %v1648_v1, %v1648_v1  ;;  %v1791_v47 = vrot.slane %v1777_v39, %v3427_v7  ;;  %v1794_v2 = vcombine.high %v3770_v18, %v3770_v18  ;;  %v1792_v50 = vcombine.high %v1784_v40, %v1784_v40 }
 0x132   : > { %v2399_v51 = vld [vmem:[#allocation2 + $0x31] sm:$0xff]  ;;  %v2400_v53 = vld [vmem:[#allocation2 + $0x39] sm:$0xff]  ;;  %v3884_v59 = vpop.f32.mrb[20].mxu1  ;;  %v2524_v4 = vmul.f32 %v3718_v9, %v3869_v10  ;;  %v2165_v30 = vrot.slane %v2151_v45, %v3427_v7  ;;  %v2679_v40 = vmul.f32 %v3759_v62, %v3869_v10 }
 0x133   : > { %v2451_v57 = vld [vmem:[#allocation2 + $0x32] sm:$0xff]  ;;  %v2419_v55 = vmul.f32 %v3728_v20, %v2399_v51  ;;  %v2420_v12 = vmul.f32 %v3728_v20, %v2400_v53  ;;  %v2452_v17 = vld [vmem:[#allocation2 + $0x3a] sm:$0xff]  ;;  %v2574_v54 = vmul.f32 %v3740_v37, %v2399_v51  ;;  %3085 = vst.sshfl [vmem:[#allocation2 + $0x58] sm:$0x3 pattern:$0x76325410] %v1657_v48  ;;  %v2575_v29 = vmul.f32 %v3740_v37, %v2400_v53 }
 0x134   : > { %v3191_v23 = vpop.f32.mrb[21].mxu1  ;;  %v2471_v28 = vmul.f32 %v3731_v11, %v2451_v57  ;;  %v2626_v3 = vmul.f32 %v3756_v60, %v2451_v57  ;;  %v2729_v0 = vmul.f32 %v3860_v19, %v2399_v51  ;;  %v2472_v35 = vmul.f32 %v3731_v11, %v2452_v17 }
 0x135   : > { %v2435_v33 = vadd.f32 %v2419_v55, %v2383_v32  ;;  %v2590_v16 = vadd.f32 %v2574_v54, %v3831_v58  ;;  %v2436_v1 = vadd.f32 %v2420_v12, %v2384_v52  ;;  %v2730_v39 = vmul.f32 %v3860_v19, %v2400_v53 }
 0x136   : > { %v2745_v48 = vadd.f32 %v2729_v0, %v3833_v26  ;;  %v2781_v45 = vmul.f32 %v3892_v25, %v2451_v57  ;;  %v2782_v58 = vmul.f32 %v3892_v25, %v2452_v17  ;;  %v2166_v55 = vcombine.low %v2158_v63, %v2165_v30 }
 0x137   : > { %v2487_v44 = vadd.f32 %v2471_v28, %v2435_v33  ;;  %v2642_v6 = vadd.f32 %v2626_v3, %v2590_v16  ;;  %v2746_v32 = vadd.f32 %v2730_v39, %v2694_v24  ;;  %v2028_v54 = vcombine.low %v1656_v5, %v1655_v27 }
 0x138   : > { %v2591_v51 = vadd.f32 %v2575_v29, %v2539_v31  ;;  %v3909_v52 = vadd.f32 %v2781_v45, %v2745_v48  ;;  %v2627_v23 = vmul.f32 %v3756_v60, %v2452_v17  ;;  %2346 = vst [vmem:[#allocation2 + $0x98] sm:$0xff] %v2166_v55  ;;  %v2531_v26 = vmul.f32 %v3718_v9, %v2166_v55 }
 0x139   : > { %v3911_v12 = vadd.f32 %v2524_v4, %v2487_v44  ;;  %v3913_v53 = vadd.f32 %v2679_v40, %v2642_v6  ;;  %v3916_v28 = vadd.f32 %v2782_v58, %v2746_v32  ;;  %v2035_v24 = vrot.slane %v3871_v46, %v3427_v7 }
 0x13a   : > { %4336 = vst [vmem:[#allocation3_spill] sm:$0xff] %v3909_v52  ;;  %v2042_v63 = vrot.slane %v2028_v54, %v3427_v7  ;;  %v2175_v27 = vcombine.low %v1792_v50, %v1791_v47  ;;  %v2182_v31 = vrot.slane %v3877_v49, %v3427_v7  ;;  %v1793_v57 = vcombine.high %v1791_v47, %v1791_v47 }
 0x13b   : > { %4337 = vst [vmem:[#allocation4_spill] sm:$0xff] %v3916_v28  ;;  %v3926_v5 = vadd.f32 %v3916_v28, %v3909_v52  ;;  %v2547_v17 = vadd.f32 %v2531_v26, %v2494_v15  ;;  %v1801_v29 = vrot.slane %v3770_v18, %v3427_v7  ;;  %v1808_v4 = vrot.slane %v1794_v2, %v3427_v7 }
 0x13c   : > { %v2488_v30 = vadd.f32 %v2472_v35, %v2436_v1  ;;  %v2643_v33 = vadd.f32 %v2627_v23, %v2591_v51  ;;  %v2043_v46 = vcombine.low %v2035_v24, %v2042_v63  ;;  %v2189_v16 = vrot.slane %v2175_v27, %v3427_v7 }
 0x13d   : > { %v3934_v50 = vmul.f32 %v3718_v9, %v3721_v13  ;;  %v3938_v49 = vmul.f32 %v3759_v62, %v3721_v13  ;;  %v1810_v47 = vcombine.high %v1808_v4, %v1808_v4  ;;  %v3940_v15 = vcombine.low %v1793_v57, %v1801_v29 }
 0x13e   : > { %v3944_v18 = vmul.f32 %v3740_v37, %v3782_v43  ;;  %2337 = vst [vmem:[#allocation2 + $0x50] sm:$0xff] %v2043_v46  ;;  %v2525_v2 = vmul.f32 %v3718_v9, %v2043_v46  ;;  %v2680_v3 = vmul.f32 %v3759_v62, %v2043_v46  ;;  %v3948_v0 = vcombine.low %v2182_v31, %v2189_v16 }
 0x13f   : > { %4338 = vst [vmem:[#allocation5_spill] sm:$0xff] %v3934_v50  ;;  %4339 = vst [vmem:[#allocation6_spill] sm:$0xff] %v3938_v49  ;;  %v3952_v1 = vmul.f32 %v3756_v60, %v3816_v61  ;;  %v3956_v13 = vmul.f32 %v3860_v19, %v3782_v43  ;;  %v2391_v35 = vmul.f32 %v3703_v41, %v3801_v14  ;;  %v3961_v40 = vld [vmem:[#allocation2 + $0x91] sm:$0xff]  ;;  %v3963_v44 = vld [vmem:[#allocation2 + $0x99] sm:$0xff] }
 0x140   : > { %4340 = vst [vmem:[#allocation7_spill] sm:$0xff] %v3944_v18  ;;  %4341 = vst [vmem:[#allocation8_spill] sm:$0xff] %v3948_v0  ;;  %v2392_v39 = vmul.f32 %v3703_v41, %v2166_v55  ;;  %v3965_v6 = vld [vmem:[#allocation2 + $0x92] sm:$0xff]  ;;  %v3967_v48 = vadd.f32 %v2525_v2, %v2488_v30  ;;  %v2696_v45 = vadd.f32 %v2680_v3, %v2643_v33  ;;  %v3984_v26 = vld [vmem:[#allocation2 + $0x9a] sm:$0xff] }
 0x141   : > { %4342 = vst [vmem:[#allocation9_spill] sm:$0xff] %v3952_v1  ;;  %4343 = vst [vmem:[#allocation10_spill] sm:$0xff] %v3956_v13  ;;  %v1809_v32 = vcombine.high %v1801_v29, %v1801_v29  ;;  %v1658_v43 = vcombine.high %v3823_v42, %v3823_v42  ;;  %v3974_v58 = vmul.f32 %v3892_v25, %v3816_v61 }
 0x142   : > { %3089 = vst.sshfl [vmem:[#allocation2 + $0xb8] sm:$0x3 pattern:$0x76325410] %v1810_v47  ;;  %2348 = vst [vmem:[#allocation2 + $0xa8] sm:$0xff] %v3948_v0  ;;  %v3978_v54 = vmul.f32 %v3718_v9, %v3801_v14  ;;  %v2427_v51 = vmul.f32 %v3728_v20, %v3961_v40  ;;  %v2428_v23 = vmul.f32 %v3728_v20, %v3963_v44 }
 0x143   : > { %4344 = vst [vmem:[#allocation11_spill] sm:$0xff] %v3974_v58  ;;  %v3988_v24 = vmul.f32 %v3759_v62, %v3801_v14  ;;  %v2385_v61 = vmul.f32 %v3703_v41, %v3869_v10  ;;  %v2583_v63 = vmul.f32 %v3740_v37, %v3963_v44  ;;  %v1665_v27 = vrot.slane %v3823_v42, %v3427_v7 }
 0x144   : > { %4345 = vst [vmem:[#allocation12_spill] sm:$0xff] %v3978_v54  ;;  %v2443_v31 = vadd.f32 %v2427_v51, %v2391_v35  ;;  %v2444_v57 = vadd.f32 %v2428_v23, %v2392_v39  ;;  %v2479_v29 = vmul.f32 %v3731_v11, %v3965_v6  ;;  %v2480_v30 = vmul.f32 %v3731_v11, %v3984_v26 }
 0x145   : > { %4346 = vst [vmem:[#allocation13_spill] sm:$0xff] %v3988_v24  ;;  %v2599_v33 = vadd.f32 %v2583_v63, %v2547_v17  ;;  %v2635_v14 = vmul.f32 %v3756_v60, %v3984_v26  ;;  %v2192_v16 = vcombine.low %v1809_v32, %v1808_v4  ;;  %v1672_v10 = vrot.slane %v1658_v43, %v3427_v7  ;;  %v2401_v2 = vld [vmem:[#allocation2 + $0x49] sm:$0xff]  ;;  %v2402_v39 = vld [vmem:[#allocation2 + $0x51] sm:$0xff] }
 0x146   : > { %v4004_v47 = vmul.f32 %v3759_v62, %v2166_v55  ;;  %v2386_v42 = vmul.f32 %v3703_v41, %v2043_v46  ;;  %v2199_v3 = vrot.slane %v3940_v15, %v3427_v7  ;;  %v1811_v35 = vcombine.high %v3792_v56, %v3792_v56  ;;  %v2453_v4 = vld [vmem:[#allocation2 + $0x4a] sm:$0xff]  ;;  %v2454_v28 = vld [vmem:[#allocation2 + $0x52] sm:$0xff] }
 0x147   : > { %v4013_v17 = vmul.f32 %v3740_v37, %v3961_v40  ;;  %v4017_v32 = vmul.f32 %v3703_v41, %v3948_v0  ;;  %v2532_v55 = vmul.f32 %v3718_v9, %v3948_v0  ;;  %v1673_v46 = vcombine.high %v1665_v27, %v1665_v27 }
 0x148   : > { %4347 = vst [vmem:[#allocation14_spill] sm:$0xff] %v4004_v47  ;;  %v2495_v43 = vadd.f32 %v2479_v29, %v2443_v31  ;;  %v2496_v51 = vadd.f32 %v2480_v30, %v2444_v57  ;;  %v4023_v15 = vmul.f32 %v3756_v60, %v3965_v6  ;;  %v2421_v23 = vmul.f32 %v3728_v20, %v2401_v2 }
 0x149   : > { %4348 = vst [vmem:[#allocation15_spill] sm:$0xff] %v4013_v17  ;;  %v2651_v63 = vadd.f32 %v2635_v14, %v2599_v33  ;;  %v2731_v52 = vmul.f32 %v3860_v19, %v2401_v2  ;;  %v2206_v58 = vrot.slane %v2192_v16, %v3427_v7  ;;  %v1674_v47 = vcombine.high %v1672_v10, %v1672_v10 }
 0x14a   : > { %4349 = vst [vmem:[#allocation16_spill] sm:$0xff] %v4023_v15  ;;  %v2422_v17 = vmul.f32 %v3728_v20, %v2402_v39  ;;  %v2473_v0 = vmul.f32 %v3731_v11, %v2453_v4  ;;  %v2576_v31 = vmul.f32 %v3740_v37, %v2401_v2  ;;  %v2732_v57 = vmul.f32 %v3860_v19, %v2402_v39 }
 0x14b   : > { %v2577_v29 = vmul.f32 %v3740_v37, %v2402_v39  ;;  %v2628_v30 = vmul.f32 %v3756_v60, %v2453_v4  ;;  %v2747_v33 = vadd.f32 %v2731_v52, %v3913_v53  ;;  %v2783_v14 = vmul.f32 %v3892_v25, %v2453_v4 }
 0x14c   : > { %v2437_v15 = vadd.f32 %v2421_v23, %v2385_v61  ;;  %v2748_v24 = vadd.f32 %v2732_v57, %v2696_v45  ;;  %v2784_v16 = vmul.f32 %v3892_v25, %v2454_v28  ;;  %v2548_v13 = vadd.f32 %v2532_v55, %v2495_v43 }
 0x14d   : > { %v4037_v1 = vadd.f32 %v2783_v14, %v2747_v33  ;;  %v2207_v54 = vcombine.low %v2199_v3, %v2206_v58  ;;  %v2051_v49 = vcombine.low %v1665_v27, %v1673_v46  ;;  %v2052_v2 = vcombine.low %v1672_v10, %v1674_v47 }
 0x14e   : > { %v2592_v18 = vadd.f32 %v2576_v31, %v3911_v12  ;;  %v4040_v50 = vadd.f32 %v2784_v16, %v2748_v24  ;;  %v1818_v39 = vrot.slane %v3792_v56, %v3427_v7  ;;  %v1825_v52 = vrot.slane %v1811_v35, %v3427_v7 }
 0x14f   : > { %4350 = vst [vmem:[#allocation17_spill] sm:$0xff] %v4037_v1  ;;  %v2814_v53 = vadd.f32 %v3926_v5, %v4037_v1  ;;  %2349 = vst [vmem:[#allocation2 + $0xb0] sm:$0xff] %v2207_v54  ;;  %v2533_v45 = vmul.f32 %v3718_v9, %v2207_v54  ;;  %v2688_v61 = vmul.f32 %v3759_v62, %v2207_v54 }
 0x150   : > { %4351 = vst [vmem:[#allocation18_spill] sm:$0xff] %v4040_v50  ;;  %v1675_v58 = vcombine.high %v3841_v22, %v3841_v22  ;;  %v2059_v12 = vrot.slane %v2051_v49, %v3427_v7  ;;  %v2066_v24 = vrot.slane %v2052_v2, %v3427_v7  ;;  %v1826_v27 = vcombine.high %v1818_v39, %v1818_v39 }
 0x151   : > { %v1827_v10 = vcombine.high %v1825_v52, %v1825_v52  ;;  %v4054_v56 = vadd.f32 %v2814_v53, %v4040_v50  ;;  %v2549_v47 = vadd.f32 %v2533_v45, %v2496_v51  ;;  %v4056_v3 = vadd.f32 %v2688_v61, %v2651_v63 }
 0x152   : > { %v1682_v5 = vrot.slane %v3841_v22, %v3427_v7  ;;  %v2489_v35 = vadd.f32 %v2473_v0, %v2437_v15  ;;  %v2644_v4 = vadd.f32 %v2628_v30, %v2592_v18  ;;  %v4060_v55 = vcombine.low %v2059_v12, %v2066_v24 }
 0x153   : > { %v2215_v46 = vcombine.low %v1818_v39, %v1826_v27  ;;  %v2438_v43 = vadd.f32 %v2422_v17, %v2386_v42  ;;  %v2474_v49 = vmul.f32 %v3731_v11, %v2454_v28  ;;  %v2629_v23 = vmul.f32 %v3756_v60, %v2454_v28 }
 0x154   : > { %v2216_v31 = vcombine.low %v1825_v52, %v1827_v10  ;;  %v2593_v57 = vadd.f32 %v2577_v29, %v3967_v48  ;;  %2339 = vst [vmem:[#allocation2 + $0x60] sm:$0xff] %v4060_v55  ;;  %v2526_v51 = vmul.f32 %v3718_v9, %v4060_v55  ;;  %v2681_v22 = vmul.f32 %v3759_v62, %v4060_v55 }
 0x155   : > { %v1689_v18 = vrot.slane %v1675_v58, %v3427_v7  ;;  %v2394_v0 = vmul.f32 %v3703_v41, %v2207_v54  ;;  %v1690_v42 = vcombine.high %v1682_v5, %v1682_v5  ;;  %v1828_v17 = vcombine.high %v3818_v36, %v3818_v36 }
 0x156   : > { %v1835_v28 = vrot.slane %v3818_v36, %v3427_v7  ;;  %v4076_v48 = vld [vmem:[#allocation2 + $0xa9] sm:$0xff]  ;;  %v4080_v63 = vadd.f32 %v2526_v51, %v2489_v35  ;;  %v4082_v29 = vadd.f32 %v2681_v22, %v2644_v4  ;;  %v2223_v30 = vrot.slane %v2215_v46, %v3427_v7  ;;  %v4087_v33 = vld [vmem:[#allocation2 + $0xb1] sm:$0xff] }
 0x157   : > { %v4078_v15 = vld [vmem:[#allocation2 + $0xaa] sm:$0xff]  ;;  %v1699_v54 = vrot.slane %v3867_v34, %v3427_v7  ;;  %v2429_v14 = vmul.f32 %v3728_v20, %v4076_v48  ;;  %v2584_v16 = vmul.f32 %v3740_v37, %v4076_v48  ;;  %v2230_v2 = vrot.slane %v2216_v31, %v3427_v7  ;;  %v4104_v35 = vld [vmem:[#allocation2 + $0xb2] sm:$0xff] }
 0x158   : > { %v2481_v36 = vmul.f32 %v3731_v11, %v4078_v15  ;;  %v2430_v39 = vmul.f32 %v3728_v20, %v4087_v33  ;;  %v2585_v52 = vmul.f32 %v3740_v37, %v4087_v33  ;;  %v2636_v53 = vmul.f32 %v3756_v60, %v4078_v15 }
 0x159   : > { %v1691_v45 = vcombine.high %v1689_v18, %v1689_v18  ;;  %3086 = vst.sshfl [vmem:[#allocation2 + $0x70] sm:$0x3 pattern:$0x76325410] %v1699_v54  ;;  %v2445_v61 = vadd.f32 %v2429_v14, %v4017_v32  ;;  %v2600_v58 = vadd.f32 %v2584_v16, %v2548_v13  ;;  %v1842_v12 = vrot.slane %v1828_v17, %v3427_v7 }
 0x15a   : > { %v1843_v24 = vcombine.high %v1835_v28, %v1835_v28  ;;  %v2490_v27 = vadd.f32 %v2474_v49, %v2438_v43  ;;  %v2645_v10 = vadd.f32 %v2629_v23, %v2593_v57  ;;  %v2068_v4 = vcombine.low %v1682_v5, %v1690_v42 }
 0x15b   : > { %v1692_v46 = vcombine.high %v3867_v34, %v3867_v34  ;;  %v2482_v31 = vmul.f32 %v3731_v11, %v4104_v35  ;;  %v2497_v51 = vadd.f32 %v2481_v36, %v2445_v61  ;;  %v2652_v22 = vadd.f32 %v2636_v53, %v2600_v58 }
 0x15c   : > { %v2231_v50 = vcombine.low %v2223_v30, %v2230_v2  ;;  %v2446_v1 = vadd.f32 %v2430_v39, %v2394_v0  ;;  %v2601_v32 = vadd.f32 %v2585_v52, %v2549_v47  ;;  %v2637_v13 = vmul.f32 %v3756_v60, %v4104_v35 }
 0x15d   : > { %v2069_v17 = vcombine.low %v1689_v18, %v1691_v45  ;;  %v1844_v49 = vcombine.high %v1842_v12, %v1842_v12  ;;  %v2232_v23 = vcombine.low %v1835_v28, %v1843_v24  ;;  %v2076_v34 = vrot.slane %v2068_v4, %v3427_v7 }
 0x15e   : > { %2351 = vst [vmem:[#allocation2 + $0xc0] sm:$0xff] %v2231_v50  ;;  %v2534_v43 = vmul.f32 %v3718_v9, %v2231_v50  ;;  %v2689_v5 = vmul.f32 %v3759_v62, %v2231_v50  ;;  %v1706_v42 = vrot.slane %v1692_v46, %v3427_v7  ;;  %v1707_v30 = vcombine.high %v1699_v54, %v1699_v54 }
 0x15f   : > { %v2083_v57 = vrot.slane %v2069_v17, %v3427_v7  ;;  %v2233_v14 = vcombine.low %v1842_v12, %v1844_v49  ;;  %v2240_v18 = vrot.slane %v2232_v23, %v3427_v7  ;;  %v1845_v50 = vcombine.high %v3836_v8, %v3836_v8 }
 0x160   : > { %v4117_v0 = vadd.f32 %v2534_v43, %v2497_v51  ;;  %v4119_v47 = vadd.f32 %v2689_v5, %v2652_v22  ;;  %v1708_v16 = vcombine.high %v1706_v42, %v1706_v42  ;;  %v2092_v2 = vcombine.low %v1707_v30, %v1706_v42 }
 0x161   : > { %v2084_v36 = vcombine.low %v2076_v34, %v2083_v57  ;;  %v2498_v28 = vadd.f32 %v2482_v31, %v2446_v1  ;;  %v2247_v39 = vrot.slane %v2233_v14, %v3427_v7  ;;  %v1852_v52 = vrot.slane %v3836_v8, %v3427_v7 }
 0x162   : > { %v1862_v54 = vcombine.high %v3855_v38, %v3855_v38  ;;  %v2653_v53 = vadd.f32 %v2637_v13, %v2601_v32  ;;  %v2093_v58 = vcombine.low %v1708_v16, %v3688_v21  ;;  %v2100_v24 = vrot.slane %v2092_v2, %v3427_v7 }
 0x163   : > { %2340 = vst [vmem:[#allocation2 + $0x68] sm:$0xff] %v2084_v36  ;;  %v2527_v45 = vmul.f32 %v3718_v9, %v2084_v36  ;;  %v2682_v61 = vmul.f32 %v3759_v62, %v2084_v36  ;;  %v2248_v12 = vcombine.low %v2240_v18, %v2247_v39  ;;  %v1859_v1 = vrot.slane %v1845_v50, %v3427_v7 }
 0x164   : > { %v1860_v4 = vcombine.high %v1852_v52, %v1852_v52  ;;  %3090 = vst.sshfl [vmem:[#allocation2 + $0xd0] sm:$0x3 pattern:$0x76325410] %v1852_v52  ;;  %v2107_v8 = vrot.slane %v2093_v58, %v3427_v7  ;;  %v4138_v51 = vrot.slane %v1862_v54, %v3427_v7  ;;  %v4144_v13 = vrot.slane %v3855_v38, %v3427_v7 }
 0x165   : > { %v2543_v46 = vadd.f32 %v2527_v45, %v2490_v27  ;;  %v4135_v31 = vadd.f32 %v2682_v61, %v2645_v10  ;;  %2352 = vst [vmem:[#allocation2 + $0xc8] sm:$0xff] %v2248_v12  ;;  %v2535_v22 = vmul.f32 %v3718_v9, %v2248_v12  ;;  %v2690_v21 = vmul.f32 %v3759_v62, %v2248_v12 }
 0x166   : > { %v1861_v32 = vcombine.high %v1859_v1, %v1859_v1  ;;  %v2108_v17 = vcombine.low %v2100_v24, %v2107_v8  ;;  %v4146_v43 = vcombine.low %v1860_v4, %v1859_v1  ;;  %v1878_v27 = vcombine.high %v4138_v51, %v4138_v51 }
 0x167   : > { %v1885_v10 = vrot.slane %v3884_v59, %v3427_v7  ;;  %v4154_v5 = vmul.f32 %v3860_v19, %v3961_v40  ;;  %v4156_v49 = vadd.f32 %v2535_v22, %v2498_v28  ;;  %v4158_v23 = vadd.f32 %v2690_v21, %v2653_v53 }
 0x168   : > { %v4161_v38 = vcombine.low %v1861_v32, %v4144_v13  ;;  %v4165_v34 = vmul.f32 %v3860_v19, %v3963_v44  ;;  %v4169_v57 = vmul.f32 %v3892_v25, %v3965_v6  ;;  %v4173_v59 = vmul.f32 %v3892_v25, %v3984_v26  ;;  %2342 = vst [vmem:[#allocation2 + $0x78] sm:$0xff] %v2108_v17 }
 0x169   : > { %v2387_v40 = vmul.f32 %v3703_v41, %v4060_v55  ;;  %v2388_v14 = vmul.f32 %v3703_v41, %v2084_v36  ;;  %v1877_v44 = vcombine.high %v4144_v13, %v4144_v13  ;;  %v1886_v16 = vcombine.high %v1885_v10, %v1885_v10  ;;  %v4362_v13 = vld [vmem:[#allocation16_spill] sm:$0xff] }
 0x16a   : > { %v2403_v42 = vld [vmem:[#allocation2 + $0x61] sm:$0xff]  ;;  %v2404_v18 = vld [vmem:[#allocation2 + $0x69] sm:$0xff]  ;;  %v4180_v2 = vcombine.low %v1878_v27, %v1885_v10  ;;  %v2389_v50 = vmul.f32 %v3703_v41, %v2108_v17  ;;  %v2264_v55 = vrot.slane %v4146_v43, %v3427_v7  ;;  %v2528_v54 = vmul.f32 %v3718_v9, %v2108_v17 }
 0x16b   : > { %v2455_v30 = vld [vmem:[#allocation2 + $0x62] sm:$0xff]  ;;  %v2423_v6 = vmul.f32 %v3728_v20, %v2403_v42  ;;  %v2578_v26 = vmul.f32 %v3740_v37, %v2403_v42  ;;  %v2733_v36 = vmul.f32 %v3860_v19, %v2403_v42  ;;  %v2424_v39 = vmul.f32 %v3728_v20, %v2404_v18  ;;  %v2456_v52 = vld [vmem:[#allocation2 + $0x6a] sm:$0xff]  ;;  %3091 = vst.sshfl [vmem:[#allocation2 + $0xe8] sm:$0x3 pattern:$0x76325410] %v1886_v16 }
 0x16c   : > { %v2475_v28 = vmul.f32 %v3731_v11, %v2455_v30  ;;  %v2630_v61 = vmul.f32 %v3756_v60, %v2455_v30  ;;  %v4193_v58 = vld [vmem:[#allocation2 + $0xc1] sm:$0xff]  ;;  %v2579_v41 = vmul.f32 %v3740_v37, %v2404_v18  ;;  %v2785_v24 = vmul.f32 %v3892_v25, %v2455_v30 }
 0x16d   : > { %v2439_v53 = vadd.f32 %v2423_v6, %v2387_v40  ;;  %v2594_v45 = vadd.f32 %v2578_v26, %v4080_v63  ;;  %v2749_v12 = vadd.f32 %v2733_v36, %v4082_v29  ;;  %v2586_v1 = vmul.f32 %v3740_v37, %v4193_v58  ;;  %v4201_v22 = vld [vmem:[#allocation2 + $0xc2] sm:$0xff] }
 0x16e   : > { %v2683_v4 = vmul.f32 %v3759_v62, %v2108_v17  ;;  %v2440_v63 = vadd.f32 %v2424_v39, %v2388_v14  ;;  %v2476_v21 = vmul.f32 %v3731_v11, %v2456_v52  ;;  %v2638_v32 = vmul.f32 %v3756_v60, %v4201_v22  ;;  %v4352_v39 = vld [vmem:[#allocation5_spill] sm:$0xff] }
 0x16f   : > { %v2491_v9 = vadd.f32 %v2475_v28, %v2439_v53  ;;  %v2646_v8 = vadd.f32 %v2630_v61, %v2594_v45  ;;  %v2405_v27 = vld [vmem:[#allocation2 + $0x79] sm:$0xff]  ;;  %v2595_v29 = vadd.f32 %v2579_v41, %v2543_v46  ;;  %v2631_v40 = vmul.f32 %v3756_v60, %v2456_v52 }
 0x170   : > { %v2457_v10 = vld [vmem:[#allocation2 + $0x7a] sm:$0xff]  ;;  %v2271_v42 = vrot.slane %v4161_v38, %v3427_v7  ;;  %v4209_v30 = vadd.f32 %v2785_v24, %v2749_v12  ;;  %v2425_v17 = vmul.f32 %v3728_v20, %v2405_v27  ;;  %v2492_v16 = vadd.f32 %v2476_v21, %v2440_v63 }
 0x171   : > { %v2544_v6 = vadd.f32 %v2528_v54, %v2491_v9  ;;  %v2602_v14 = vadd.f32 %v2586_v1, %v4117_v0  ;;  %v2477_v26 = vmul.f32 %v3731_v11, %v2457_v10  ;;  %v2580_v28 = vmul.f32 %v3740_v37, %v2405_v27  ;;  %v4353_v0 = vld [vmem:[#allocation7_spill] sm:$0xff]  ;;  %v4354_v11 = vld [vmem:[#allocation6_spill] sm:$0xff] }
 0x172   : > { %v2632_v36 = vmul.f32 %v3756_v60, %v2457_v10  ;;  %v2441_v46 = vadd.f32 %v2425_v17, %v2389_v50  ;;  %v2545_v53 = vadd.f32 %v4352_v39, %v2492_v16  ;;  %v2647_v45 = vadd.f32 %v2631_v40, %v2595_v29  ;;  %v4360_v39 = vld [vmem:[#allocation15_spill] sm:$0xff] }
 0x173   : > { %v2699_v61 = vadd.f32 %v2683_v4, %v2646_v8  ;;  %v2596_v38 = vadd.f32 %v2580_v28, %v2544_v6  ;;  %v2734_v41 = vmul.f32 %v3860_v19, %v2404_v18  ;;  %v2735_v20 = vmul.f32 %v3860_v19, %v2405_v27  ;;  %v2567_v8 = vld [vmem:[#allocation2 + $0xc9] sm:$0xff]  ;;  %v4355_v18 = vld [vmem:[#allocation12_spill] sm:$0xff]  ;;  %v4356_v27 = vld [vmem:[#allocation9_spill] sm:$0xff] }
 0x174   : > { %v2786_v54 = vmul.f32 %v3892_v25, %v2456_v52  ;;  %v2493_v12 = vadd.f32 %v2477_v26, %v2441_v46  ;;  %v2597_v24 = vadd.f32 %v4353_v0, %v2545_v53  ;;  %v2700_v1 = vadd.f32 %v4354_v11, %v2647_v45  ;;  %v4357_v52 = vld [vmem:[#allocation10_spill] sm:$0xff]  ;;  %v4358_v6 = vld [vmem:[#allocation13_spill] sm:$0xff] }
 0x175   : > { %v2787_v9 = vmul.f32 %v3892_v25, %v2457_v10  ;;  %v2648_v63 = vadd.f32 %v2632_v36, %v2596_v38  ;;  %v2750_v50 = vadd.f32 %v2734_v41, %v4135_v31  ;;  %v2751_v21 = vadd.f32 %v2735_v20, %v2699_v61  ;;  %v4359_v31 = vld [vmem:[#allocation8_spill] sm:$0xff]  ;;  %v2619_v61 = vld [vmem:[#allocation2 + $0xca] sm:$0xff] }
 0x176   : > { %v2816_v4 = vadd.f32 %v4054_v56, %v4209_v30  ;;  %v2546_v29 = vadd.f32 %v4355_v18, %v2493_v12  ;;  %v2649_v40 = vadd.f32 %v4356_v27, %v2597_v24  ;;  %v2752_v17 = vadd.f32 %v4357_v52, %v2700_v1 }
 0x177   : > { %v2587_v16 = vmul.f32 %v3740_v37, %v2567_v8  ;;  %v2701_v26 = vadd.f32 %v4358_v6, %v2648_v63  ;;  %v4231_v28 = vadd.f32 %v2786_v54, %v2750_v50  ;;  %v4233_v10 = vadd.f32 %v2787_v9, %v2751_v21  ;;  %v4361_v37 = vld [vmem:[#allocation14_spill] sm:$0xff] }
 0x178   : > { %v2273_v56 = vcombine.low %v1877_v44, %v4138_v51  ;;  %v2687_v36 = vmul.f32 %v3759_v62, %v4359_v31  ;;  %v2740_v46 = vmul.f32 %v3860_v19, %v4087_v33  ;;  %v2598_v53 = vadd.f32 %v4360_v39, %v2546_v29  ;;  %v4363_v44 = vld [vmem:[#allocation11_spill] sm:$0xff] }
 0x179   : > { %v2702_v45 = vadd.f32 %v4361_v37, %v2649_v40  ;;  %v2654_v38 = vadd.f32 %v2638_v32, %v2602_v14  ;;  %v2753_v41 = vadd.f32 %v4154_v5, %v2701_v26  ;;  %v2817_v20 = vadd.f32 %v2816_v4, %v4231_v28 }
 0x17a   : > { %v2639_v54 = vmul.f32 %v3756_v60, %v2619_v61  ;;  %v2650_v51 = vadd.f32 %v4362_v13, %v2598_v53  ;;  %v4250_v12 = vadd.f32 %v4363_v44, %v2752_v17  ;;  %v2603_v0 = vadd.f32 %v2587_v16, %v4156_v49  ;;  %v4364_v44 = vld [vmem:[#allocation3_spill] sm:$0xff] }
 0x17b   : > { %v2272_v33 = vcombine.low %v2264_v55, %v2271_v42  ;;  %v2754_v24 = vadd.f32 %v4165_v34, %v2702_v45  ;;  %v4258_v32 = vadd.f32 %v4169_v57, %v2753_v41  ;;  %v2818_v5 = vadd.f32 %v2817_v20, %v4233_v10 }
 0x17c   : > { %v2281_v60 = vrot.slane %v2273_v56, %v3427_v7  ;;  %v2739_v14 = vmul.f32 %v3860_v19, %v4076_v48  ;;  %v2703_v11 = vadd.f32 %v2687_v36, %v2650_v51  ;;  %v2288_v43 = vrot.slane %v4180_v2, %v3427_v7 }
 0x17d   : > { %2354 = vst [vmem:[#allocation2 + $0xd8] sm:$0xff] %v2272_v33  ;;  %v2691_v49 = vmul.f32 %v3759_v62, %v2272_v33  ;;  %v2791_v34 = vmul.f32 %v3892_v25, %v4078_v15  ;;  %v2792_v57 = vmul.f32 %v3892_v25, %v4104_v35  ;;  %v2741_v55 = vmul.f32 %v3860_v19, %v4193_v58  ;;  %v4365_v33 = vld [vmem:[#allocation4_spill] sm:$0xff] }
 0x17e   : > { %v2819_v42 = vadd.f32 %v2818_v5, %v4250_v12  ;;  %v2655_v1 = vadd.f32 %v2639_v54, %v2603_v0  ;;  %v2755_v48 = vadd.f32 %v2739_v14, %v2703_v11  ;;  %v2289_v63 = vcombine.low %v2281_v60, %v2288_v43  ;;  %v4366_v5 = vld [vmem:[#allocation17_spill] sm:$0xff] }
 0x17f   : > { %v2707_v9 = vadd.f32 %v2691_v49, %v2654_v38  ;;  %v2756_v50 = vadd.f32 %v2740_v46, %v4056_v3  ;;  %v2742_v7 = vmul.f32 %v3860_v19, %v2567_v8  ;;  %v2806_v15 = vadd.f32 %v4173_v59, %v2754_v24 }
 0x180   : > { %v2820_v21 = vadd.f32 %v2819_v42, %v4258_v32  ;;  %v2807_v2 = vadd.f32 %v2791_v34, %v2755_v48  ;;  %2355 = vst [vmem:[#allocation2 + $0xe0] sm:$0xff] %v2289_v63  ;;  %v2692_v35 = vmul.f32 %v3759_v62, %v2289_v63  ;;  %v2757_v58 = vadd.f32 %v2741_v55, %v4119_v47 }
 0x181   : > { %v2793_v4 = vmul.f32 %v3892_v25, %v4201_v22  ;;  %v2808_v27 = vadd.f32 %v2792_v57, %v2756_v50  ;;  %v2758_v3 = vadd.f32 %v2742_v7, %v4158_v23  ;;  %v2794_v40 = vmul.f32 %v3892_v25, %v2619_v61 }
 0x182   : > { %v2821_v18 = vadd.f32 %v2820_v21, %v2806_v15  ;;  %v2708_v29 = vadd.f32 %v2692_v35, %v2655_v1 }
 0x183   : > { %v2809_v8 = vadd.f32 %v2793_v4, %v2757_v58  ;;  %v2810_v59 = vadd.f32 %v2794_v40, %v2758_v3 }
 0x184   : > { %v2822_v52 = vadd.f32 %v2821_v18, %v2807_v2 }
 0x186   : > { %v2823_v17 = vadd.f32 %v2822_v52, %v2808_v27 }
 0x187   : > { %v2723_v6 = vld [vmem:[#allocation2 + $0xd9] sm:$0xff]  ;;  %v2724_v26 = vld [vmem:[#allocation2 + $0xe1] sm:$0xff] }
 0x188   : > { %v2824_v16 = vadd.f32 %v2823_v17, %v2809_v8  ;;  %v2775_v62 = vld [vmem:[#allocation2 + $0xda] sm:$0xff]  ;;  %v2743_v47 = vmul.f32 %v3860_v19, %v2723_v6  ;;  %v2744_v56 = vmul.f32 %v3860_v19, %v2724_v26  ;;  %v2776_v22 = vld [vmem:[#allocation2 + $0xe2] sm:$0xff] }
 0x189   : > { %v2795_v31 = vmul.f32 %v3892_v25, %v2775_v62  ;;  %v2796_v39 = vmul.f32 %v3892_v25, %v2776_v22  ;;  %v4367_v25 = vld [vmem:[#allocation18_spill] sm:$0xff] }
 0x18a   : > { %v2825_v36 = vadd.f32 %v2824_v16, %v2810_v59  ;;  %v2759_v46 = vadd.f32 %v2743_v47, %v2707_v9  ;;  %v2760_v23 = vadd.f32 %v2744_v56, %v2708_v29 }
 0x18c   : > { %v2811_v53 = vadd.f32 %v2795_v31, %v2759_v46  ;;  %v2812_v37 = vadd.f32 %v2796_v39, %v2760_v23 }
 0x18e   : > { %v2826_v45 = vadd.f32 %v2825_v36, %v2811_v53 }
 0x190   : > { %v2827_v61 = vadd.f32 %v2826_v45, %v2812_v37 }
 0x192   : > { %v2828_v38 = vrot.slane %v2827_v61, 4 }
 0x194   : > { %v2829_v41 = vadd.f32 %v2828_v38, %v2827_v61 }
 0x196   : > { %v2830_v20 = vrot.slane %v2829_v41, 2 }
 0x198   : > { %v2831_v54 = vadd.f32 %v2830_v20, %v2829_v41 }
 0x19a   : > { %v2832_v13 = vrot.slane %v2831_v54, 1 }
 0x19c   : > { %v4288_v51 = vadd.f32 %v2832_v13, %v2831_v54 }
 0x19e   : > { %v2835_v19 = vmul.f32 0.0078125, %v4288_v51 }
 0x1a0   : > { %v2836_v0 = vsub.f32 %v4364_v44, %v2835_v19  ;;  %v2837_v24 = vsub.f32 %v4365_v33, %v2835_v19  ;;  %v2838_v60 = vsub.f32 %v4366_v5, %v2835_v19  ;;  %v2839_v14 = vsub.f32 %v4367_v25, %v2835_v19 }
 0x1a1   : > { %v2840_v11 = vsub.f32 %v4209_v30, %v2835_v19  ;;  %v2841_v49 = vsub.f32 %v4231_v28, %v2835_v19  ;;  %v2842_v43 = vsub.f32 %v4233_v10, %v2835_v19  ;;  %v2843_v34 = vsub.f32 %v4250_v12, %v2835_v19 }
 0x1a2   : > { %v2844_v57 = vsub.f32 %v4258_v32, %v2835_v19  ;;  %v2845_v55 = vsub.f32 %v2806_v15, %v2835_v19  ;;  %v2846_v42 = vsub.f32 %v2807_v2, %v2835_v19  ;;  %v2847_v1 = vsub.f32 %v2808_v27, %v2835_v19 }
 0x1a3   : > { %v2848_v48 = vsub.f32 %v2809_v8, %v2835_v19  ;;  %v2849_v9 = vsub.f32 %v2810_v59, %v2835_v19  ;;  %v2850_v63 = vsub.f32 %v2811_v53, %v2835_v19  ;;  %v2851_v50 = vsub.f32 %v2812_v37, %v2835_v19 }
 0x1a4   : > { %v2852_v21 = vmul.f32 %v2836_v0, %v2836_v0  ;;  %v2853_v7 = vmul.f32 %v2837_v24, %v2837_v24  ;;  %v2854_v35 = vmul.f32 %v2838_v60, %v2838_v60  ;;  %v2855_v30 = vmul.f32 %v2839_v14, %v2839_v14 }
 0x1a5   : > { %v2856_v28 = vmul.f32 %v2840_v11, %v2840_v11  ;;  %v2857_v10 = vmul.f32 %v2841_v49, %v2841_v49  ;;  %v2858_v12 = vmul.f32 %v2842_v43, %v2842_v43  ;;  %v2859_v32 = vmul.f32 %v2843_v34, %v2843_v34 }
 0x1a6   : > { %v2868_v58 = vadd.f32 %v2853_v7, %v2852_v21  ;;  %v2860_v2 = vmul.f32 %v2844_v57, %v2844_v57  ;;  %v2861_v40 = vmul.f32 %v2845_v55, %v2845_v55  ;;  %v2862_v8 = vmul.f32 %v2846_v42, %v2846_v42 }
 0x1a7   : > { %v2863_v59 = vmul.f32 %v2847_v1, %v2847_v1  ;;  %v2864_v6 = vmul.f32 %v2848_v48, %v2848_v48  ;;  %v2865_v62 = vmul.f32 %v2849_v9, %v2849_v9  ;;  %v2866_v56 = vmul.f32 %v2850_v63, %v2850_v63 }
 0x1a8   : > { %v2869_v4 = vadd.f32 %v2868_v58, %v2854_v35  ;;  %v2867_v31 = vmul.f32 %v2851_v50, %v2851_v50 }
 0x1aa   : > { %v2870_v18 = vadd.f32 %v2869_v4, %v2855_v30 }
 0x1ac   : > { %v2871_v29 = vadd.f32 %v2870_v18, %v2856_v28 }
 0x1ae   : > { %v2872_v3 = vadd.f32 %v2871_v29, %v2857_v10 }
 0x1b0   : > { %v2873_v15 = vadd.f32 %v2872_v3, %v2858_v12 }
 0x1b2   : > { %v2874_v27 = vadd.f32 %v2873_v15, %v2859_v32 }
 0x1b4   : > { %v2875_v52 = vadd.f32 %v2874_v27, %v2860_v2 }
 0x1b6   : > { %v2876_v17 = vadd.f32 %v2875_v52, %v2861_v40 }
 0x1b8   : > { %v2877_v16 = vadd.f32 %v2876_v17, %v2862_v8 }
 0x1ba   : > { %v2878_v26 = vadd.f32 %v2877_v16, %v2863_v59 }
 0x1bc   : > { %v2879_v47 = vadd.f32 %v2878_v26, %v2864_v6 }
 0x1be   : > { %v2880_v22 = vadd.f32 %v2879_v47, %v2865_v62 }
 0x1c0   : > { %v2881_v36 = vadd.f32 %v2880_v22, %v2866_v56 }
 0x1c2   : > { %v2882_v46 = vadd.f32 %v2881_v36, %v2867_v31 }
 0x1c4   : > { %v2883_v23 = vrot.slane %v2882_v46, 4 }
 0x1c6   : > { %v2884_v39 = vadd.f32 %v2883_v23, %v2882_v46 }
 0x1c8   : > { %v2885_v53 = vrot.slane %v2884_v39, 2 }
 0x1ca   : > { %v2886_v37 = vadd.f32 %v2885_v53, %v2884_v39 }
 0x1cc   : > { %v2887_v45 = vrot.slane %v2886_v37, 1 }
 0x1ce   : > { %v2888_v61 = vadd.f32 %v2887_v45, %v2886_v37 }
 0x1d0   : > { %v2890_v38 = vsel %vm2889_vm4, %v4288_v51, %v2888_v61 }
 0x1d1   : > { %2891 = vst [vmem:[%s387_s30] sm:$0x3] %v2890_v38 }
 0x1d2 PF: > { %s15_s22 = sadd.s32 1, %s3327_s22   ;;  %s4368_s18 = smov %s3319_s20 }
 0x1d3   : > { %p12_p13 = scmp.ge.s32.totalorder %s15_s22, 6   ;;  %s4369_s19 = smov %s3323_s21 }
 0x1d4   : > { %s4370_s20 = smov %s4373_s23  ;;  %s4371_s21 = smov %s4377_s24 }
 0x1d5   :  { %14 = sbr.rel (!%p12_p13) target bundleno = 3 (0x3), region = 78 }

</bundles_post_ra>
